<compile_context>
chip_gen: v6e
topology: v6e:2x2x1
jax: 0.10.0
libtpu: 0.0.40
codegen_flags: <defaults>
</compile_context>

<pallas_src>
import math
from functools import partial

import jax
import jax.numpy as jnp
from jax.experimental import pallas as pl
from jax.experimental.pallas import tpu as pltpu


def _round_up(x, m):
    return ((x + m - 1) // m) * m


def _sublane(dtype):
    # 8 sublanes of 32-bit; sub-32-bit dtypes pack along sublanes.
    return max(8, 32 // jnp.dtype(dtype).itemsize)


_VMEM_LIMIT = 32 * 1024 * 1024  # below v7x's 64 MiB physical VMEM; plenty for these tiles
_CP_1D = pltpu.CompilerParams(dimension_semantics=("parallel",),
                              vmem_limit_bytes=_VMEM_LIMIT)
_CP_2D = pltpu.CompilerParams(dimension_semantics=("parallel", "arbitrary"),
                              vmem_limit_bytes=_VMEM_LIMIT)


# ---------------------------------------------------------------------------
# Kernels
# ---------------------------------------------------------------------------
def _linear_kernel(x_ref, w_ref, b_ref, o_ref):
    y = jnp.dot(x_ref[...], w_ref[...], preferred_element_type=jnp.float32)
    o_ref[...] = (y + b_ref[...].astype(jnp.float32)).astype(o_ref.dtype)


def _kv_q_proj_kernel(x_ref, y_ref, wkv_ref, bkv_ref, wq_ref, bq_ref,
                      kv_out_ref, q_out_ref):
    # Cross-attention kv(x) and q(y) projections fused into one launch.
    kv = jnp.dot(x_ref[...], wkv_ref[...], preferred_element_type=jnp.float32)
    kv_out_ref[...] = (kv + bkv_ref[...].astype(jnp.float32)).astype(kv_out_ref.dtype)
    q = jnp.dot(y_ref[...], wq_ref[...], preferred_element_type=jnp.float32)
    q_out_ref[...] = (q + bq_ref[...].astype(jnp.float32)).astype(q_out_ref.dtype)


def _layernorm_f32(z, g, b, eps):
    mean = jnp.mean(z, axis=-1, keepdims=True)
    c = z - mean
    var = jnp.mean(c * c, axis=-1, keepdims=True)
    y = c * jax.lax.rsqrt(var + eps)
    return y * g + b


def _proj_add_ln_kernel(x_ref, w_ref, b_ref, r_ref, g_ref, be_ref, o_ref, *, eps):
    # y = LN( (x @ W + b) + residual ) * gamma + beta      (fused, one HBM round trip)
    y = jnp.dot(x_ref[...], w_ref[...], preferred_element_type=jnp.float32)
    z = y + b_ref[...].astype(jnp.float32) + r_ref[...].astype(jnp.float32)
    out = _layernorm_f32(z, g_ref[...].astype(jnp.float32),
                         be_ref[...].astype(jnp.float32), eps)
    o_ref[...] = out.astype(o_ref.dtype)


def _ffn_ln_kernel(x_ref, w1_ref, b1_ref, w2_ref, b2_ref, r_ref, g_ref, be_ref,
                   o_ref, acc_ref, *, eps):
    # Hidden dim is a reduction grid axis (last, "arbitrary"); accumulate in f32 VMEM.
    j = pl.program_id(1)

    @pl.when(j == 0)
    def _():
        acc_ref[...] = jnp.zeros_like(acc_ref)

    h = jnp.dot(x_ref[...], w1_ref[...], preferred_element_type=jnp.float32)
    h = jnp.maximum(h + b1_ref[...].astype(jnp.float32), 0.0)
    acc_ref[...] += jnp.dot(h.astype(x_ref.dtype), w2_ref[...],
                            preferred_element_type=jnp.float32)

    @pl.when(j == pl.num_programs(1) - 1)
    def _():
        z = (acc_ref[...] + b2_ref[...].astype(jnp.float32)
             + r_ref[...].astype(jnp.float32))
        out = _layernorm_f32(z, g_ref[...].astype(jnp.float32),
                             be_ref[...].astype(jnp.float32), eps)
        o_ref[...] = out.astype(o_ref.dtype)


def _attend(q, k, v, mask, scale):
    # q,k,v: (S, Dh); mask: (S, S) f32
    s = jax.lax.dot_general(q, k, (((1,), (1,)), ((), ())),
                            preferred_element_type=jnp.float32)
    s = s * scale + mask
    s = s - jnp.max(s, axis=-1, keepdims=True)
    p = jnp.exp(s)
    o = jnp.dot(p.astype(v.dtype), v, preferred_element_type=jnp.float32)
    # deferred normalization: divide the (S,Dh) output, not the (S,S) probabilities
    return o * pl.reciprocal(jnp.sum(p, axis=-1, keepdims=True), approx=True)


def _self_attention_kernel(qkv_ref, mask_ref, o_ref, *, num_heads, head_dim, scale):
    # qkv_ref: (S, 3D); per head h the columns are [q_h | k_h | v_h], each head_dim wide.
    mask = mask_ref[...].astype(jnp.float32)
    outs = []
    for h in range(num_heads):
        base = h * 3 * head_dim
        q = qkv_ref[:, base:base + head_dim]
        k = qkv_ref[:, base + head_dim:base + 2 * head_dim]
        v = qkv_ref[:, base + 2 * head_dim:base + 3 * head_dim]
        outs.append(_attend(q, k, v, mask, scale))
    # heads concatenated head-major -> directly the (S, D) layout of permute+reshape
    o_ref[...] = jnp.concatenate(outs, axis=-1).astype(o_ref.dtype)


def _cross_attention_kernel(q_ref, kv_ref, mask_ref, o_ref, *, num_heads, head_dim, scale):
    # q_ref: (S, D) head h at [h*hd : (h+1)*hd]; kv_ref: (S, 2D) head h is [k_h | v_h].
    mask = mask_ref[...].astype(jnp.float32)
    outs = []
    for h in range(num_heads):
        qb = h * head_dim
        kb = h * 2 * head_dim
        q = q_ref[:, qb:qb + head_dim]
        k = kv_ref[:, kb:kb + head_dim]
        v = kv_ref[:, kb + head_dim:kb + 2 * head_dim]
        outs.append(_attend(q, k, v, mask, scale))
    o_ref[...] = jnp.concatenate(outs, axis=-1).astype(o_ref.dtype)


# ---------------------------------------------------------------------------
# Wrappers
# ---------------------------------------------------------------------------
def _pad_rows(x2d, m_pad):
    m = x2d.shape[0]
    if m_pad == m:
        return x2d
    return jnp.pad(x2d, ((0, m_pad - m), (0, 0)))


def _choose_tile_m(m, tile_m, sublane):
    m_min = _round_up(m, sublane)
    tm = min(_round_up(tile_m, sublane), m_min)
    # v7x has 2 TensorCores sharded via "parallel": keep >= 2 grid steps when possible.
    if m_min // tm < 2 and m_min >= 2 * sublane:
        tm = _round_up(m_min // 2, sublane)
    m_pad = _round_up(m, tm)
    return tm, m_pad


def pallas_linear(x, w, b, *, tile_m=256):
    """x: (..., K); w: (K, N) pre-transposed; b: (N,)."""
    lead = x.shape[:-1]
    k = x.shape[-1]
    n = w.shape[1]
    m = math.prod(lead) if lead else 1
    tm, m_pad = _choose_tile_m(m, tile_m, _sublane(x.dtype))
    x2d = _pad_rows(x.reshape(m, k), m_pad)
    out = pl.pallas_call(
        _linear_kernel,
        out_shape=jax.ShapeDtypeStruct((m_pad, n), x.dtype),
        grid_spec=pltpu.PrefetchScalarGridSpec(
            num_scalar_prefetch=0,
            grid=(m_pad // tm,),
            in_specs=[
                pl.BlockSpec((tm, k), lambda i: (i, 0)),
                pl.BlockSpec((k, n), lambda i: (0, 0)),
                pl.BlockSpec((1, n), lambda i: (0, 0)),
            ],
            out_specs=pl.BlockSpec((tm, n), lambda i: (i, 0)),
        ),
        compiler_params=_CP_1D,
    )(x2d, w, b.reshape(1, n))
    return out[:m].reshape(*lead, n)


def pallas_cross_kvq_proj(x, y, w_kv, b_kv, w_q, b_q, *, tile_m=256):
    """Fused kv(x) and q(y) projections (one launch, two outputs)."""
    lead = x.shape[:-1]
    d = x.shape[-1]
    n_kv = w_kv.shape[1]
    n_q = w_q.shape[1]
    m = math.prod(lead) if lead else 1
    tm, m_pad = _choose_tile_m(m, tile_m, _sublane(x.dtype))
    x2d = _pad_rows(x.reshape(m, d), m_pad)
    y2d = _pad_rows(y.reshape(m, d), m_pad)
    kv, q = pl.pallas_call(
        _kv_q_proj_kernel,
        out_shape=(jax.ShapeDtypeStruct((m_pad, n_kv), x.dtype),
                   jax.ShapeDtypeStruct((m_pad, n_q), y.dtype)),
        grid_spec=pltpu.PrefetchScalarGridSpec(
            num_scalar_prefetch=0,
            grid=(m_pad // tm,),
            in_specs=[
                pl.BlockSpec((tm, d), lambda i: (i, 0)),
                pl.BlockSpec((tm, d), lambda i: (i, 0)),
                pl.BlockSpec((d, n_kv), lambda i: (0, 0)),
                pl.BlockSpec((1, n_kv), lambda i: (0, 0)),
                pl.BlockSpec((d, n_q), lambda i: (0, 0)),
                pl.BlockSpec((1, n_q), lambda i: (0, 0)),
            ],
            out_specs=[
                pl.BlockSpec((tm, n_kv), lambda i: (i, 0)),
                pl.BlockSpec((tm, n_q), lambda i: (i, 0)),
            ],
        ),
        compiler_params=_CP_1D,
    )(x2d, y2d, w_kv, b_kv.reshape(1, n_kv), w_q, b_q.reshape(1, n_q))
    return kv[:m].reshape(*lead, n_kv), q[:m].reshape(*lead, n_q)


def pallas_proj_add_layernorm(x, w, bias, residual, gamma, beta, *, eps=1e-5, tile_m=256):
    """LN((x @ W + b) + residual) * gamma + beta, fused."""
    lead = x.shape[:-1]
    k = x.shape[-1]
    n = w.shape[1]
    m = math.prod(lead) if lead else 1
    tm, m_pad = _choose_tile_m(m, tile_m, _sublane(x.dtype))
    x2d = _pad_rows(x.reshape(m, k), m_pad)
    r2d = _pad_rows(residual.reshape(m, n), m_pad)
    out = pl.pallas_call(
        partial(_proj_add_ln_kernel, eps=eps),
        out_shape=jax.ShapeDtypeStruct((m_pad, n), x.dtype),
        grid_spec=pltpu.PrefetchScalarGridSpec(
            num_scalar_prefetch=0,
            grid=(m_pad // tm,),
            in_specs=[
                pl.BlockSpec((tm, k), lambda i: (i, 0)),
                pl.BlockSpec((k, n), lambda i: (0, 0)),
                pl.BlockSpec((1, n), lambda i: (0, 0)),
                pl.BlockSpec((tm, n), lambda i: (i, 0)),
                pl.BlockSpec((1, n), lambda i: (0, 0)),
                pl.BlockSpec((1, n), lambda i: (0, 0)),
            ],
            out_specs=pl.BlockSpec((tm, n), lambda i: (i, 0)),
        ),
        compiler_params=_CP_1D,
    )(x2d, w, bias.reshape(1, n), r2d, gamma.reshape(1, n), beta.reshape(1, n))
    return out[:m].reshape(*lead, n)


def pallas_ffn_add_layernorm(x, w1, b1, w2, b2, residual, gamma, beta, *,
                             eps=1e-5, tile_m=256, tile_h=1024):
    """LN( relu(x@W1+b1)@W2 + b2 + residual ), hidden dim tiled with a VMEM accumulator."""
    lead = x.shape[:-1]
    d = x.shape[-1]
    hdim = w1.shape[1]
    m = math.prod(lead) if lead else 1
    tm, m_pad = _choose_tile_m(m, tile_m, _sublane(x.dtype))
    x2d = _pad_rows(x.reshape(m, d), m_pad)
    r2d = _pad_rows(residual.reshape(m, d), m_pad)
    th = min(tile_h, _round_up(hdim, 128))
    h_pad = _round_up(hdim, th)
    if h_pad != hdim:
        # zero-padded hidden units contribute exactly 0: relu(x@0 + 0) @ 0 = 0
        w1 = jnp.pad(w1, ((0, 0), (0, h_pad - hdim)))
        b1 = jnp.pad(b1, ((0, h_pad - hdim),))
        w2 = jnp.pad(w2, ((0, h_pad - hdim), (0, 0)))
    out = pl.pallas_call(
        partial(_ffn_ln_kernel, eps=eps),
        out_shape=jax.ShapeDtypeStruct((m_pad, d), x.dtype),
        grid_spec=pltpu.PrefetchScalarGridSpec(
            num_scalar_prefetch=0,
            grid=(m_pad // tm, h_pad // th),
            in_specs=[
                pl.BlockSpec((tm, d), lambda i, j: (i, 0)),
                pl.BlockSpec((d, th), lambda i, j: (0, j)),
                pl.BlockSpec((1, th), lambda i, j: (0, j)),
                pl.BlockSpec((th, d), lambda i, j: (j, 0)),
                pl.BlockSpec((1, d), lambda i, j: (0, 0)),
                pl.BlockSpec((tm, d), lambda i, j: (i, 0)),
                pl.BlockSpec((1, d), lambda i, j: (0, 0)),
                pl.BlockSpec((1, d), lambda i, j: (0, 0)),
            ],
            out_specs=pl.BlockSpec((tm, d), lambda i, j: (i, 0)),
            scratch_shapes=[pltpu.VMEM((tm, d), jnp.float32)],
        ),
        compiler_params=_CP_2D,
    )(x2d, w1, b1.reshape(1, h_pad), w2, b2.reshape(1, d), r2d,
      gamma.reshape(1, d), beta.reshape(1, d))
    return out[:m].reshape(*lead, d)


def _mask_2d(mask, s):
    # torch semantics: mask broadcasts over (H, B, S, S); a <=2D mask is identical for
    # every (b, h), so pass a single (S, S) tile once instead of B*H HBM copies.
    # TODO(synk): per-(batch,head) masks (rank>2) would need a per-step mask BlockSpec.
    return jnp.broadcast_to(jnp.asarray(mask, jnp.float32), (s, s))


def pallas_self_attention(qkv, mask, num_heads):
    """qkv: (B, S, 3D) packed per head [q|k|v]. Returns (B, S, D) head-major."""
    b, s, d3 = qkv.shape
    d = d3 // 3
    hd = d // num_heads
    scale = 1.0 / math.sqrt(hd)
    out = pl.pallas_call(
        partial(_self_attention_kernel, num_heads=num_heads, head_dim=hd, scale=scale),
        out_shape=jax.ShapeDtypeStruct((b, s, d), qkv.dtype),
        grid_spec=pltpu.PrefetchScalarGridSpec(
            num_scalar_prefetch=0,
            grid=(b,),
            in_specs=[
                pl.BlockSpec((None, s, d3), lambda i: (i, 0, 0)),
                pl.BlockSpec((s, s), lambda i: (0, 0)),
            ],
            out_specs=pl.BlockSpec((None, s, d), lambda i: (i, 0, 0)),
        ),
        compiler_params=_CP_1D,
    )(qkv, _mask_2d(mask, s))
    return out


def pallas_cross_attention(q, kv, mask, num_heads):
    """q: (B, S, D), kv: (B, S, 2D) packed per head [k|v]. Returns (B, S, D)."""
    b, s, d = q.shape
    hd = d // num_heads
    scale = 1.0 / math.sqrt(hd)
    out = pl.pallas_call(
        partial(_cross_attention_kernel, num_heads=num_heads, head_dim=hd, scale=scale),
        out_shape=jax.ShapeDtypeStruct((b, s, d), q.dtype),
        grid_spec=pltpu.PrefetchScalarGridSpec(
            num_scalar_prefetch=0,
            grid=(b,),
            in_specs=[
                pl.BlockSpec((None, s, d), lambda i: (i, 0, 0)),
                pl.BlockSpec((None, s, 2 * d), lambda i: (i, 0, 0)),
                pl.BlockSpec((s, s), lambda i: (0, 0)),
            ],
            out_specs=pl.BlockSpec((None, s, d), lambda i: (i, 0, 0)),
        ),
        compiler_params=_CP_1D,
    )(q, kv, _mask_2d(mask, s))
    return out


# ---------------------------------------------------------------------------
# Decoder forward (orchestrates kernels; no JAX-side transposes between them)
# ---------------------------------------------------------------------------
def decoder_embedding(params, y_ids):
    # TODO(synk): nn.Embedding gather is data-dependent; done with jnp.take outside Pallas.
    emb = jnp.take(params["embedding"], y_ids, axis=0)            # (B, S, D)
    bsz = y_ids.shape[0]
    # Faithful to the reference module: pe[:x.size(0)] indexes the *batch* dimension.
    return emb + params["pe"][:bsz][:, None, :]


def decoder_layer_forward(lp, x, y, self_mask, cross_mask, num_heads):
    # ---- masked self attention ----
    residual = y
    qkv = pallas_linear(y, lp["w_qkv"], lp["b_qkv"])              # (B, S, 3D), N=3D>=256
    vals = pallas_self_attention(qkv, self_mask, num_heads)       # (B, S, D)
    y = pallas_proj_add_layernorm(vals, lp["w_o1"], lp["b_o1"], residual,
                                  lp["g1"], lp["be1"])
    # ---- encoder-decoder cross attention ----
    residual = y
    kv, qc = pallas_cross_kvq_proj(x, y, lp["w_kv"], lp["b_kv"], lp["w_q"], lp["b_q"])
    vals = pallas_cross_attention(qc, kv, cross_mask, num_heads)
    y = pallas_proj_add_layernorm(vals, lp["w_o2"], lp["b_o2"], residual,
                                  lp["g2"], lp["be2"])
    # ---- position-wise feed forward ----
    residual = y
    y = pallas_ffn_add_layernorm(y, lp["w_f1"], lp["b_f1"], lp["w_f2"], lp["b_f2"],
                                 residual, lp["g3"], lp["be3"])
    return y


def decoder_forward(params, x, y_ids, self_mask, cross_mask, num_heads):
    y = decoder_embedding(params, y_ids)
    for lp in params["layers"]:
        y = decoder_layer_forward(lp, x, y, self_mask, cross_mask, num_heads)
    return y


# ---------------------------------------------------------------------------
# Parameter init (mimics nn.Linear / nn.Embedding defaults, deterministic)
# ---------------------------------------------------------------------------
def _linear_params(key, fan_in, fan_out, dtype=jnp.float32):
    kw, kb = jax.random.split(key)
    bound = 1.0 / math.sqrt(fan_in)
    # weights stored pre-transposed (in, out) so kernels compute x @ w
    w = jax.random.uniform(kw, (fan_in, fan_out), dtype, -bound, bound)
    b = jax.random.uniform(kb, (fan_out,), dtype, -bound, bound)
    return w, b


def init_decoder_params(key, vocab_size, max_seq_length, embed_dim, ffn_hidden,
                        num_layers, dtype=jnp.float32):
    keys = jax.random.split(key, num_layers + 1)
    emb = jax.random.normal(keys[0], (vocab_size, embed_dim), dtype)
    # sinusoidal positional encoding, same formula as the torch module
    pos = jnp.arange(max_seq_length, dtype=jnp.float32)[:, None]
    div = jnp.exp(jnp.arange(0, embed_dim, 2, dtype=jnp.float32)
                  * (-math.log(10000.0) / embed_dim))
    pe = jnp.zeros((max_seq_length, embed_dim), jnp.float32)
    pe = pe.at[:, 0::2].set(jnp.sin(pos * div))
    pe = pe.at[:, 1::2].set(jnp.cos(pos * div))
    layers = []
    for li in range(num_layers):
        ks = jax.random.split(keys[li + 1], 7)
        w_qkv, b_qkv = _linear_params(ks[0], embed_dim, 3 * embed_dim, dtype)
        w_o1, b_o1 = _linear_params(ks[1], embed_dim, embed_dim, dtype)
        w_kv, b_kv = _linear_params(ks[2], embed_dim, 2 * embed_dim, dtype)
        w_q, b_q = _linear_params(ks[3], embed_dim, embed_dim, dtype)
        w_o2, b_o2 = _linear_params(ks[4], embed_dim, embed_dim, dtype)
        w_f1, b_f1 = _linear_params(ks[5], embed_dim, ffn_hidden, dtype)
        w_f2, b_f2 = _linear_params(ks[6], ffn_hidden, embed_dim, dtype)
        layers.append(dict(
            w_qkv=w_qkv, b_qkv=b_qkv, w_o1=w_o1, b_o1=b_o1,
            w_kv=w_kv, b_kv=b_kv, w_q=w_q, b_q=b_q, w_o2=w_o2, b_o2=b_o2,
            w_f1=w_f1, b_f1=b_f1, w_f2=w_f2, b_f2=b_f2,
            g1=jnp.ones((embed_dim,), dtype), be1=jnp.zeros((embed_dim,), dtype),
            g2=jnp.ones((embed_dim,), dtype), be2=jnp.zeros((embed_dim,), dtype),
            g3=jnp.ones((embed_dim,), dtype), be3=jnp.zeros((embed_dim,), dtype),
        ))
    return dict(embedding=emb, pe=pe.astype(dtype), layers=layers)


# ---------------------------------------------------------------------------
# Pure-JAX reference (mirrors the torch module, dropout = identity)
# ---------------------------------------------------------------------------
def _ref_layernorm(x, gamma, beta, eps=1e-5):
    mean = jnp.mean(x, axis=-1, keepdims=True)
    var = jnp.mean((x - mean) ** 2, axis=-1, keepdims=True)
    return gamma * ((x - mean) / jnp.sqrt(var + eps)) + beta


def _ref_sdp(q, k, v, mask):
    d_k = q.shape[-1]
    scaled = jnp.einsum("bhqd,bhkd->bhqk", q, k) / jnp.sqrt(jnp.float32(d_k))
    if mask is not None:
        scaled = jnp.transpose(scaled, (1, 0, 2, 3)) + mask
        scaled = jnp.transpose(scaled, (1, 0, 2, 3))
    attn = jax.nn.softmax(scaled, axis=-1)
    return jnp.einsum("bhqk,bhkd->bhqd", attn, v)


def reference_decoder(params, x, y_ids, self_mask, cross_mask, num_heads):
    emb = jnp.take(params["embedding"], y_ids, axis=0)
    y = emb + params["pe"][: y_ids.shape[0]][:, None, :]
    for lp in params["layers"]:
        b, s, d = y.shape
        hd = d // num_heads
        r = y
        qkv = y @ lp["w_qkv"] + lp["b_qkv"]
        qkv = jnp.transpose(qkv.reshape(b, s, num_heads, 3 * hd), (0, 2, 1, 3))
        q, k, v = jnp.split(qkv, 3, axis=-1)
        vals = _ref_sdp(q, k, v, self_mask)
        vals = jnp.transpose(vals, (0, 2, 1, 3)).reshape(b, s, d)
        y = _ref_layernorm(vals @ lp["w_o1"] + lp["b_o1"] + r, lp["g1"], lp["be1"])
        r = y
        kv = x @ lp["w_kv"] + lp["b_kv"]
        qc = y @ lp["w_q"] + lp["b_q"]
        kv = jnp.transpose(kv.reshape(b, s, num_heads, 2 * hd), (0, 2, 1, 3))
        k2, v2 = jnp.split(kv, 2, axis=-1)
        q2 = jnp.transpose(qc.reshape(b, s, num_heads, hd), (0, 2, 1, 3))
        vals = _ref_sdp(q2, k2, v2, cross_mask)
        vals = jnp.transpose(vals, (0, 2, 1, 3)).reshape(b, s, d)
        y = _ref_layernorm(vals @ lp["w_o2"] + lp["b_o2"] + r, lp["g2"], lp["be2"])
        r = y
        f = jnp.maximum(y @ lp["w_f1"] + lp["b_f1"], 0.0) @ lp["w_f2"] + lp["b_f2"]
        y = _ref_layernorm(f + r, lp["g3"], lp["be3"])
    return y


if __name__ == "__main__":
    vocab_size = 60
    max_seq_length = 32
    embed_dim = 128      # lane-dense (multiple of 128)
    ffn_hidden = 256
    num_heads = 4
    num_layers = 2
    batch, seq = 2, 16

    key = jax.random.PRNGKey(0)
    kp, kx, ky = jax.random.split(key, 3)
    params = init_decoder_params(kp, vocab_size, max_seq_length, embed_dim,
                                 ffn_hidden, num_layers)
    x = jax.random.normal(kx, (batch, seq, embed_dim), jnp.float32)   # encoder output
    y_ids = jax.random.randint(ky, (batch, seq), 0, vocab_size)
    causal = jnp.triu(jnp.ones((seq, seq), dtype=bool), k=1)
    self_mask = jnp.where(causal, jnp.float32(-1e9), jnp.float32(0.0))
    cross_mask = jnp.zeros((seq, seq), jnp.float32)

    fwd = jax.jit(partial(decoder_forward, num_heads=num_heads))
    out = fwd(params, x, y_ids, self_mask, cross_mask)
    out = jax.block_until_ready(out)

    ref = reference_decoder(params, x, y_ids, self_mask, cross_mask, num_heads)
    assert out.shape == (batch, seq, embed_dim)
    max_err = jnp.max(jnp.abs(out - ref))
    assert jnp.allclose(out, ref, atol=2e-2, rtol=2e-2), \
        f"mismatch vs reference (max abs err {max_err})"

    print("KERNEL_OK")
</pallas_src>

<mosaic_0001>
module attributes {stable_mosaic.version = 11 : i64} {
  func.func @_self_attention_kernel(%arg0: i32, %arg1: memref<1x16x384xf32, #tpu.memory_space<vmem>>, %arg2: memref<16x16xf32, #tpu.memory_space<vmem>>, %arg3: memref<1x16x128xf32, #tpu.memory_space<vmem>>) attributes {dimension_semantics = [#tpu.dimension_semantics<parallel>], iteration_bounds = array<i64: 2>, scalar_prefetch = 0 : i64, scratch_operands = 0 : i64, tpu.core_type = #tpu.core_type<tc>, window_params = [{transform_indices = @transform_0, window_bounds = array<i64: 1, 16, 384>}, {pipeline_mode = #tpu.pipeline_mode<synchronous>, transform_indices = @transform_1, window_bounds = array<i64: 16, 16>}, {transform_indices = @transform_2, window_bounds = array<i64: 1, 16, 128>}]} {
    %c0 = arith.constant 0 : index
    %c0_0 = arith.constant 0 : index
    %0 = vector.load %arg2[%c0, %c0_0] : memref<16x16xf32, #tpu.memory_space<vmem>>, vector<16x16xf32>
    %c0_1 = arith.constant 0 : index
    %c0_2 = arith.constant 0 : index
    %c0_3 = arith.constant 0 : index
    %1 = vector.load %arg1[%c0_1, %c0_2, %c0_3] : memref<1x16x384xf32, #tpu.memory_space<vmem>>, vector<1x16x32xf32>
    %2 = vector.shape_cast %1 : vector<1x16x32xf32> to vector<16x32xf32>
    %c0_4 = arith.constant 0 : index
    %c0_5 = arith.constant 0 : index
    %c32 = arith.constant 32 : index
    %3 = vector.load %arg1[%c0_4, %c0_5, %c32] : memref<1x16x384xf32, #tpu.memory_space<vmem>>, vector<1x16x32xf32>
    %4 = vector.shape_cast %3 : vector<1x16x32xf32> to vector<16x32xf32>
    %c0_6 = arith.constant 0 : index
    %c0_7 = arith.constant 0 : index
    %c64 = arith.constant 64 : index
    %5 = vector.load %arg1[%c0_6, %c0_7, %c64] : memref<1x16x384xf32, #tpu.memory_space<vmem>>, vector<1x16x32xf32>
    %6 = vector.shape_cast %5 : vector<1x16x32xf32> to vector<16x32xf32>
    %cst = arith.constant dense<0.000000e+00> : vector<16x16xf32>
    %7 = tpu.matmul %2, %4, %cst {dimension_numbers = #tpu.dot_dimension_numbers<[1], [1], [0], [0], [0, 0, 1, 0], [], []>} : vector<16x32xf32>, vector<16x32xf32>, vector<16x16xf32> -> vector<16x16xf32>
    %cst_8 = arith.constant 0.176776692 : f32
    %8 = vector.broadcast %cst_8 : f32 to vector<16x16xf32>
    %9 = arith.mulf %7, %8 : vector<16x16xf32>
    %10 = arith.addf %9, %0 : vector<16x16xf32>
    %cst_9 = arith.constant dense<0xFF800000> : vector<16xf32>
    %11 = vector.multi_reduction <maximumf>, %10, %cst_9 [1] : vector<16x16xf32> to vector<16xf32>
    %12 = vector.shape_cast %11 : vector<16xf32> to vector<16x1xf32>
    %13 = vector.broadcast %12 : vector<16x1xf32> to vector<16x16xf32>
    %14 = arith.subf %10, %13 : vector<16x16xf32>
    %15 = math.exp %14 : vector<16x16xf32>
    %cst_10 = arith.constant dense<0.000000e+00> : vector<16x32xf32>
    %16 = tpu.matmul %15, %6, %cst_10 {dimension_numbers = #tpu.dot_dimension_numbers<[1], [0], [0], [1], [0, 0, 1, 1], [], []>} : vector<16x16xf32>, vector<16x32xf32>, vector<16x32xf32> -> vector<16x32xf32>
    %cst_11 = arith.constant dense<0.000000e+00> : vector<16xf32>
    %17 = vector.multi_reduction <add>, %15, %cst_11 [1] : vector<16x16xf32> to vector<16xf32>
    %18 = vector.shape_cast %17 : vector<16xf32> to vector<16x1xf32>
    %19 = tpu.reciprocal %18 {approx = true} : vector<16x1xf32> -> vector<16x1xf32>
    %20 = vector.broadcast %19 : vector<16x1xf32> to vector<16x32xf32>
    %21 = arith.mulf %16, %20 : vector<16x32xf32>
    %c0_12 = arith.constant 0 : index
    %c0_13 = arith.constant 0 : index
    %c96 = arith.constant 96 : index
    %22 = vector.load %arg1[%c0_12, %c0_13, %c96] : memref<1x16x384xf32, #tpu.memory_space<vmem>>, vector<1x16x32xf32>
    %23 = vector.shape_cast %22 : vector<1x16x32xf32> to vector<16x32xf32>
    %c0_14 = arith.constant 0 : index
    %c0_15 = arith.constant 0 : index
    %c128 = arith.constant 128 : index
    %24 = vector.load %arg1[%c0_14, %c0_15, %c128] : memref<1x16x384xf32, #tpu.memory_space<vmem>>, vector<1x16x32xf32>
    %25 = vector.shape_cast %24 : vector<1x16x32xf32> to vector<16x32xf32>
    %c0_16 = arith.constant 0 : index
    %c0_17 = arith.constant 0 : index
    %c160 = arith.constant 160 : index
    %26 = vector.load %arg1[%c0_16, %c0_17, %c160] : memref<1x16x384xf32, #tpu.memory_space<vmem>>, vector<1x16x32xf32>
    %27 = vector.shape_cast %26 : vector<1x16x32xf32> to vector<16x32xf32>
    %cst_18 = arith.constant dense<0.000000e+00> : vector<16x16xf32>
    %28 = tpu.matmul %23, %25, %cst_18 {dimension_numbers = #tpu.dot_dimension_numbers<[1], [1], [0], [0], [0, 0, 1, 0], [], []>} : vector<16x32xf32>, vector<16x32xf32>, vector<16x16xf32> -> vector<16x16xf32>
    %cst_19 = arith.constant 0.176776692 : f32
    %29 = vector.broadcast %cst_19 : f32 to vector<16x16xf32>
    %30 = arith.mulf %28, %29 : vector<16x16xf32>
    %31 = arith.addf %30, %0 : vector<16x16xf32>
    %cst_20 = arith.constant dense<0xFF800000> : vector<16xf32>
    %32 = vector.multi_reduction <maximumf>, %31, %cst_20 [1] : vector<16x16xf32> to vector<16xf32>
    %33 = vector.shape_cast %32 : vector<16xf32> to vector<16x1xf32>
    %34 = vector.broadcast %33 : vector<16x1xf32> to vector<16x16xf32>
    %35 = arith.subf %31, %34 : vector<16x16xf32>
    %36 = math.exp %35 : vector<16x16xf32>
    %cst_21 = arith.constant dense<0.000000e+00> : vector<16x32xf32>
    %37 = tpu.matmul %36, %27, %cst_21 {dimension_numbers = #tpu.dot_dimension_numbers<[1], [0], [0], [1], [0, 0, 1, 1], [], []>} : vector<16x16xf32>, vector<16x32xf32>, vector<16x32xf32> -> vector<16x32xf32>
    %cst_22 = arith.constant dense<0.000000e+00> : vector<16xf32>
    %38 = vector.multi_reduction <add>, %36, %cst_22 [1] : vector<16x16xf32> to vector<16xf32>
    %39 = vector.shape_cast %38 : vector<16xf32> to vector<16x1xf32>
    %40 = tpu.reciprocal %39 {approx = true} : vector<16x1xf32> -> vector<16x1xf32>
    %41 = vector.broadcast %40 : vector<16x1xf32> to vector<16x32xf32>
    %42 = arith.mulf %37, %41 : vector<16x32xf32>
    %c0_23 = arith.constant 0 : index
    %c0_24 = arith.constant 0 : index
    %c192 = arith.constant 192 : index
    %43 = vector.load %arg1[%c0_23, %c0_24, %c192] : memref<1x16x384xf32, #tpu.memory_space<vmem>>, vector<1x16x32xf32>
    %44 = vector.shape_cast %43 : vector<1x16x32xf32> to vector<16x32xf32>
    %c0_25 = arith.constant 0 : index
    %c0_26 = arith.constant 0 : index
    %c224 = arith.constant 224 : index
    %45 = vector.load %arg1[%c0_25, %c0_26, %c224] : memref<1x16x384xf32, #tpu.memory_space<vmem>>, vector<1x16x32xf32>
    %46 = vector.shape_cast %45 : vector<1x16x32xf32> to vector<16x32xf32>
    %c0_27 = arith.constant 0 : index
    %c0_28 = arith.constant 0 : index
    %c256 = arith.constant 256 : index
    %47 = vector.load %arg1[%c0_27, %c0_28, %c256] : memref<1x16x384xf32, #tpu.memory_space<vmem>>, vector<1x16x32xf32>
    %48 = vector.shape_cast %47 : vector<1x16x32xf32> to vector<16x32xf32>
    %cst_29 = arith.constant dense<0.000000e+00> : vector<16x16xf32>
    %49 = tpu.matmul %44, %46, %cst_29 {dimension_numbers = #tpu.dot_dimension_numbers<[1], [1], [0], [0], [0, 0, 1, 0], [], []>} : vector<16x32xf32>, vector<16x32xf32>, vector<16x16xf32> -> vector<16x16xf32>
    %cst_30 = arith.constant 0.176776692 : f32
    %50 = vector.broadcast %cst_30 : f32 to vector<16x16xf32>
    %51 = arith.mulf %49, %50 : vector<16x16xf32>
    %52 = arith.addf %51, %0 : vector<16x16xf32>
    %cst_31 = arith.constant dense<0xFF800000> : vector<16xf32>
    %53 = vector.multi_reduction <maximumf>, %52, %cst_31 [1] : vector<16x16xf32> to vector<16xf32>
    %54 = vector.shape_cast %53 : vector<16xf32> to vector<16x1xf32>
    %55 = vector.broadcast %54 : vector<16x1xf32> to vector<16x16xf32>
    %56 = arith.subf %52, %55 : vector<16x16xf32>
    %57 = math.exp %56 : vector<16x16xf32>
    %cst_32 = arith.constant dense<0.000000e+00> : vector<16x32xf32>
    %58 = tpu.matmul %57, %48, %cst_32 {dimension_numbers = #tpu.dot_dimension_numbers<[1], [0], [0], [1], [0, 0, 1, 1], [], []>} : vector<16x16xf32>, vector<16x32xf32>, vector<16x32xf32> -> vector<16x32xf32>
    %cst_33 = arith.constant dense<0.000000e+00> : vector<16xf32>
    %59 = vector.multi_reduction <add>, %57, %cst_33 [1] : vector<16x16xf32> to vector<16xf32>
    %60 = vector.shape_cast %59 : vector<16xf32> to vector<16x1xf32>
    %61 = tpu.reciprocal %60 {approx = true} : vector<16x1xf32> -> vector<16x1xf32>
    %62 = vector.broadcast %61 : vector<16x1xf32> to vector<16x32xf32>
    %63 = arith.mulf %58, %62 : vector<16x32xf32>
    %c0_34 = arith.constant 0 : index
    %c0_35 = arith.constant 0 : index
    %c288 = arith.constant 288 : index
    %64 = vector.load %arg1[%c0_34, %c0_35, %c288] : memref<1x16x384xf32, #tpu.memory_space<vmem>>, vector<1x16x32xf32>
    %65 = vector.shape_cast %64 : vector<1x16x32xf32> to vector<16x32xf32>
    %c0_36 = arith.constant 0 : index
    %c0_37 = arith.constant 0 : index
    %c320 = arith.constant 320 : index
    %66 = vector.load %arg1[%c0_36, %c0_37, %c320] : memref<1x16x384xf32, #tpu.memory_space<vmem>>, vector<1x16x32xf32>
    %67 = vector.shape_cast %66 : vector<1x16x32xf32> to vector<16x32xf32>
    %c0_38 = arith.constant 0 : index
    %c0_39 = arith.constant 0 : index
    %c352 = arith.constant 352 : index
    %68 = vector.load %arg1[%c0_38, %c0_39, %c352] : memref<1x16x384xf32, #tpu.memory_space<vmem>>, vector<1x16x32xf32>
    %69 = vector.shape_cast %68 : vector<1x16x32xf32> to vector<16x32xf32>
    %cst_40 = arith.constant dense<0.000000e+00> : vector<16x16xf32>
    %70 = tpu.matmul %65, %67, %cst_40 {dimension_numbers = #tpu.dot_dimension_numbers<[1], [1], [0], [0], [0, 0, 1, 0], [], []>} : vector<16x32xf32>, vector<16x32xf32>, vector<16x16xf32> -> vector<16x16xf32>
    %cst_41 = arith.constant 0.176776692 : f32
    %71 = vector.broadcast %cst_41 : f32 to vector<16x16xf32>
    %72 = arith.mulf %70, %71 : vector<16x16xf32>
    %73 = arith.addf %72, %0 : vector<16x16xf32>
    %cst_42 = arith.constant dense<0xFF800000> : vector<16xf32>
    %74 = vector.multi_reduction <maximumf>, %73, %cst_42 [1] : vector<16x16xf32> to vector<16xf32>
    %75 = vector.shape_cast %74 : vector<16xf32> to vector<16x1xf32>
    %76 = vector.broadcast %75 : vector<16x1xf32> to vector<16x16xf32>
    %77 = arith.subf %73, %76 : vector<16x16xf32>
    %78 = math.exp %77 : vector<16x16xf32>
    %cst_43 = arith.constant dense<0.000000e+00> : vector<16x32xf32>
    %79 = tpu.matmul %78, %69, %cst_43 {dimension_numbers = #tpu.dot_dimension_numbers<[1], [0], [0], [1], [0, 0, 1, 1], [], []>} : vector<16x16xf32>, vector<16x32xf32>, vector<16x32xf32> -> vector<16x32xf32>
    %cst_44 = arith.constant dense<0.000000e+00> : vector<16xf32>
    %80 = vector.multi_reduction <add>, %78, %cst_44 [1] : vector<16x16xf32> to vector<16xf32>
    %81 = vector.shape_cast %80 : vector<16xf32> to vector<16x1xf32>
    %82 = tpu.reciprocal %81 {approx = true} : vector<16x1xf32> -> vector<16x1xf32>
    %83 = vector.broadcast %82 : vector<16x1xf32> to vector<16x32xf32>
    %84 = arith.mulf %79, %83 : vector<16x32xf32>
    %85 = tpu.concatenate %21, %42, %63, %84 in 1 : vector<16x32xf32>, vector<16x32xf32>, vector<16x32xf32>, vector<16x32xf32> -> vector<16x128xf32>
    %c0_45 = arith.constant 0 : index
    %c0_46 = arith.constant 0 : index
    %c0_47 = arith.constant 0 : index
    %86 = vector.load %arg3[%c0_45, %c0_46, %c0_47] : memref<1x16x128xf32, #tpu.memory_space<vmem>>, vector<1x16x128xf32>
    %87 = vector.shape_cast %86 : vector<1x16x128xf32> to vector<16x128xf32>
    %88 = vector.shape_cast %85 : vector<16x128xf32> to vector<1x16x128xf32>
    tpu.vector_store %arg3[%c0_45, %c0_46, %c0_47], %88 {strides = array<i32>} : memref<1x16x128xf32, #tpu.memory_space<vmem>>, vector<1x16x128xf32>,
    return
  }
  func.func @transform_0(%arg0: i32) -> (i32, i32, i32) {
    %c0_i32 = arith.constant 0 : i32
    %c0_i32_0 = arith.constant 0 : i32
    %c0_i32_1 = arith.constant 0 : i32
    return %arg0, %c0_i32, %c0_i32_0 : i32, i32, i32
  }
  func.func @transform_1(%arg0: i32) -> (i32, i32) {
    %c0_i32 = arith.constant 0 : i32
    %c0_i32_0 = arith.constant 0 : i32
    %c0_i32_1 = arith.constant 0 : i32
    return %c0_i32, %c0_i32_0 : i32, i32
  }
  func.func @transform_2(%arg0: i32) -> (i32, i32, i32) {
    %c0_i32 = arith.constant 0 : i32
    %c0_i32_0 = arith.constant 0 : i32
    %c0_i32_1 = arith.constant 0 : i32
    return %arg0, %c0_i32, %c0_i32_0 : i32, i32, i32
  }
}

module attributes {stable_mosaic.version = 11 : i64} {
  func.func @_linear_kernel(%arg0: i32, %arg1: memref<16x128xf32, #tpu.memory_space<vmem>>, %arg2: memref<128x384xf32, #tpu.memory_space<vmem>>, %arg3: memref<1x384xf32, #tpu.memory_space<vmem>>, %arg4: memref<16x384xf32, #tpu.memory_space<vmem>>) attributes {dimension_semantics = [#tpu.dimension_semantics<parallel>], iteration_bounds = array<i64: 2>, scalar_prefetch = 0 : i64, scratch_operands = 0 : i64, tpu.core_type = #tpu.core_type<tc>, window_params = [{transform_indices = @transform_0, window_bounds = array<i64: 16, 128>}, {pipeline_mode = #tpu.pipeline_mode<synchronous>, transform_indices = @transform_1, window_bounds = array<i64: 128, 384>}, {pipeline_mode = #tpu.pipeline_mode<synchronous>, transform_indices = @transform_2, window_bounds = array<i64: 1, 384>}, {transform_indices = @transform_3, window_bounds = array<i64: 16, 384>}]} {
    %c0 = arith.constant 0 : index
    %c0_0 = arith.constant 0 : index
    %0 = vector.load %arg1[%c0, %c0_0] : memref<16x128xf32, #tpu.memory_space<vmem>>, vector<16x128xf32>
    %c0_1 = arith.constant 0 : index
    %c0_2 = arith.constant 0 : index
    %1 = vector.load %arg2[%c0_1, %c0_2] : memref<128x384xf32, #tpu.memory_space<vmem>>, vector<128x384xf32>
    %cst = arith.constant dense<0.000000e+00> : vector<16x384xf32>
    %2 = tpu.matmul %0, %1, %cst {dimension_numbers = #tpu.dot_dimension_numbers<[1], [0], [0], [1], [0, 0, 1, 1], [], []>} : vector<16x128xf32>, vector<128x384xf32>, vector<16x384xf32> -> vector<16x384xf32>
    %c0_3 = arith.constant 0 : index
    %c0_4 = arith.constant 0 : index
    %3 = vector.load %arg3[%c0_3, %c0_4] : memref<1x384xf32, #tpu.memory_space<vmem>>, vector<1x384xf32>
    %4 = vector.broadcast %3 : vector<1x384xf32> to vector<16x384xf32>
    %5 = arith.addf %2, %4 : vector<16x384xf32>
    %c0_5 = arith.constant 0 : index
    %c0_6 = arith.constant 0 : index
    %6 = vector.load %arg4[%c0_5, %c0_6] : memref<16x384xf32, #tpu.memory_space<vmem>>, vector<16x384xf32>
    tpu.vector_store %arg4[%c0_5, %c0_6], %5 {strides = array<i32>} : memref<16x384xf32, #tpu.memory_space<vmem>>, vector<16x384xf32>,
    return
  }
  func.func @transform_0(%arg0: i32) -> (i32, i32) {
    %c0_i32 = arith.constant 0 : i32
    %c0_i32_0 = arith.constant 0 : i32
    return %arg0, %c0_i32 : i32, i32
  }
  func.func @transform_1(%arg0: i32) -> (i32, i32) {
    %c0_i32 = arith.constant 0 : i32
    %c0_i32_0 = arith.constant 0 : i32
    %c0_i32_1 = arith.constant 0 : i32
    return %c0_i32, %c0_i32_0 : i32, i32
  }
  func.func @transform_2(%arg0: i32) -> (i32, i32) {
    %c0_i32 = arith.constant 0 : i32
    %c0_i32_0 = arith.constant 0 : i32
    %c0_i32_1 = arith.constant 0 : i32
    return %c0_i32, %c0_i32_0 : i32, i32
  }
  func.func @transform_3(%arg0: i32) -> (i32, i32) {
    %c0_i32 = arith.constant 0 : i32
    %c0_i32_0 = arith.constant 0 : i32
    return %arg0, %c0_i32 : i32, i32
  }
}

module attributes {stable_mosaic.version = 11 : i64} {
  func.func @_kv_q_proj_kernel(%arg0: i32, %arg1: memref<16x128xf32, #tpu.memory_space<vmem>>, %arg2: memref<16x128xf32, #tpu.memory_space<vmem>>, %arg3: memref<128x256xf32, #tpu.memory_space<vmem>>, %arg4: memref<1x256xf32, #tpu.memory_space<vmem>>, %arg5: memref<128x128xf32, #tpu.memory_space<vmem>>, %arg6: memref<1x128xf32, #tpu.memory_space<vmem>>, %arg7: memref<16x256xf32, #tpu.memory_space<vmem>>, %arg8: memref<16x128xf32, #tpu.memory_space<vmem>>) attributes {dimension_semantics = [#tpu.dimension_semantics<parallel>], iteration_bounds = array<i64: 2>, scalar_prefetch = 0 : i64, scratch_operands = 0 : i64, tpu.core_type = #tpu.core_type<tc>, window_params = [{transform_indices = @transform_0, window_bounds = array<i64: 16, 128>}, {transform_indices = @transform_1, window_bounds = array<i64: 16, 128>}, {pipeline_mode = #tpu.pipeline_mode<synchronous>, transform_indices = @transform_2, window_bounds = array<i64: 128, 256>}, {pipeline_mode = #tpu.pipeline_mode<synchronous>, transform_indices = @transform_3, window_bounds = array<i64: 1, 256>}, {pipeline_mode = #tpu.pipeline_mode<synchronous>, transform_indices = @transform_4, window_bounds = array<i64: 128, 128>}, {pipeline_mode = #tpu.pipeline_mode<synchronous>, transform_indices = @transform_5, window_bounds = array<i64: 1, 128>}, {transform_indices = @transform_6, window_bounds = array<i64: 16, 256>}, {transform_indices = @transform_7, window_bounds = array<i64: 16, 128>}]} {
    %c0 = arith.constant 0 : index
    %c0_0 = arith.constant 0 : index
    %0 = vector.load %arg1[%c0, %c0_0] : memref<16x128xf32, #tpu.memory_space<vmem>>, vector<16x128xf32>
    %c0_1 = arith.constant 0 : index
    %c0_2 = arith.constant 0 : index
    %1 = vector.load %arg3[%c0_1, %c0_2] : memref<128x256xf32, #tpu.memory_space<vmem>>, vector<128x256xf32>
    %cst = arith.constant dense<0.000000e+00> : vector<16x256xf32>
    %2 = tpu.matmul %0, %1, %cst {dimension_numbers = #tpu.dot_dimension_numbers<[1], [0], [0], [1], [0, 0, 1, 1], [], []>} : vector<16x128xf32>, vector<128x256xf32>, vector<16x256xf32> -> vector<16x256xf32>
    %c0_3 = arith.constant 0 : index
    %c0_4 = arith.constant 0 : index
    %3 = vector.load %arg4[%c0_3, %c0_4] : memref<1x256xf32, #tpu.memory_space<vmem>>, vector<1x256xf32>
    %4 = vector.broadcast %3 : vector<1x256xf32> to vector<16x256xf32>
    %5 = arith.addf %2, %4 : vector<16x256xf32>
    %c0_5 = arith.constant 0 : index
    %c0_6 = arith.constant 0 : index
    %6 = vector.load %arg7[%c0_5, %c0_6] : memref<16x256xf32, #tpu.memory_space<vmem>>, vector<16x256xf32>
    tpu.vector_store %arg7[%c0_5, %c0_6], %5 {strides = array<i32>} : memref<16x256xf32, #tpu.memory_space<vmem>>, vector<16x256xf32>,
    %c0_7 = arith.constant 0 : index
    %c0_8 = arith.constant 0 : index
    %7 = vector.load %arg2[%c0_7, %c0_8] : memref<16x128xf32, #tpu.memory_space<vmem>>, vector<16x128xf32>
    %c0_9 = arith.constant 0 : index
    %c0_10 = arith.constant 0 : index
    %8 = vector.load %arg5[%c0_9, %c0_10] : memref<128x128xf32, #tpu.memory_space<vmem>>, vector<128x128xf32>
    %cst_11 = arith.constant dense<0.000000e+00> : vector<16x128xf32>
    %9 = tpu.matmul %7, %8, %cst_11 {dimension_numbers = #tpu.dot_dimension_numbers<[1], [0], [0], [1], [0, 0, 1, 1], [], []>} : vector<16x128xf32>, vector<128x128xf32>, vector<16x128xf32> -> vector<16x128xf32>
    %c0_12 = arith.constant 0 : index
    %c0_13 = arith.constant 0 : index
    %10 = vector.load %arg6[%c0_12, %c0_13] : memref<1x128xf32, #tpu.memory_space<vmem>>, vector<1x128xf32>
    %11 = vector.broadcast %10 : vector<1x128xf32> to vector<16x128xf32>
    %12 = arith.addf %9, %11 : vector<16x128xf32>
    %c0_14 = arith.constant 0 : index
    %c0_15 = arith.constant 0 : index
    %13 = vector.load %arg8[%c0_14, %c0_15] : memref<16x128xf32, #tpu.memory_space<vmem>>, vector<16x128xf32>
    tpu.vector_store %arg8[%c0_14, %c0_15], %12 {strides = array<i32>} : memref<16x128xf32, #tpu.memory_space<vmem>>, vector<16x128xf32>,
    return
  }
  func.func @transform_0(%arg0: i32) -> (i32, i32) {
    %c0_i32 = arith.constant 0 : i32
    %c0_i32_0 = arith.constant 0 : i32
    return %arg0, %c0_i32 : i32, i32
  }
  func.func @transform_1(%arg0: i32) -> (i32, i32) {
    %c0_i32 = arith.constant 0 : i32
    %c0_i32_0 = arith.constant 0 : i32
    return %arg0, %c0_i32 : i32, i32
  }
  func.func @transform_2(%arg0: i32) -> (i32, i32) {
    %c0_i32 = arith.constant 0 : i32
    %c0_i32_0 = arith.constant 0 : i32
    %c0_i32_1 = arith.constant 0 : i32
    return %c0_i32, %c0_i32_0 : i32, i32
  }
  func.func @transform_3(%arg0: i32) -> (i32, i32) {
    %c0_i32 = arith.constant 0 : i32
    %c0_i32_0 = arith.constant 0 : i32
    %c0_i32_1 = arith.constant 0 : i32
    return %c0_i32, %c0_i32_0 : i32, i32
  }
  func.func @transform_4(%arg0: i32) -> (i32, i32) {
    %c0_i32 = arith.constant 0 : i32
    %c0_i32_0 = arith.constant 0 : i32
    %c0_i32_1 = arith.constant 0 : i32
    return %c0_i32, %c0_i32_0 : i32, i32
  }
  func.func @transform_5(%arg0: i32) -> (i32, i32) {
    %c0_i32 = arith.constant 0 : i32
    %c0_i32_0 = arith.constant 0 : i32
    %c0_i32_1 = arith.constant 0 : i32
    return %c0_i32, %c0_i32_0 : i32, i32
  }
  func.func @transform_6(%arg0: i32) -> (i32, i32) {
    %c0_i32 = arith.constant 0 : i32
    %c0_i32_0 = arith.constant 0 : i32
    return %arg0, %c0_i32 : i32, i32
  }
  func.func @transform_7(%arg0: i32) -> (i32, i32) {
    %c0_i32 = arith.constant 0 : i32
    %c0_i32_0 = arith.constant 0 : i32
    return %arg0, %c0_i32 : i32, i32
  }
}

module attributes {stable_mosaic.version = 11 : i64} {
  func.func @_proj_add_ln_kernel(%arg0: i32, %arg1: memref<16x128xf32, #tpu.memory_space<vmem>>, %arg2: memref<128x128xf32, #tpu.memory_space<vmem>>, %arg3: memref<1x128xf32, #tpu.memory_space<vmem>>, %arg4: memref<16x128xf32, #tpu.memory_space<vmem>>, %arg5: memref<1x128xf32, #tpu.memory_space<vmem>>, %arg6: memref<1x128xf32, #tpu.memory_space<vmem>>, %arg7: memref<16x128xf32, #tpu.memory_space<vmem>>) attributes {dimension_semantics = [#tpu.dimension_semantics<parallel>], iteration_bounds = array<i64: 2>, scalar_prefetch = 0 : i64, scratch_operands = 0 : i64, tpu.core_type = #tpu.core_type<tc>, window_params = [{transform_indices = @transform_0, window_bounds = array<i64: 16, 128>}, {pipeline_mode = #tpu.pipeline_mode<synchronous>, transform_indices = @transform_1, window_bounds = array<i64: 128, 128>}, {pipeline_mode = #tpu.pipeline_mode<synchronous>, transform_indices = @transform_2, window_bounds = array<i64: 1, 128>}, {transform_indices = @transform_3, window_bounds = array<i64: 16, 128>}, {pipeline_mode = #tpu.pipeline_mode<synchronous>, transform_indices = @transform_4, window_bounds = array<i64: 1, 128>}, {pipeline_mode = #tpu.pipeline_mode<synchronous>, transform_indices = @transform_5, window_bounds = array<i64: 1, 128>}, {transform_indices = @transform_6, window_bounds = array<i64: 16, 128>}]} {
    %c0 = arith.constant 0 : index
    %c0_0 = arith.constant 0 : index
    %0 = vector.load %arg1[%c0, %c0_0] : memref<16x128xf32, #tpu.memory_space<vmem>>, vector<16x128xf32>
    %c0_1 = arith.constant 0 : index
    %c0_2 = arith.constant 0 : index
    %1 = vector.load %arg2[%c0_1, %c0_2] : memref<128x128xf32, #tpu.memory_space<vmem>>, vector<128x128xf32>
    %cst = arith.constant dense<0.000000e+00> : vector<16x128xf32>
    %2 = tpu.matmul %0, %1, %cst {dimension_numbers = #tpu.dot_dimension_numbers<[1], [0], [0], [1], [0, 0, 1, 1], [], []>} : vector<16x128xf32>, vector<128x128xf32>, vector<16x128xf32> -> vector<16x128xf32>
    %c0_3 = arith.constant 0 : index
    %c0_4 = arith.constant 0 : index
    %3 = vector.load %arg3[%c0_3, %c0_4] : memref<1x128xf32, #tpu.memory_space<vmem>>, vector<1x128xf32>
    %4 = vector.broadcast %3 : vector<1x128xf32> to vector<16x128xf32>
    %5 = arith.addf %2, %4 : vector<16x128xf32>
    %c0_5 = arith.constant 0 : index
    %c0_6 = arith.constant 0 : index
    %6 = vector.load %arg4[%c0_5, %c0_6] : memref<16x128xf32, #tpu.memory_space<vmem>>, vector<16x128xf32>
    %7 = arith.addf %5, %6 : vector<16x128xf32>
    %c0_7 = arith.constant 0 : index
    %c0_8 = arith.constant 0 : index
    %8 = vector.load %arg5[%c0_7, %c0_8] : memref<1x128xf32, #tpu.memory_space<vmem>>, vector<1x128xf32>
    %c0_9 = arith.constant 0 : index
    %c0_10 = arith.constant 0 : index
    %9 = vector.load %arg6[%c0_9, %c0_10] : memref<1x128xf32, #tpu.memory_space<vmem>>, vector<1x128xf32>
    %cst_11 = arith.constant dense<0.000000e+00> : vector<16xf32>
    %10 = vector.multi_reduction <add>, %7, %cst_11 [1] : vector<16x128xf32> to vector<16xf32>
    %11 = vector.shape_cast %10 : vector<16xf32> to vector<16x1xf32>
    %cst_12 = arith.constant 1.280000e+02 : f32
    %12 = vector.broadcast %cst_12 : f32 to vector<16x1xf32>
    %13 = arith.divf %11, %12 : vector<16x1xf32>
    %14 = vector.broadcast %13 : vector<16x1xf32> to vector<16x128xf32>
    %15 = arith.subf %7, %14 : vector<16x128xf32>
    %16 = arith.mulf %15, %15 : vector<16x128xf32>
    %cst_13 = arith.constant dense<0.000000e+00> : vector<16xf32>
    %17 = vector.multi_reduction <add>, %16, %cst_13 [1] : vector<16x128xf32> to vector<16xf32>
    %18 = vector.shape_cast %17 : vector<16xf32> to vector<16x1xf32>
    %cst_14 = arith.constant 1.280000e+02 : f32
    %19 = vector.broadcast %cst_14 : f32 to vector<16x1xf32>
    %20 = arith.divf %18, %19 : vector<16x1xf32>
    %cst_15 = arith.constant 9.99999974E-6 : f32
    %21 = vector.broadcast %cst_15 : f32 to vector<16x1xf32>
    %22 = arith.addf %20, %21 : vector<16x1xf32>
    %23 = math.rsqrt %22 : vector<16x1xf32>
    %24 = vector.broadcast %23 : vector<16x1xf32> to vector<16x128xf32>
    %25 = arith.mulf %15, %24 : vector<16x128xf32>
    %26 = vector.broadcast %8 : vector<1x128xf32> to vector<16x128xf32>
    %27 = arith.mulf %25, %26 : vector<16x128xf32>
    %28 = vector.broadcast %9 : vector<1x128xf32> to vector<16x128xf32>
    %29 = arith.addf %27, %28 : vector<16x128xf32>
    %c0_16 = arith.constant 0 : index
    %c0_17 = arith.constant 0 : index
    %30 = vector.load %arg7[%c0_16, %c0_17] : memref<16x128xf32, #tpu.memory_space<vmem>>, vector<16x128xf32>
    tpu.vector_store %arg7[%c0_16, %c0_17], %29 {strides = array<i32>} : memref<16x128xf32, #tpu.memory_space<vmem>>, vector<16x128xf32>,
    return
  }
  func.func @transform_0(%arg0: i32) -> (i32, i32) {
    %c0_i32 = arith.constant 0 : i32
    %c0_i32_0 = arith.constant 0 : i32
    return %arg0, %c0_i32 : i32, i32
  }
  func.func @transform_1(%arg0: i32) -> (i32, i32) {
    %c0_i32 = arith.constant 0 : i32
    %c0_i32_0 = arith.constant 0 : i32
    %c0_i32_1 = arith.constant 0 : i32
    return %c0_i32, %c0_i32_0 : i32, i32
  }
  func.func @transform_2(%arg0: i32) -> (i32, i32) {
    %c0_i32 = arith.constant 0 : i32
    %c0_i32_0 = arith.constant 0 : i32
    %c0_i32_1 = arith.constant 0 : i32
    return %c0_i32, %c0_i32_0 : i32, i32
  }
  func.func @transform_3(%arg0: i32) -> (i32, i32) {
    %c0_i32 = arith.constant 0 : i32
    %c0_i32_0 = arith.constant 0 : i32
    return %arg0, %c0_i32 : i32, i32
  }
  func.func @transform_4(%arg0: i32) -> (i32, i32) {
    %c0_i32 = arith.constant 0 : i32
    %c0_i32_0 = arith.constant 0 : i32
    %c0_i32_1 = arith.constant 0 : i32
    return %c0_i32, %c0_i32_0 : i32, i32
  }
  func.func @transform_5(%arg0: i32) -> (i32, i32) {
    %c0_i32 = arith.constant 0 : i32
    %c0_i32_0 = arith.constant 0 : i32
    %c0_i32_1 = arith.constant 0 : i32
    return %c0_i32, %c0_i32_0 : i32, i32
  }
  func.func @transform_6(%arg0: i32) -> (i32, i32) {
    %c0_i32 = arith.constant 0 : i32
    %c0_i32_0 = arith.constant 0 : i32
    return %arg0, %c0_i32 : i32, i32
  }
}

module attributes {stable_mosaic.version = 11 : i64} {
  func.func @_ffn_ln_kernel(%arg0: i32, %arg1: i32, %arg2: memref<16x128xf32, #tpu.memory_space<vmem>>, %arg3: memref<128x256xf32, #tpu.memory_space<vmem>>, %arg4: memref<1x256xf32, #tpu.memory_space<vmem>>, %arg5: memref<256x128xf32, #tpu.memory_space<vmem>>, %arg6: memref<1x128xf32, #tpu.memory_space<vmem>>, %arg7: memref<16x128xf32, #tpu.memory_space<vmem>>, %arg8: memref<1x128xf32, #tpu.memory_space<vmem>>, %arg9: memref<1x128xf32, #tpu.memory_space<vmem>>, %arg10: memref<16x128xf32, #tpu.memory_space<vmem>>, %arg11: memref<16x128xf32, #tpu.memory_space<vmem>>) attributes {dimension_semantics = [#tpu.dimension_semantics<parallel>, #tpu.dimension_semantics<arbitrary>], iteration_bounds = array<i64: 2, 1>, scalar_prefetch = 0 : i64, scratch_operands = 1 : i64, tpu.core_type = #tpu.core_type<tc>, window_params = [{transform_indices = @transform_0, window_bounds = array<i64: 16, 128>}, {transform_indices = @transform_1, window_bounds = array<i64: 128, 256>}, {transform_indices = @transform_2, window_bounds = array<i64: 1, 256>}, {transform_indices = @transform_3, window_bounds = array<i64: 256, 128>}, {pipeline_mode = #tpu.pipeline_mode<synchronous>, transform_indices = @transform_4, window_bounds = array<i64: 1, 128>}, {transform_indices = @transform_5, window_bounds = array<i64: 16, 128>}, {pipeline_mode = #tpu.pipeline_mode<synchronous>, transform_indices = @transform_6, window_bounds = array<i64: 1, 128>}, {pipeline_mode = #tpu.pipeline_mode<synchronous>, transform_indices = @transform_7, window_bounds = array<i64: 1, 128>}, {transform_indices = @transform_8, window_bounds = array<i64: 16, 128>}]} {
    %c0_i32 = arith.constant 0 : i32
    %0 = arith.cmpi eq, %arg1, %c0_i32 : i32
    %1 = arith.extui %0 : i1 to i32
    %c0_i32_0 = arith.constant 0 : i32
    %2 = arith.cmpi ne, %1, %c0_i32_0 : i32
    scf.if %2 {
      %cst_16 = arith.constant 0.000000e+00 : f32
      %19 = vector.broadcast %cst_16 : f32 to vector<16x128xf32>
      %c0_17 = arith.constant 0 : index
      %c0_18 = arith.constant 0 : index
      %20 = vector.load %arg11[%c0_17, %c0_18] : memref<16x128xf32, #tpu.memory_space<vmem>>, vector<16x128xf32>
      tpu.vector_store %arg11[%c0_17, %c0_18], %19 {strides = array<i32>} : memref<16x128xf32, #tpu.memory_space<vmem>>, vector<16x128xf32>,
    } else {
    }
    %c0 = arith.constant 0 : index
    %c0_1 = arith.constant 0 : index
    %3 = vector.load %arg2[%c0, %c0_1] : memref<16x128xf32, #tpu.memory_space<vmem>>, vector<16x128xf32>
    %c0_2 = arith.constant 0 : index
    %c0_3 = arith.constant 0 : index
    %4 = vector.load %arg3[%c0_2, %c0_3] : memref<128x256xf32, #tpu.memory_space<vmem>>, vector<128x256xf32>
    %cst = arith.constant dense<0.000000e+00> : vector<16x256xf32>
    %5 = tpu.matmul %3, %4, %cst {dimension_numbers = #tpu.dot_dimension_numbers<[1], [0], [0], [1], [0, 0, 1, 1], [], []>} : vector<16x128xf32>, vector<128x256xf32>, vector<16x256xf32> -> vector<16x256xf32>
    %c0_4 = arith.constant 0 : index
    %c0_5 = arith.constant 0 : index
    %6 = vector.load %arg4[%c0_4, %c0_5] : memref<1x256xf32, #tpu.memory_space<vmem>>, vector<1x256xf32>
    %7 = vector.broadcast %6 : vector<1x256xf32> to vector<16x256xf32>
    %8 = arith.addf %5, %7 : vector<16x256xf32>
    %cst_6 = arith.constant 0.000000e+00 : f32
    %9 = vector.broadcast %cst_6 : f32 to vector<16x256xf32>
    %10 = arith.maximumf %8, %9 : vector<16x256xf32>
    %c0_7 = arith.constant 0 : index
    %c0_8 = arith.constant 0 : index
    %11 = vector.load %arg11[%c0_7, %c0_8] : memref<16x128xf32, #tpu.memory_space<vmem>>, vector<16x128xf32>
    %c0_9 = arith.constant 0 : index
    %c0_10 = arith.constant 0 : index
    %12 = vector.load %arg5[%c0_9, %c0_10] : memref<256x128xf32, #tpu.memory_space<vmem>>, vector<256x128xf32>
    %cst_11 = arith.constant dense<0.000000e+00> : vector<16x128xf32>
    %13 = tpu.matmul %10, %12, %cst_11 {dimension_numbers = #tpu.dot_dimension_numbers<[1], [0], [0], [1], [0, 0, 1, 1], [], []>} : vector<16x256xf32>, vector<256x128xf32>, vector<16x128xf32> -> vector<16x128xf32>
    %14 = arith.addf %11, %13 : vector<16x128xf32>
    %c0_12 = arith.constant 0 : index
    %c0_13 = arith.constant 0 : index
    %15 = vector.load %arg11[%c0_12, %c0_13] : memref<16x128xf32, #tpu.memory_space<vmem>>, vector<16x128xf32>
    tpu.vector_store %arg11[%c0_12, %c0_13], %14 {strides = array<i32>} : memref<16x128xf32, #tpu.memory_space<vmem>>, vector<16x128xf32>,
    %c0_i32_14 = arith.constant 0 : i32
    %16 = arith.cmpi eq, %arg1, %c0_i32_14 : i32
    %17 = arith.extui %16 : i1 to i32
    %c0_i32_15 = arith.constant 0 : i32
    %18 = arith.cmpi ne, %17, %c0_i32_15 : i32
    scf.if %18 {
      %c0_16 = arith.constant 0 : index
      %c0_17 = arith.constant 0 : index
      %19 = vector.load %arg11[%c0_16, %c0_17] : memref<16x128xf32, #tpu.memory_space<vmem>>, vector<16x128xf32>
      %c0_18 = arith.constant 0 : index
      %c0_19 = arith.constant 0 : index
      %20 = vector.load %arg6[%c0_18, %c0_19] : memref<1x128xf32, #tpu.memory_space<vmem>>, vector<1x128xf32>
      %21 = vector.broadcast %20 : vector<1x128xf32> to vector<16x128xf32>
      %22 = arith.addf %19, %21 : vector<16x128xf32>
      %c0_20 = arith.constant 0 : index
      %c0_21 = arith.constant 0 : index
      %23 = vector.load %arg7[%c0_20, %c0_21] : memref<16x128xf32, #tpu.memory_space<vmem>>, vector<16x128xf32>
      %24 = arith.addf %22, %23 : vector<16x128xf32>
      %c0_22 = arith.constant 0 : index
      %c0_23 = arith.constant 0 : index
      %25 = vector.load %arg8[%c0_22, %c0_23] : memref<1x128xf32, #tpu.memory_space<vmem>>, vector<1x128xf32>
      %c0_24 = arith.constant 0 : index
      %c0_25 = arith.constant 0 : index
      %26 = vector.load %arg9[%c0_24, %c0_25] : memref<1x128xf32, #tpu.memory_space<vmem>>, vector<1x128xf32>
      %cst_26 = arith.constant dense<0.000000e+00> : vector<16xf32>
      %27 = vector.multi_reduction <add>, %24, %cst_26 [1] : vector<16x128xf32> to vector<16xf32>
      %28 = vector.shape_cast %27 : vector<16xf32> to vector<16x1xf32>
      %cst_27 = arith.constant 1.280000e+02 : f32
      %29 = vector.broadcast %cst_27 : f32 to vector<16x1xf32>
      %30 = arith.divf %28, %29 : vector<16x1xf32>
      %31 = vector.broadcast %30 : vector<16x1xf32> to vector<16x128xf32>
      %32 = arith.subf %24, %31 : vector<16x128xf32>
      %33 = arith.mulf %32, %32 : vector<16x128xf32>
      %cst_28 = arith.constant dense<0.000000e+00> : vector<16xf32>
      %34 = vector.multi_reduction <add>, %33, %cst_28 [1] : vector<16x128xf32> to vector<16xf32>
      %35 = vector.shape_cast %34 : vector<16xf32> to vector<16x1xf32>
      %cst_29 = arith.constant 1.280000e+02 : f32
      %36 = vector.broadcast %cst_29 : f32 to vector<16x1xf32>
      %37 = arith.divf %35, %36 : vector<16x1xf32>
      %cst_30 = arith.constant 9.99999974E-6 : f32
      %38 = vector.broadcast %cst_30 : f32 to vector<16x1xf32>
      %39 = arith.addf %37, %38 : vector<16x1xf32>
      %40 = math.rsqrt %39 : vector<16x1xf32>
      %41 = vector.broadcast %40 : vector<16x1xf32> to vector<16x128xf32>
      %42 = arith.mulf %32, %41 : vector<16x128xf32>
      %43 = vector.broadcast %25 : vector<1x128xf32> to vector<16x128xf32>
      %44 = arith.mulf %42, %43 : vector<16x128xf32>
      %45 = vector.broadcast %26 : vector<1x128xf32> to vector<16x128xf32>
      %46 = arith.addf %44, %45 : vector<16x128xf32>
      %c0_31 = arith.constant 0 : index
      %c0_32 = arith.constant 0 : index
      %47 = vector.load %arg10[%c0_31, %c0_32] : memref<16x128xf32, #tpu.memory_space<vmem>>, vector<16x128xf32>
      tpu.vector_store %arg10[%c0_31, %c0_32], %46 {strides = array<i32>} : memref<16x128xf32, #tpu.memory_space<vmem>>, vector<16x128xf32>,
    } else {
    }
    return
  }
  func.func @transform_0(%arg0: i32, %arg1: i32) -> (i32, i32) {
    %c0_i32 = arith.constant 0 : i32
    %c0_i32_0 = arith.constant 0 : i32
    return %arg0, %c0_i32 : i32, i32
  }
  func.func @transform_1(%arg0: i32, %arg1: i32) -> (i32, i32) {
    %c0_i32 = arith.constant 0 : i32
    %c0_i32_0 = arith.constant 0 : i32
    return %c0_i32, %arg1 : i32, i32
  }
  func.func @transform_2(%arg0: i32, %arg1: i32) -> (i32, i32) {
    %c0_i32 = arith.constant 0 : i32
    %c0_i32_0 = arith.constant 0 : i32
    return %c0_i32, %arg1 : i32, i32
  }
  func.func @transform_3(%arg0: i32, %arg1: i32) -> (i32, i32) {
    %c0_i32 = arith.constant 0 : i32
    %c0_i32_0 = arith.constant 0 : i32
    return %arg1, %c0_i32 : i32, i32
  }
  func.func @transform_4(%arg0: i32, %arg1: i32) -> (i32, i32) {
    %c0_i32 = arith.constant 0 : i32
    %c0_i32_0 = arith.constant 0 : i32
    %c0_i32_1 = arith.constant 0 : i32
    return %c0_i32, %c0_i32_0 : i32, i32
  }
  func.func @transform_5(%arg0: i32, %arg1: i32) -> (i32, i32) {
    %c0_i32 = arith.constant 0 : i32
    %c0_i32_0 = arith.constant 0 : i32
    return %arg0, %c0_i32 : i32, i32
  }
  func.func @transform_6(%arg0: i32, %arg1: i32) -> (i32, i32) {
    %c0_i32 = arith.constant 0 : i32
    %c0_i32_0 = arith.constant 0 : i32
    %c0_i32_1 = arith.constant 0 : i32
    return %c0_i32, %c0_i32_0 : i32, i32
  }
  func.func @transform_7(%arg0: i32, %arg1: i32) -> (i32, i32) {
    %c0_i32 = arith.constant 0 : i32
    %c0_i32_0 = arith.constant 0 : i32
    %c0_i32_1 = arith.constant 0 : i32
    return %c0_i32, %c0_i32_0 : i32, i32
  }
  func.func @transform_8(%arg0: i32, %arg1: i32) -> (i32, i32) {
    %c0_i32 = arith.constant 0 : i32
    %c0_i32_0 = arith.constant 0 : i32
    return %arg0, %c0_i32 : i32, i32
  }
}

module attributes {stable_mosaic.version = 11 : i64} {
  func.func @_cross_attention_kernel(%arg0: i32, %arg1: memref<1x16x128xf32, #tpu.memory_space<vmem>>, %arg2: memref<1x16x256xf32, #tpu.memory_space<vmem>>, %arg3: memref<16x16xf32, #tpu.memory_space<vmem>>, %arg4: memref<1x16x128xf32, #tpu.memory_space<vmem>>) attributes {dimension_semantics = [#tpu.dimension_semantics<parallel>], iteration_bounds = array<i64: 2>, scalar_prefetch = 0 : i64, scratch_operands = 0 : i64, tpu.core_type = #tpu.core_type<tc>, window_params = [{transform_indices = @transform_0, window_bounds = array<i64: 1, 16, 128>}, {transform_indices = @transform_1, window_bounds = array<i64: 1, 16, 256>}, {pipeline_mode = #tpu.pipeline_mode<synchronous>, transform_indices = @transform_2, window_bounds = array<i64: 16, 16>}, {transform_indices = @transform_3, window_bounds = array<i64: 1, 16, 128>}]} {
    %c0 = arith.constant 0 : index
    %c0_0 = arith.constant 0 : index
    %0 = vector.load %arg3[%c0, %c0_0] : memref<16x16xf32, #tpu.memory_space<vmem>>, vector<16x16xf32>
    %c0_1 = arith.constant 0 : index
    %c0_2 = arith.constant 0 : index
    %c0_3 = arith.constant 0 : index
    %1 = vector.load %arg1[%c0_1, %c0_2, %c0_3] : memref<1x16x128xf32, #tpu.memory_space<vmem>>, vector<1x16x32xf32>
    %2 = vector.shape_cast %1 : vector<1x16x32xf32> to vector<16x32xf32>
    %c0_4 = arith.constant 0 : index
    %c0_5 = arith.constant 0 : index
    %c0_6 = arith.constant 0 : index
    %3 = vector.load %arg2[%c0_4, %c0_5, %c0_6] : memref<1x16x256xf32, #tpu.memory_space<vmem>>, vector<1x16x32xf32>
    %4 = vector.shape_cast %3 : vector<1x16x32xf32> to vector<16x32xf32>
    %c0_7 = arith.constant 0 : index
    %c0_8 = arith.constant 0 : index
    %c32 = arith.constant 32 : index
    %5 = vector.load %arg2[%c0_7, %c0_8, %c32] : memref<1x16x256xf32, #tpu.memory_space<vmem>>, vector<1x16x32xf32>
    %6 = vector.shape_cast %5 : vector<1x16x32xf32> to vector<16x32xf32>
    %cst = arith.constant dense<0.000000e+00> : vector<16x16xf32>
    %7 = tpu.matmul %2, %4, %cst {dimension_numbers = #tpu.dot_dimension_numbers<[1], [1], [0], [0], [0, 0, 1, 0], [], []>} : vector<16x32xf32>, vector<16x32xf32>, vector<16x16xf32> -> vector<16x16xf32>
    %cst_9 = arith.constant 0.176776692 : f32
    %8 = vector.broadcast %cst_9 : f32 to vector<16x16xf32>
    %9 = arith.mulf %7, %8 : vector<16x16xf32>
    %10 = arith.addf %9, %0 : vector<16x16xf32>
    %cst_10 = arith.constant dense<0xFF800000> : vector<16xf32>
    %11 = vector.multi_reduction <maximumf>, %10, %cst_10 [1] : vector<16x16xf32> to vector<16xf32>
    %12 = vector.shape_cast %11 : vector<16xf32> to vector<16x1xf32>
    %13 = vector.broadcast %12 : vector<16x1xf32> to vector<16x16xf32>
    %14 = arith.subf %10, %13 : vector<16x16xf32>
    %15 = math.exp %14 : vector<16x16xf32>
    %cst_11 = arith.constant dense<0.000000e+00> : vector<16x32xf32>
    %16 = tpu.matmul %15, %6, %cst_11 {dimension_numbers = #tpu.dot_dimension_numbers<[1], [0], [0], [1], [0, 0, 1, 1], [], []>} : vector<16x16xf32>, vector<16x32xf32>, vector<16x32xf32> -> vector<16x32xf32>
    %cst_12 = arith.constant dense<0.000000e+00> : vector<16xf32>
    %17 = vector.multi_reduction <add>, %15, %cst_12 [1] : vector<16x16xf32> to vector<16xf32>
    %18 = vector.shape_cast %17 : vector<16xf32> to vector<16x1xf32>
    %19 = tpu.reciprocal %18 {approx = true} : vector<16x1xf32> -> vector<16x1xf32>
    %20 = vector.broadcast %19 : vector<16x1xf32> to vector<16x32xf32>
    %21 = arith.mulf %16, %20 : vector<16x32xf32>
    %c0_13 = arith.constant 0 : index
    %c0_14 = arith.constant 0 : index
    %c32_15 = arith.constant 32 : index
    %22 = vector.load %arg1[%c0_13, %c0_14, %c32_15] : memref<1x16x128xf32, #tpu.memory_space<vmem>>, vector<1x16x32xf32>
    %23 = vector.shape_cast %22 : vector<1x16x32xf32> to vector<16x32xf32>
    %c0_16 = arith.constant 0 : index
    %c0_17 = arith.constant 0 : index
    %c64 = arith.constant 64 : index
    %24 = vector.load %arg2[%c0_16, %c0_17, %c64] : memref<1x16x256xf32, #tpu.memory_space<vmem>>, vector<1x16x32xf32>
    %25 = vector.shape_cast %24 : vector<1x16x32xf32> to vector<16x32xf32>
    %c0_18 = arith.constant 0 : index
    %c0_19 = arith.constant 0 : index
    %c96 = arith.constant 96 : index
    %26 = vector.load %arg2[%c0_18, %c0_19, %c96] : memref<1x16x256xf32, #tpu.memory_space<vmem>>, vector<1x16x32xf32>
    %27 = vector.shape_cast %26 : vector<1x16x32xf32> to vector<16x32xf32>
    %cst_20 = arith.constant dense<0.000000e+00> : vector<16x16xf32>
    %28 = tpu.matmul %23, %25, %cst_20 {dimension_numbers = #tpu.dot_dimension_numbers<[1], [1], [0], [0], [0, 0, 1, 0], [], []>} : vector<16x32xf32>, vector<16x32xf32>, vector<16x16xf32> -> vector<16x16xf32>
    %cst_21 = arith.constant 0.176776692 : f32
    %29 = vector.broadcast %cst_21 : f32 to vector<16x16xf32>
    %30 = arith.mulf %28, %29 : vector<16x16xf32>
    %31 = arith.addf %30, %0 : vector<16x16xf32>
    %cst_22 = arith.constant dense<0xFF800000> : vector<16xf32>
    %32 = vector.multi_reduction <maximumf>, %31, %cst_22 [1] : vector<16x16xf32> to vector<16xf32>
    %33 = vector.shape_cast %32 : vector<16xf32> to vector<16x1xf32>
    %34 = vector.broadcast %33 : vector<16x1xf32> to vector<16x16xf32>
    %35 = arith.subf %31, %34 : vector<16x16xf32>
    %36 = math.exp %35 : vector<16x16xf32>
    %cst_23 = arith.constant dense<0.000000e+00> : vector<16x32xf32>
    %37 = tpu.matmul %36, %27, %cst_23 {dimension_numbers = #tpu.dot_dimension_numbers<[1], [0], [0], [1], [0, 0, 1, 1], [], []>} : vector<16x16xf32>, vector<16x32xf32>, vector<16x32xf32> -> vector<16x32xf32>
    %cst_24 = arith.constant dense<0.000000e+00> : vector<16xf32>
    %38 = vector.multi_reduction <add>, %36, %cst_24 [1] : vector<16x16xf32> to vector<16xf32>
    %39 = vector.shape_cast %38 : vector<16xf32> to vector<16x1xf32>
    %40 = tpu.reciprocal %39 {approx = true} : vector<16x1xf32> -> vector<16x1xf32>
    %41 = vector.broadcast %40 : vector<16x1xf32> to vector<16x32xf32>
    %42 = arith.mulf %37, %41 : vector<16x32xf32>
    %c0_25 = arith.constant 0 : index
    %c0_26 = arith.constant 0 : index
    %c64_27 = arith.constant 64 : index
    %43 = vector.load %arg1[%c0_25, %c0_26, %c64_27] : memref<1x16x128xf32, #tpu.memory_space<vmem>>, vector<1x16x32xf32>
    %44 = vector.shape_cast %43 : vector<1x16x32xf32> to vector<16x32xf32>
    %c0_28 = arith.constant 0 : index
    %c0_29 = arith.constant 0 : index
    %c128 = arith.constant 128 : index
    %45 = vector.load %arg2[%c0_28, %c0_29, %c128] : memref<1x16x256xf32, #tpu.memory_space<vmem>>, vector<1x16x32xf32>
    %46 = vector.shape_cast %45 : vector<1x16x32xf32> to vector<16x32xf32>
    %c0_30 = arith.constant 0 : index
    %c0_31 = arith.constant 0 : index
    %c160 = arith.constant 160 : index
    %47 = vector.load %arg2[%c0_30, %c0_31, %c160] : memref<1x16x256xf32, #tpu.memory_space<vmem>>, vector<1x16x32xf32>
    %48 = vector.shape_cast %47 : vector<1x16x32xf32> to vector<16x32xf32>
    %cst_32 = arith.constant dense<0.000000e+00> : vector<16x16xf32>
    %49 = tpu.matmul %44, %46, %cst_32 {dimension_numbers = #tpu.dot_dimension_numbers<[1], [1], [0], [0], [0, 0, 1, 0], [], []>} : vector<16x32xf32>, vector<16x32xf32>, vector<16x16xf32> -> vector<16x16xf32>
    %cst_33 = arith.constant 0.176776692 : f32
    %50 = vector.broadcast %cst_33 : f32 to vector<16x16xf32>
    %51 = arith.mulf %49, %50 : vector<16x16xf32>
    %52 = arith.addf %51, %0 : vector<16x16xf32>
    %cst_34 = arith.constant dense<0xFF800000> : vector<16xf32>
    %53 = vector.multi_reduction <maximumf>, %52, %cst_34 [1] : vector<16x16xf32> to vector<16xf32>
    %54 = vector.shape_cast %53 : vector<16xf32> to vector<16x1xf32>
    %55 = vector.broadcast %54 : vector<16x1xf32> to vector<16x16xf32>
    %56 = arith.subf %52, %55 : vector<16x16xf32>
    %57 = math.exp %56 : vector<16x16xf32>
    %cst_35 = arith.constant dense<0.000000e+00> : vector<16x32xf32>
    %58 = tpu.matmul %57, %48, %cst_35 {dimension_numbers = #tpu.dot_dimension_numbers<[1], [0], [0], [1], [0, 0, 1, 1], [], []>} : vector<16x16xf32>, vector<16x32xf32>, vector<16x32xf32> -> vector<16x32xf32>
    %cst_36 = arith.constant dense<0.000000e+00> : vector<16xf32>
    %59 = vector.multi_reduction <add>, %57, %cst_36 [1] : vector<16x16xf32> to vector<16xf32>
    %60 = vector.shape_cast %59 : vector<16xf32> to vector<16x1xf32>
    %61 = tpu.reciprocal %60 {approx = true} : vector<16x1xf32> -> vector<16x1xf32>
    %62 = vector.broadcast %61 : vector<16x1xf32> to vector<16x32xf32>
    %63 = arith.mulf %58, %62 : vector<16x32xf32>
    %c0_37 = arith.constant 0 : index
    %c0_38 = arith.constant 0 : index
    %c96_39 = arith.constant 96 : index
    %64 = vector.load %arg1[%c0_37, %c0_38, %c96_39] : memref<1x16x128xf32, #tpu.memory_space<vmem>>, vector<1x16x32xf32>
    %65 = vector.shape_cast %64 : vector<1x16x32xf32> to vector<16x32xf32>
    %c0_40 = arith.constant 0 : index
    %c0_41 = arith.constant 0 : index
    %c192 = arith.constant 192 : index
    %66 = vector.load %arg2[%c0_40, %c0_41, %c192] : memref<1x16x256xf32, #tpu.memory_space<vmem>>, vector<1x16x32xf32>
    %67 = vector.shape_cast %66 : vector<1x16x32xf32> to vector<16x32xf32>
    %c0_42 = arith.constant 0 : index
    %c0_43 = arith.constant 0 : index
    %c224 = arith.constant 224 : index
    %68 = vector.load %arg2[%c0_42, %c0_43, %c224] : memref<1x16x256xf32, #tpu.memory_space<vmem>>, vector<1x16x32xf32>
    %69 = vector.shape_cast %68 : vector<1x16x32xf32> to vector<16x32xf32>
    %cst_44 = arith.constant dense<0.000000e+00> : vector<16x16xf32>
    %70 = tpu.matmul %65, %67, %cst_44 {dimension_numbers = #tpu.dot_dimension_numbers<[1], [1], [0], [0], [0, 0, 1, 0], [], []>} : vector<16x32xf32>, vector<16x32xf32>, vector<16x16xf32> -> vector<16x16xf32>
    %cst_45 = arith.constant 0.176776692 : f32
    %71 = vector.broadcast %cst_45 : f32 to vector<16x16xf32>
    %72 = arith.mulf %70, %71 : vector<16x16xf32>
    %73 = arith.addf %72, %0 : vector<16x16xf32>
    %cst_46 = arith.constant dense<0xFF800000> : vector<16xf32>
    %74 = vector.multi_reduction <maximumf>, %73, %cst_46 [1] : vector<16x16xf32> to vector<16xf32>
    %75 = vector.shape_cast %74 : vector<16xf32> to vector<16x1xf32>
    %76 = vector.broadcast %75 : vector<16x1xf32> to vector<16x16xf32>
    %77 = arith.subf %73, %76 : vector<16x16xf32>
    %78 = math.exp %77 : vector<16x16xf32>
    %cst_47 = arith.constant dense<0.000000e+00> : vector<16x32xf32>
    %79 = tpu.matmul %78, %69, %cst_47 {dimension_numbers = #tpu.dot_dimension_numbers<[1], [0], [0], [1], [0, 0, 1, 1], [], []>} : vector<16x16xf32>, vector<16x32xf32>, vector<16x32xf32> -> vector<16x32xf32>
    %cst_48 = arith.constant dense<0.000000e+00> : vector<16xf32>
    %80 = vector.multi_reduction <add>, %78, %cst_48 [1] : vector<16x16xf32> to vector<16xf32>
    %81 = vector.shape_cast %80 : vector<16xf32> to vector<16x1xf32>
    %82 = tpu.reciprocal %81 {approx = true} : vector<16x1xf32> -> vector<16x1xf32>
    %83 = vector.broadcast %82 : vector<16x1xf32> to vector<16x32xf32>
    %84 = arith.mulf %79, %83 : vector<16x32xf32>
    %85 = tpu.concatenate %21, %42, %63, %84 in 1 : vector<16x32xf32>, vector<16x32xf32>, vector<16x32xf32>, vector<16x32xf32> -> vector<16x128xf32>
    %c0_49 = arith.constant 0 : index
    %c0_50 = arith.constant 0 : index
    %c0_51 = arith.constant 0 : index
    %86 = vector.load %arg4[%c0_49, %c0_50, %c0_51] : memref<1x16x128xf32, #tpu.memory_space<vmem>>, vector<1x16x128xf32>
    %87 = vector.shape_cast %86 : vector<1x16x128xf32> to vector<16x128xf32>
    %88 = vector.shape_cast %85 : vector<16x128xf32> to vector<1x16x128xf32>
    tpu.vector_store %arg4[%c0_49, %c0_50, %c0_51], %88 {strides = array<i32>} : memref<1x16x128xf32, #tpu.memory_space<vmem>>, vector<1x16x128xf32>,
    return
  }
  func.func @transform_0(%arg0: i32) -> (i32, i32, i32) {
    %c0_i32 = arith.constant 0 : i32
    %c0_i32_0 = arith.constant 0 : i32
    %c0_i32_1 = arith.constant 0 : i32
    return %arg0, %c0_i32, %c0_i32_0 : i32, i32, i32
  }
  func.func @transform_1(%arg0: i32) -> (i32, i32, i32) {
    %c0_i32 = arith.constant 0 : i32
    %c0_i32_0 = arith.constant 0 : i32
    %c0_i32_1 = arith.constant 0 : i32
    return %arg0, %c0_i32, %c0_i32_0 : i32, i32, i32
  }
  func.func @transform_2(%arg0: i32) -> (i32, i32) {
    %c0_i32 = arith.constant 0 : i32
    %c0_i32_0 = arith.constant 0 : i32
    %c0_i32_1 = arith.constant 0 : i32
    return %c0_i32, %c0_i32_0 : i32, i32
  }
  func.func @transform_3(%arg0: i32) -> (i32, i32, i32) {
    %c0_i32 = arith.constant 0 : i32
    %c0_i32_0 = arith.constant 0 : i32
    %c0_i32_1 = arith.constant 0 : i32
    return %arg0, %c0_i32, %c0_i32_0 : i32, i32, i32
  }
}

module attributes {stable_mosaic.version = 11 : i64} {
  func.func @_ffn_ln_kernel(%arg0: i32, %arg1: i32, %arg2: memref<16x128xf32, #tpu.memory_space<vmem>>, %arg3: memref<128x256xf32, #tpu.memory_space<vmem>>, %arg4: memref<1x256xf32, #tpu.memory_space<vmem>>, %arg5: memref<256x128xf32, #tpu.memory_space<vmem>>, %arg6: memref<1x128xf32, #tpu.memory_space<vmem>>, %arg7: memref<16x128xf32, #tpu.memory_space<vmem>>, %arg8: memref<1x128xf32, #tpu.memory_space<vmem>>, %arg9: memref<1x128xf32, #tpu.memory_space<vmem>>, %arg10: memref<16x128xf32, #tpu.memory_space<vmem>>, %arg11: memref<16x128xf32, #tpu.memory_space<vmem>>) attributes {dimension_semantics = [#tpu.dimension_semantics<parallel>, #tpu.dimension_semantics<arbitrary>], iteration_bounds = array<i64: 2, 1>, scalar_prefetch = 0 : i64, scratch_operands = 1 : i64, tpu.core_type = #tpu.core_type<tc>, window_params = [{transform_indices = @transform_0, window_bounds = array<i64: 16, 128>}, {transform_indices = @transform_1, window_bounds = array<i64: 128, 256>}, {transform_indices = @transform_2, window_bounds = array<i64: 1, 256>}, {transform_indices = @transform_3, window_bounds = array<i64: 256, 128>}, {pipeline_mode = #tpu.pipeline_mode<synchronous>, transform_indices = @transform_4, window_bounds = array<i64: 1, 128>}, {transform_indices = @transform_5, window_bounds = array<i64: 16, 128>}, {pipeline_mode = #tpu.pipeline_mode<synchronous>, transform_indices = @transform_6, window_bounds = array<i64: 1, 128>}, {pipeline_mode = #tpu.pipeline_mode<synchronous>, transform_indices = @transform_7, window_bounds = array<i64: 1, 128>}, {transform_indices = @transform_8, window_bounds = array<i64: 16, 128>}]} {
    %c0_i32 = arith.constant 0 : i32
    %0 = arith.cmpi eq, %arg1, %c0_i32 : i32
    %1 = arith.extui %0 : i1 to i32
    %c0_i32_0 = arith.constant 0 : i32
    %2 = arith.cmpi ne, %1, %c0_i32_0 : i32
    scf.if %2 {
      %cst_16 = arith.constant 0.000000e+00 : f32
      %19 = vector.broadcast %cst_16 : f32 to vector<16x128xf32>
      %c0_17 = arith.constant 0 : index
      %c0_18 = arith.constant 0 : index
      %20 = vector.load %arg11[%c0_17, %c0_18] : memref<16x128xf32, #tpu.memory_space<vmem>>, vector<16x128xf32>
      tpu.vector_store %arg11[%c0_17, %c0_18], %19 {strides = array<i32>} : memref<16x128xf32, #tpu.memory_space<vmem>>, vector<16x128xf32>,
    } else {
    }
    %c0 = arith.constant 0 : index
    %c0_1 = arith.constant 0 : index
    %3 = vector.load %arg2[%c0, %c0_1] : memref<16x128xf32, #tpu.memory_space<vmem>>, vector<16x128xf32>
    %c0_2 = arith.constant 0 : index
    %c0_3 = arith.constant 0 : index
    %4 = vector.load %arg3[%c0_2, %c0_3] : memref<128x256xf32, #tpu.memory_space<vmem>>, vector<128x256xf32>
    %cst = arith.constant dense<0.000000e+00> : vector<16x256xf32>
    %5 = tpu.matmul %3, %4, %cst {dimension_numbers = #tpu.dot_dimension_numbers<[1], [0], [0], [1], [0, 0, 1, 1], [], []>} : vector<16x128xf32>, vector<128x256xf32>, vector<16x256xf32> -> vector<16x256xf32>
    %c0_4 = arith.constant 0 : index
    %c0_5 = arith.constant 0 : index
    %6 = vector.load %arg4[%c0_4, %c0_5] : memref<1x256xf32, #tpu.memory_space<vmem>>, vector<1x256xf32>
    %7 = vector.broadcast %6 : vector<1x256xf32> to vector<16x256xf32>
    %8 = arith.addf %5, %7 : vector<16x256xf32>
    %cst_6 = arith.constant 0.000000e+00 : f32
    %9 = vector.broadcast %cst_6 : f32 to vector<16x256xf32>
    %10 = arith.maximumf %8, %9 : vector<16x256xf32>
    %c0_7 = arith.constant 0 : index
    %c0_8 = arith.constant 0 : index
    %11 = vector.load %arg11[%c0_7, %c0_8] : memref<16x128xf32, #tpu.memory_space<vmem>>, vector<16x128xf32>
    %c0_9 = arith.constant 0 : index
    %c0_10 = arith.constant 0 : index
    %12 = vector.load %arg5[%c0_9, %c0_10] : memref<256x128xf32, #tpu.memory_space<vmem>>, vector<256x128xf32>
    %cst_11 = arith.constant dense<0.000000e+00> : vector<16x128xf32>
    %13 = tpu.matmul %10, %12, %cst_11 {dimension_numbers = #tpu.dot_dimension_numbers<[1], [0], [0], [1], [0, 0, 1, 1], [], []>} : vector<16x256xf32>, vector<256x128xf32>, vector<16x128xf32> -> vector<16x128xf32>
    %14 = arith.addf %11, %13 : vector<16x128xf32>
    %c0_12 = arith.constant 0 : index
    %c0_13 = arith.constant 0 : index
    %15 = vector.load %arg11[%c0_12, %c0_13] : memref<16x128xf32, #tpu.memory_space<vmem>>, vector<16x128xf32>
    tpu.vector_store %arg11[%c0_12, %c0_13], %14 {strides = array<i32>} : memref<16x128xf32, #tpu.memory_space<vmem>>, vector<16x128xf32>,
    %c0_i32_14 = arith.constant 0 : i32
    %16 = arith.cmpi eq, %arg1, %c0_i32_14 : i32
    %17 = arith.extui %16 : i1 to i32
    %c0_i32_15 = arith.constant 0 : i32
    %18 = arith.cmpi ne, %17, %c0_i32_15 : i32
    scf.if %18 {
      %c0_16 = arith.constant 0 : index
      %c0_17 = arith.constant 0 : index
      %19 = vector.load %arg11[%c0_16, %c0_17] : memref<16x128xf32, #tpu.memory_space<vmem>>, vector<16x128xf32>
      %c0_18 = arith.constant 0 : index
      %c0_19 = arith.constant 0 : index
      %20 = vector.load %arg6[%c0_18, %c0_19] : memref<1x128xf32, #tpu.memory_space<vmem>>, vector<1x128xf32>
      %21 = vector.broadcast %20 : vector<1x128xf32> to vector<16x128xf32>
      %22 = arith.addf %19, %21 : vector<16x128xf32>
      %c0_20 = arith.constant 0 : index
      %c0_21 = arith.constant 0 : index
      %23 = vector.load %arg7[%c0_20, %c0_21] : memref<16x128xf32, #tpu.memory_space<vmem>>, vector<16x128xf32>
      %24 = arith.addf %22, %23 : vector<16x128xf32>
      %c0_22 = arith.constant 0 : index
      %c0_23 = arith.constant 0 : index
      %25 = vector.load %arg8[%c0_22, %c0_23] : memref<1x128xf32, #tpu.memory_space<vmem>>, vector<1x128xf32>
      %c0_24 = arith.constant 0 : index
      %c0_25 = arith.constant 0 : index
      %26 = vector.load %arg9[%c0_24, %c0_25] : memref<1x128xf32, #tpu.memory_space<vmem>>, vector<1x128xf32>
      %cst_26 = arith.constant dense<0.000000e+00> : vector<16xf32>
      %27 = vector.multi_reduction <add>, %24, %cst_26 [1] : vector<16x128xf32> to vector<16xf32>
      %28 = vector.shape_cast %27 : vector<16xf32> to vector<16x1xf32>
      %cst_27 = arith.constant 1.280000e+02 : f32
      %29 = vector.broadcast %cst_27 : f32 to vector<16x1xf32>
      %30 = arith.divf %28, %29 : vector<16x1xf32>
      %31 = vector.broadcast %30 : vector<16x1xf32> to vector<16x128xf32>
      %32 = arith.subf %24, %31 : vector<16x128xf32>
      %33 = arith.mulf %32, %32 : vector<16x128xf32>
      %cst_28 = arith.constant dense<0.000000e+00> : vector<16xf32>
      %34 = vector.multi_reduction <add>, %33, %cst_28 [1] : vector<16x128xf32> to vector<16xf32>
      %35 = vector.shape_cast %34 : vector<16xf32> to vector<16x1xf32>
      %cst_29 = arith.constant 1.280000e+02 : f32
      %36 = vector.broadcast %cst_29 : f32 to vector<16x1xf32>
      %37 = arith.divf %35, %36 : vector<16x1xf32>
      %cst_30 = arith.constant 9.99999974E-6 : f32
      %38 = vector.broadcast %cst_30 : f32 to vector<16x1xf32>
      %39 = arith.addf %37, %38 : vector<16x1xf32>
      %40 = math.rsqrt %39 : vector<16x1xf32>
      %41 = vector.broadcast %40 : vector<16x1xf32> to vector<16x128xf32>
      %42 = arith.mulf %32, %41 : vector<16x128xf32>
      %43 = vector.broadcast %25 : vector<1x128xf32> to vector<16x128xf32>
      %44 = arith.mulf %42, %43 : vector<16x128xf32>
      %45 = vector.broadcast %26 : vector<1x128xf32> to vector<16x128xf32>
      %46 = arith.addf %44, %45 : vector<16x128xf32>
      %c0_31 = arith.constant 0 : index
      %c0_32 = arith.constant 0 : index
      %47 = vector.load %arg10[%c0_31, %c0_32] : memref<16x128xf32, #tpu.memory_space<vmem>>, vector<16x128xf32>
      tpu.vector_store %arg10[%c0_31, %c0_32], %46 {strides = array<i32>} : memref<16x128xf32, #tpu.memory_space<vmem>>, vector<16x128xf32>,
    } else {
    }
    return
  }
  func.func @transform_0(%arg0: i32, %arg1: i32) -> (i32, i32) {
    %c0_i32 = arith.constant 0 : i32
    %c0_i32_0 = arith.constant 0 : i32
    return %arg0, %c0_i32 : i32, i32
  }
  func.func @transform_1(%arg0: i32, %arg1: i32) -> (i32, i32) {
    %c0_i32 = arith.constant 0 : i32
    %c0_i32_0 = arith.constant 0 : i32
    return %c0_i32, %arg1 : i32, i32
  }
  func.func @transform_2(%arg0: i32, %arg1: i32) -> (i32, i32) {
    %c0_i32 = arith.constant 0 : i32
    %c0_i32_0 = arith.constant 0 : i32
    return %c0_i32, %arg1 : i32, i32
  }
  func.func @transform_3(%arg0: i32, %arg1: i32) -> (i32, i32) {
    %c0_i32 = arith.constant 0 : i32
    %c0_i32_0 = arith.constant 0 : i32
    return %arg1, %c0_i32 : i32, i32
  }
  func.func @transform_4(%arg0: i32, %arg1: i32) -> (i32, i32) {
    %c0_i32 = arith.constant 0 : i32
    %c0_i32_0 = arith.constant 0 : i32
    %c0_i32_1 = arith.constant 0 : i32
    return %c0_i32, %c0_i32_0 : i32, i32
  }
  func.func @transform_5(%arg0: i32, %arg1: i32) -> (i32, i32) {
    %c0_i32 = arith.constant 0 : i32
    %c0_i32_0 = arith.constant 0 : i32
    return %arg0, %c0_i32 : i32, i32
  }
  func.func @transform_6(%arg0: i32, %arg1: i32) -> (i32, i32) {
    %c0_i32 = arith.constant 0 : i32
    %c0_i32_0 = arith.constant 0 : i32
    %c0_i32_1 = arith.constant 0 : i32
    return %c0_i32, %c0_i32_0 : i32, i32
  }
  func.func @transform_7(%arg0: i32, %arg1: i32) -> (i32, i32) {
    %c0_i32 = arith.constant 0 : i32
    %c0_i32_0 = arith.constant 0 : i32
    %c0_i32_1 = arith.constant 0 : i32
    return %c0_i32, %c0_i32_0 : i32, i32
  }
  func.func @transform_8(%arg0: i32, %arg1: i32) -> (i32, i32) {
    %c0_i32 = arith.constant 0 : i32
    %c0_i32_0 = arith.constant 0 : i32
    return %arg0, %c0_i32 : i32, i32
  }
}

</mosaic_0001>

<bundles_post_ra>
// kernel: decoder_forward.17
= control target key start
LH: loop header
LB: loop body
LE: loop exit
PB: predicated region body
PF: predicated region fallthrough
CT: control target
= control target key end

     0   :  { %s782_s24 = smov 0   ;;  %s967_s0 = inlined_call_operand.vmem [shape: f32[32,128], index: 0, kind: input, shape index: {}]   ;;  %s968_s1 = inlined_call_operand.vmem [shape: f32[32,128], index: 1, kind: input, shape index: {}]   ;;  %s969_s2 = inlined_call_operand.vmem [shape: f32[128,256], index: 2, kind: input, shape index: {}]   ;;  %s970_s3 = inlined_call_operand.vmem [shape: f32[1,256], index: 3, kind: input, shape index: {}]   ;;  %s971_s4 = inlined_call_operand.vmem [shape: f32[128,128], index: 4, kind: input, shape index: {}]   ;;  %s972_s5 = inlined_call_operand.vmem [shape: f32[1,128], index: 5, kind: input, shape index: {}]   ;;  %s973_s6 = inlined_call_operand.vmem [shape: f32[32,256], index: 6, kind: output, shape index: {0}]   ;;  %s974_s7 = inlined_call_operand.vmem [shape: f32[32,128], index: 7, kind: output, shape index: {1}]  }
   0x1 LB: > { %s653_s25 = sadd.s32 4294967295, %s739_s24   ;;  %p657_p0 = scmp.ge.s32.totalorder %s739_s24, 1  ;;  %s739_s24 = sphi %s782_s24, %s18_s24  }
   0x2   : > { %p252_p1 = scmp.lt.s32.totalorder %s739_s24, 3 }
   0x4   : > { %p253_p2 = pnand %p657_p0, %p252_p1 }
   0x5   : > { %s658_s9 = sshll.u32 (!%p253_p2), %s653_s25, 1 }
   0x6   : > { %256 = sbr.rel (%p253_p2) target bundleno = 247 (0xf7), region = 44  ;;  %p296_p3 = scmp.lt.s32.totalorder (!%p253_p2), %s658_s9, 3 }
   0xb   : > { %v353_v0 = vld [vmem:[%s969_s2 + $0xf8] sm:$0xff]  ;;  %v352_v2 = vld [vmem:[%s969_s2 + $0xf0] sm:$0xff]  ;;  %v351_v3 = vld [vmem:[%s969_s2 + $0xe8] sm:$0xff]  ;;  %s976_s9 = smov (!%p296_p3, %s658_s9), 3  ;;  %v741_v51 = vmov 0.0   ;;  %v356_v53 = vlaneseq }
   0xc   : > { %v464_v1 = vld [vmem:[%s971_s4 + $0x78] sm:$0xff]  ;;  %366 = vmatprep.subr.mxu0 %v353_v0  ;;  %v463_v4 = vld [vmem:[%s971_s4 + $0x70] sm:$0xff]  ;;  %v350_v5 = vld [vmem:[%s969_s2 + $0xe0] sm:$0xff]  ;;  %s919_s22 = sshll.u32 %s976_s9, 3  ;;  %430 = vmatprep.mubr.f32.mxu0 %v741_v51  ;;  %s670_s27 = sshll.u32 %s976_s9, 4 }
   0xd   : > { %689 = vmatprep.subr.mxu1 %v464_v1  ;;  %367 = vmatpush1.msra.mxu0 %v352_v2  ;;  %v349_v6 = vld [vmem:[%s969_s2 + $0xd8] sm:$0xff]  ;;  %v462_v7 = vld [vmem:[%s971_s4 + $0x68] sm:$0xff]  ;;  %v348_v8 = vld [vmem:[%s969_s2 + $0xd0] sm:$0xff]  ;;  %s305_s13 = scalar_lea.vmem %s968_s1, %s919_s22  ;;  %s299_s19 = scalar_lea.vmem %s967_s0, %s919_s22  ;;  %v357_v54 = vshrl.u32 %v356_v53, 7 }
   0xe   : > { %690 = vmatpush3.msra.mxu1 %v464_v1  ;;  %368 = vmatprep.subr.mxu0 %v351_v3  ;;  %v347_v9 = vld [vmem:[%s969_s2 + $0xc8] sm:$0xff]  ;;  %v461_v10 = vld [vmem:[%s971_s4 + $0x60] sm:$0xff]  ;;  %v345_v12 = vld [vmem:[%s969_s2 + $0xb8] sm:$0xff]  ;;  %s312_s10 = scalar_lea.vmem %s973_s6, %s670_s27 }
   0xf   : > { %691 = vmatprep.subr.mxu1 %v463_v4  ;;  %369 = vmatpush1.msra.mxu0 %v350_v5  ;;  %v346_v11 = vld [vmem:[%s969_s2 + $0xc0] sm:$0xff]  ;;  %v460_v13 = vld [vmem:[%s971_s4 + $0x58] sm:$0xff]  ;;  %v344_v14 = vld [vmem:[%s969_s2 + $0xb0] sm:$0xff]  ;;  %v358_v55 = vsub.s32 0, %v357_v54  ;;  %v362_v57 = vsub.s32 1, %v357_v54 }
  0x10   : > { %692 = vmatpush3.msra.mxu1 %v463_v4  ;;  %370 = vmatprep.subr.mxu0 %v349_v6  ;;  %v343_v15 = vld [vmem:[%s969_s2 + $0xa8] sm:$0xff]  ;;  %v459_v16 = vld [vmem:[%s971_s4 + $0x50] sm:$0xff]  ;;  %v342_v17 = vld [vmem:[%s969_s2 + $0xa0] sm:$0xff] }
  0x11   : > { %693 = vmatprep.subr.mxu1 %v462_v7  ;;  %371 = vmatpush1.msra.mxu0 %v348_v8  ;;  %v341_v18 = vld [vmem:[%s969_s2 + $0x98] sm:$0xff]  ;;  %v458_v19 = vld [vmem:[%s971_s4 + $0x48] sm:$0xff]  ;;  %v340_v20 = vld [vmem:[%s969_s2 + $0x90] sm:$0xff] }
  0x12   : > { %694 = vmatpush3.msra.mxu1 %v462_v7  ;;  %372 = vmatprep.subr.mxu0 %v347_v9  ;;  %v339_v21 = vld [vmem:[%s969_s2 + $0x88] sm:$0xff]  ;;  %v457_v22 = vld [vmem:[%s971_s4 + $0x40] sm:$0xff]  ;;  %v337_v24 = vld [vmem:[%s969_s2 + $0x78] sm:$0xff] }
  0x13   : > { %695 = vmatprep.subr.mxu1 %v461_v10  ;;  %373 = vmatpush1.msra.mxu0 %v346_v11  ;;  %v338_v23 = vld [vmem:[%s969_s2 + $0x80] sm:$0xff]  ;;  %v456_v25 = vld [vmem:[%s971_s4 + $0x38] sm:$0xff]  ;;  %v336_v26 = vld [vmem:[%s969_s2 + $0x70] sm:$0xff] }
  0x14   : > { %696 = vmatpush3.msra.mxu1 %v461_v10  ;;  %374 = vmatprep.subr.mxu0 %v345_v12  ;;  %v335_v27 = vld [vmem:[%s969_s2 + $0x68] sm:$0xff]  ;;  %v455_v28 = vld [vmem:[%s971_s4 + $0x30] sm:$0xff]  ;;  %v334_v29 = vld [vmem:[%s969_s2 + $0x60] sm:$0xff] }
  0x15   : > { %697 = vmatprep.subr.mxu1 %v460_v13  ;;  %375 = vmatpush1.msra.mxu0 %v344_v14  ;;  %v333_v30 = vld [vmem:[%s969_s2 + $0x58] sm:$0xff]  ;;  %v454_v31 = vld [vmem:[%s971_s4 + $0x28] sm:$0xff]  ;;  %v332_v32 = vld [vmem:[%s969_s2 + $0x50] sm:$0xff] }
  0x16   : > { %698 = vmatpush3.msra.mxu1 %v460_v13  ;;  %376 = vmatprep.subr.mxu0 %v343_v15  ;;  %v331_v33 = vld [vmem:[%s969_s2 + $0x48] sm:$0xff]  ;;  %v453_v34 = vld [vmem:[%s971_s4 + $0x20] sm:$0xff]  ;;  %v329_v36 = vld [vmem:[%s969_s2 + $0x38] sm:$0xff] }
  0x17   : > { %699 = vmatprep.subr.mxu1 %v459_v16  ;;  %377 = vmatpush1.msra.mxu0 %v342_v17  ;;  %v330_v35 = vld [vmem:[%s969_s2 + $0x40] sm:$0xff]  ;;  %v452_v37 = vld [vmem:[%s971_s4 + $0x18] sm:$0xff]  ;;  %v328_v38 = vld [vmem:[%s969_s2 + $0x30] sm:$0xff] }
  0x18   : > { %700 = vmatpush3.msra.mxu1 %v459_v16  ;;  %378 = vmatprep.subr.mxu0 %v341_v18  ;;  %v327_v39 = vld [vmem:[%s969_s2 + $0x28] sm:$0xff]  ;;  %v451_v40 = vld [vmem:[%s971_s4 + $0x10] sm:$0xff]  ;;  %v326_v41 = vld [vmem:[%s969_s2 + $0x20] sm:$0xff] }
  0x19   : > { %701 = vmatprep.subr.mxu1 %v458_v19  ;;  %379 = vmatpush1.msra.mxu0 %v340_v20  ;;  %v325_v42 = vld [vmem:[%s969_s2 + $0x18] sm:$0xff]  ;;  %v450_v43 = vld [vmem:[%s971_s4 + $0x8] sm:$0xff]  ;;  %v324_v44 = vld [vmem:[%s969_s2 + $0x10] sm:$0xff] }
  0x1a   : > { %702 = vmatpush3.msra.mxu1 %v458_v19  ;;  %380 = vmatprep.subr.mxu0 %v339_v21  ;;  %v323_v45 = vld [vmem:[%s969_s2 + $0x8] sm:$0xff]  ;;  %v449_v46 = vld [vmem:[%s971_s4] sm:$0xff] }
  0x1b   : > { %703 = vmatprep.subr.mxu1 %v457_v22  ;;  %381 = vmatpush1.msra.mxu0 %v338_v23  ;;  %v322_v47 = vld [vmem:[%s969_s2] sm:$0xff]  ;;  %v448_v50 = vld [vmem:[%s305_s13 + $0x8] sm:$0xff] }
  0x1c   : > { %704 = vmatpush3.msra.mxu1 %v457_v22  ;;  %382 = vmatprep.subr.mxu0 %v337_v24  ;;  %v447_v48 = vld [vmem:[%s305_s13] sm:$0xff]  ;;  %v321_v52 = vld [vmem:[%s299_s19 + $0x8] sm:$0xff]  ;;  %s318_s13 = scalar_lea.vmem %s974_s7, %s919_s22 }
  0x1d   : > { %705 = vmatprep.subr.mxu1 %v456_v25  ;;  %383 = vmatpush1.msra.mxu0 %v336_v26  ;;  %v320_v49 = vld [vmem:[%s299_s19] sm:$0xff] }
  0x1e   : > { %706 = vmatpush3.msra.mxu1 %v456_v25  ;;  %384 = vmatprep.subr.mxu0 %v335_v27  ;;  %v354_v56 = vld [vmem:[%s970_s3] sm:$0x3] }
  0x1f   : > { %707 = vmatprep.subr.mxu1 %v455_v28  ;;  %385 = vmatpush1.msra.mxu0 %v334_v29  ;;  %v359_v58 = vrot.slane %v354_v56, %v358_v55  ;;  %v667_v59 = vld [vmem:[%s972_s5] ss:$0 sm:$0xff]  ;;  %v363_v60 = vrot.slane %v354_v56, %v362_v57 }
  0x20   : > { %708 = vmatpush3.msra.mxu1 %v455_v28  ;;  %386 = vmatprep.subr.mxu0 %v333_v30 }
  0x21   : > { %709 = vmatprep.subr.mxu1 %v454_v31  ;;  %387 = vmatpush1.msra.mxu0 %v332_v32 }
  0x22   : > { %710 = vmatpush3.msra.mxu1 %v454_v31  ;;  %388 = vmatprep.subr.mxu0 %v331_v33 }
  0x23   : > { %711 = vmatprep.subr.mxu1 %v453_v34  ;;  %389 = vmatpush1.msra.mxu0 %v330_v35 }
  0x24   : > { %712 = vmatpush3.msra.mxu1 %v453_v34  ;;  %390 = vmatprep.subr.mxu0 %v329_v36 }
  0x25   : > { %713 = vmatprep.subr.mxu1 %v452_v37  ;;  %391 = vmatpush1.msra.mxu0 %v328_v38 }
  0x26   : > { %714 = vmatpush3.msra.mxu1 %v452_v37  ;;  %392 = vmatprep.subr.mxu0 %v327_v39 }
  0x27   : > { %715 = vmatprep.subr.mxu1 %v451_v40  ;;  %393 = vmatpush1.msra.mxu0 %v326_v41 }
  0x28   : > { %716 = vmatpush3.msra.mxu1 %v451_v40  ;;  %394 = vmatprep.subr.mxu0 %v325_v42 }
  0x29   : > { %717 = vmatprep.subr.mxu1 %v450_v43  ;;  %395 = vmatpush1.msra.mxu0 %v324_v44 }
  0x2a   : > { %718 = vmatpush3.msra.mxu1 %v450_v43  ;;  %396 = vmatprep.subr.mxu0 %v323_v45 }
  0x2b   : > { %719 = vmatprep.subr.mxu1 %v449_v46  ;;  %397 = vmatpush1.msra.mxu0 %v322_v47 }
  0x2c   : > { %720 = vmatpush3.msra.mxu1 %v449_v46  ;;  %721 = vmatprep.mubr.f32.mxu1 %v447_v48 }
  0x2d   : > { %431 = vmatmul.mubr.f32.vlgmr.msra.gmra.mxu0 %v320_v49  ;;  %722 = vmatmul.mubr.f32.vlgmr.msra.gmra.mxu1 %v448_v50 }
  0x2e   : > { %436 = vmatprep.mubr.f32.mxu0 %v741_v51 }
  0x31   : > { %437 = vmatmul.mubr.f32.gmra.mxu0 %v321_v52 }
  0xed   : > { %v432_v61 = vpop.f32.mrf.mxu0  ;;  %v723_v62 = vpop.f32.mrf.mxu1 }
  0xee   : > { %v433_v63 = vadd.f32 %v432_v61, %v359_v58  ;;  %v544_v0 = vadd.f32 %v723_v62, %v667_v59 }
  0xef   : > { %v434_v1 = vpop.f32.mrf.mxu0  ;;  %v538_v2 = vpop.f32.mrf.mxu1 }
  0xf0   : > { %443 = vst [vmem:[%s312_s10] sm:$0xff] %v433_v63  ;;  %v435_v3 = vadd.f32 %v434_v1, %v363_v60  ;;  %v539_v4 = vadd.f32 %v667_v59, %v538_v2  ;;  %548 = vst [vmem:[%s318_s13 + $0x8] sm:$0xff] %v544_v0 }
  0xf1   : > { %v438_v5 = vpop.f32.mrf.mxu0 }
  0xf2   : > { %444 = vst [vmem:[%s312_s10 + $0x8] sm:$0xff] %v435_v3  ;;  %547 = vst [vmem:[%s318_s13] sm:$0xff] %v539_v4  ;;  %v439_v6 = vadd.f32 %v438_v5, %v359_v58 }
  0xf3   : > { %v440_v7 = vpop.f32.mrf.mxu0 }
  0xf4   : > { %445 = vst [vmem:[%s312_s10 + $0x10] sm:$0xff] %v439_v6  ;;  %v441_v8 = vadd.f32 %v440_v7, %v363_v60 }
  0xf6   : > { %446 = vst [vmem:[%s312_s10 + $0x18] sm:$0xff] %v441_v8 }
  0xf7 PF: > { %s18_s24 = sadd.s32 1, %s739_s24  }
  0xf8   : > { %p15_p4 = scmp.ge.s32.totalorder %s18_s24, 4  }
  0xfa   :  { %17 = sbr.rel (!%p15_p4) target bundleno = 1 (0x1), region = 89 }

// kernel: decoder_forward.14
= control target key start
LH: loop header
LB: loop body
LE: loop exit
PB: predicated region body
PF: predicated region fallthrough
CT: control target
= control target key end

     0   :  { %s562_s12 = smov 0   ;;  %s733_s0 = inlined_call_operand.vmem [shape: f32[32,128], index: 0, kind: input, shape index: {}]   ;;  %s734_s1 = inlined_call_operand.vmem [shape: f32[128,384], index: 1, kind: input, shape index: {}]   ;;  %s735_s2 = inlined_call_operand.vmem [shape: f32[1,384], index: 2, kind: input, shape index: {}]   ;;  %s736_s3 = inlined_call_operand.vmem [shape: f32[32,384], index: 3, kind: output, shape index: {}]  }
   0x1 LB: > { %s459_s13 = sadd.s32 4294967295, %s539_s12   ;;  %p463_p0 = scmp.ge.s32.totalorder %s539_s12, 1  ;;  %s539_s12 = sphi %s562_s12, %s13_s12  }
   0x2   : > { %p138_p1 = scmp.lt.s32.totalorder %s539_s12, 3 }
   0x4   : > { %p139_p2 = pnand %p463_p0, %p138_p1 }
   0x5   : > { %s464_s10 = sshll.u32 (!%p139_p2), %s459_s13, 1 }
   0x6   : > { %142 = sbr.rel (%p139_p2) target bundleno = 247 (0xf7), region = 32  ;;  %p164_p3 = scmp.lt.s32.totalorder (!%p139_p2), %s464_s10, 3 }
   0xb   : > { %v224_v0 = vld [vmem:[%s734_s1 + $0x170] sm:$0xff]  ;;  %v225_v1 = vld [vmem:[%s734_s1 + $0x178] sm:$0xff]  ;;  %v223_v2 = vld [vmem:[%s734_s1 + $0x168] sm:$0xff]  ;;  %s738_s10 = smov (!%p164_p3, %s464_s10), 3  ;;  %v541_v50 = vmov 0.0   ;;  %v228_v51 = vlaneseq }
   0xc   : > { %243 = vmatprep.subr.mxu0 %v224_v0  ;;  %488 = vmatprep.subr.mxu1 %v225_v1  ;;  %v221_v3 = vld [vmem:[%s734_s1 + $0x158] sm:$0xff]  ;;  %v222_v4 = vld [vmem:[%s734_s1 + $0x160] sm:$0xff]  ;;  %v220_v5 = vld [vmem:[%s734_s1 + $0x150] sm:$0xff]  ;;  %s465_s21 = sshll.u32 %s738_s10, 3  ;;  %s523_s17 = smul.u32 24, %s738_s10 }
   0xd   : > { %244 = vmatpush1.msra.mxu0 %v223_v2  ;;  %489 = vmatpush3.msra.mxu1 %v225_v1  ;;  %v218_v6 = vld [vmem:[%s734_s1 + $0x140] sm:$0xff]  ;;  %v219_v7 = vld [vmem:[%s734_s1 + $0x148] sm:$0xff]  ;;  %v217_v8 = vld [vmem:[%s734_s1 + $0x138] sm:$0xff]  ;;  %s167_s5 = scalar_lea.vmem %s733_s0, %s465_s21  ;;  %v229_v52 = vshrl.u32 %v228_v51, 7 }
   0xe   : > { %245 = vmatprep.subr.mxu0 %v221_v3  ;;  %490 = vmatprep.subr.mxu1 %v222_v4  ;;  %v215_v9 = vld [vmem:[%s734_s1 + $0x128] sm:$0xff]  ;;  %v216_v10 = vld [vmem:[%s734_s1 + $0x130] sm:$0xff]  ;;  %v214_v11 = vld [vmem:[%s734_s1 + $0x120] sm:$0xff]  ;;  %s174_s13 = scalar_lea.vmem %s736_s3, %s523_s17 }
   0xf   : > { %246 = vmatpush1.msra.mxu0 %v220_v5  ;;  %491 = vmatpush3.msra.mxu1 %v222_v4  ;;  %v212_v12 = vld [vmem:[%s734_s1 + $0x110] sm:$0xff]  ;;  %v213_v13 = vld [vmem:[%s734_s1 + $0x118] sm:$0xff]  ;;  %v211_v14 = vld [vmem:[%s734_s1 + $0x108] sm:$0xff]  ;;  %v230_v53 = vsub.s32 0, %v229_v52  ;;  %v238_v55 = vsub.s32 2, %v229_v52  ;;  %v234_v56 = vsub.s32 1, %v229_v52 }
  0x10   : > { %247 = vmatprep.subr.mxu0 %v218_v6  ;;  %492 = vmatprep.subr.mxu1 %v219_v7  ;;  %v209_v15 = vld [vmem:[%s734_s1 + $0xf8] sm:$0xff]  ;;  %v210_v16 = vld [vmem:[%s734_s1 + $0x100] sm:$0xff]  ;;  %v208_v17 = vld [vmem:[%s734_s1 + $0xf0] sm:$0xff] }
  0x11   : > { %248 = vmatpush1.msra.mxu0 %v217_v8  ;;  %493 = vmatpush3.msra.mxu1 %v219_v7  ;;  %v206_v18 = vld [vmem:[%s734_s1 + $0xe0] sm:$0xff]  ;;  %v207_v19 = vld [vmem:[%s734_s1 + $0xe8] sm:$0xff]  ;;  %v205_v20 = vld [vmem:[%s734_s1 + $0xd8] sm:$0xff] }
  0x12   : > { %249 = vmatprep.subr.mxu0 %v215_v9  ;;  %494 = vmatprep.subr.mxu1 %v216_v10  ;;  %v203_v21 = vld [vmem:[%s734_s1 + $0xc8] sm:$0xff]  ;;  %v204_v22 = vld [vmem:[%s734_s1 + $0xd0] sm:$0xff]  ;;  %v202_v23 = vld [vmem:[%s734_s1 + $0xc0] sm:$0xff] }
  0x13   : > { %250 = vmatpush1.msra.mxu0 %v214_v11  ;;  %495 = vmatpush3.msra.mxu1 %v216_v10  ;;  %v200_v24 = vld [vmem:[%s734_s1 + $0xb0] sm:$0xff]  ;;  %v201_v25 = vld [vmem:[%s734_s1 + $0xb8] sm:$0xff]  ;;  %v199_v26 = vld [vmem:[%s734_s1 + $0xa8] sm:$0xff] }
  0x14   : > { %251 = vmatprep.subr.mxu0 %v212_v12  ;;  %496 = vmatprep.subr.mxu1 %v213_v13  ;;  %v197_v27 = vld [vmem:[%s734_s1 + $0x98] sm:$0xff]  ;;  %v198_v28 = vld [vmem:[%s734_s1 + $0xa0] sm:$0xff]  ;;  %v196_v29 = vld [vmem:[%s734_s1 + $0x90] sm:$0xff] }
  0x15   : > { %252 = vmatpush1.msra.mxu0 %v211_v14  ;;  %497 = vmatpush3.msra.mxu1 %v213_v13  ;;  %v194_v30 = vld [vmem:[%s734_s1 + $0x80] sm:$0xff]  ;;  %v195_v31 = vld [vmem:[%s734_s1 + $0x88] sm:$0xff]  ;;  %v193_v32 = vld [vmem:[%s734_s1 + $0x78] sm:$0xff] }
  0x16   : > { %253 = vmatprep.subr.mxu0 %v209_v15  ;;  %498 = vmatprep.subr.mxu1 %v210_v16  ;;  %v191_v33 = vld [vmem:[%s734_s1 + $0x68] sm:$0xff]  ;;  %v192_v34 = vld [vmem:[%s734_s1 + $0x70] sm:$0xff]  ;;  %v190_v35 = vld [vmem:[%s734_s1 + $0x60] sm:$0xff] }
  0x17   : > { %254 = vmatpush1.msra.mxu0 %v208_v17  ;;  %499 = vmatpush3.msra.mxu1 %v210_v16  ;;  %v188_v36 = vld [vmem:[%s734_s1 + $0x50] sm:$0xff]  ;;  %v189_v37 = vld [vmem:[%s734_s1 + $0x58] sm:$0xff]  ;;  %v187_v38 = vld [vmem:[%s734_s1 + $0x48] sm:$0xff] }
  0x18   : > { %255 = vmatprep.subr.mxu0 %v206_v18  ;;  %500 = vmatprep.subr.mxu1 %v207_v19  ;;  %v185_v39 = vld [vmem:[%s734_s1 + $0x38] sm:$0xff]  ;;  %v186_v40 = vld [vmem:[%s734_s1 + $0x40] sm:$0xff]  ;;  %v184_v41 = vld [vmem:[%s734_s1 + $0x30] sm:$0xff] }
  0x19   : > { %256 = vmatpush1.msra.mxu0 %v205_v20  ;;  %501 = vmatpush3.msra.mxu1 %v207_v19  ;;  %v182_v42 = vld [vmem:[%s734_s1 + $0x20] sm:$0xff]  ;;  %v183_v43 = vld [vmem:[%s734_s1 + $0x28] sm:$0xff]  ;;  %v181_v44 = vld [vmem:[%s734_s1 + $0x18] sm:$0xff] }
  0x1a   : > { %257 = vmatprep.subr.mxu0 %v203_v21  ;;  %502 = vmatprep.subr.mxu1 %v204_v22  ;;  %v179_v45 = vld [vmem:[%s734_s1 + $0x8] sm:$0xff]  ;;  %v180_v46 = vld [vmem:[%s734_s1 + $0x10] sm:$0xff]  ;;  %v178_v47 = vld [vmem:[%s734_s1] sm:$0xff] }
  0x1b   : > { %258 = vmatpush1.msra.mxu0 %v202_v23  ;;  %503 = vmatpush3.msra.mxu1 %v204_v22  ;;  %v176_v48 = vld [vmem:[%s167_s5] sm:$0xff]  ;;  %v177_v49 = vld [vmem:[%s167_s5 + $0x8] sm:$0xff] }
  0x1c   : > { %259 = vmatprep.subr.mxu0 %v200_v24  ;;  %504 = vmatprep.subr.mxu1 %v201_v25  ;;  %v226_v54 = vld [vmem:[%s735_s2] sm:$0x7] }
  0x1d   : > { %260 = vmatpush1.msra.mxu0 %v199_v26  ;;  %505 = vmatpush3.msra.mxu1 %v201_v25  ;;  %v231_v57 = vrot.slane %v226_v54, %v230_v53  ;;  %v239_v58 = vrot.slane %v226_v54, %v238_v55  ;;  %v235_v59 = vrot.slane %v226_v54, %v234_v56 }
  0x1e   : > { %261 = vmatprep.subr.mxu0 %v197_v27  ;;  %506 = vmatprep.subr.mxu1 %v198_v28 }
  0x1f   : > { %262 = vmatpush1.msra.mxu0 %v196_v29  ;;  %507 = vmatpush3.msra.mxu1 %v198_v28 }
  0x20   : > { %263 = vmatprep.subr.mxu0 %v194_v30  ;;  %508 = vmatprep.subr.mxu1 %v195_v31 }
  0x21   : > { %264 = vmatpush1.msra.mxu0 %v193_v32  ;;  %509 = vmatpush3.msra.mxu1 %v195_v31 }
  0x22   : > { %265 = vmatprep.subr.mxu0 %v191_v33  ;;  %510 = vmatprep.subr.mxu1 %v192_v34 }
  0x23   : > { %266 = vmatpush1.msra.mxu0 %v190_v35  ;;  %511 = vmatpush3.msra.mxu1 %v192_v34 }
  0x24   : > { %267 = vmatprep.subr.mxu0 %v188_v36  ;;  %512 = vmatprep.subr.mxu1 %v189_v37 }
  0x25   : > { %268 = vmatpush1.msra.mxu0 %v187_v38  ;;  %513 = vmatpush3.msra.mxu1 %v189_v37 }
  0x26   : > { %269 = vmatprep.subr.mxu0 %v185_v39  ;;  %514 = vmatprep.subr.mxu1 %v186_v40 }
  0x27   : > { %270 = vmatpush1.msra.mxu0 %v184_v41  ;;  %515 = vmatpush3.msra.mxu1 %v186_v40 }
  0x28   : > { %271 = vmatprep.subr.mxu0 %v182_v42  ;;  %516 = vmatprep.subr.mxu1 %v183_v43 }
  0x29   : > { %272 = vmatpush1.msra.mxu0 %v181_v44  ;;  %517 = vmatpush3.msra.mxu1 %v183_v43 }
  0x2a   : > { %273 = vmatprep.subr.mxu0 %v179_v45  ;;  %518 = vmatprep.subr.mxu1 %v180_v46 }
  0x2b   : > { %274 = vmatpush1.msra.mxu0 %v178_v47  ;;  %307 = vmatprep.mubr.f32.mxu0 %v541_v50 }
  0x2c   : > { %519 = vmatpush3.msra.mxu1 %v180_v46  ;;  %520 = vmatprep.mubr.f32.mxu1 %v176_v48 }
  0x2d   : > { %308 = vmatmul.mubr.f32.vlgmr.msra.gmra.mxu0 %v176_v48  ;;  %521 = vmatmul.mubr.f32.vlgmr.msra.gmra.mxu1 %v177_v49 }
  0x2e   : > { %313 = vmatprep.mubr.f32.mxu0 %v541_v50 }
  0x31   : > { %314 = vmatmul.mubr.f32.gmra.mxu0 %v177_v49 }
  0xed   : > { %v309_v60 = vpop.f32.mrf.mxu0  ;;  %v522_v61 = vpop.f32.mrf.mxu1 }
  0xee   : > { %v310_v62 = vadd.f32 %v309_v60, %v231_v57  ;;  %v392_v63 = vadd.f32 %v522_v61, %v239_v58 }
  0xef   : > { %v311_v0 = vpop.f32.mrf.mxu0  ;;  %v386_v1 = vpop.f32.mrf.mxu1 }
  0xf0   : > { %395 = vst [vmem:[%s174_s13] sm:$0xff] %v310_v62  ;;  %v312_v2 = vadd.f32 %v311_v0, %v235_v59  ;;  %v387_v3 = vadd.f32 %v386_v1, %v239_v58  ;;  %400 = vst [vmem:[%s174_s13 + $0x28] sm:$0xff] %v392_v63 }
  0xf1   : > { %v315_v4 = vpop.f32.mrf.mxu0 }
  0xf2   : > { %396 = vst [vmem:[%s174_s13 + $0x8] sm:$0xff] %v312_v2  ;;  %397 = vst [vmem:[%s174_s13 + $0x10] sm:$0xff] %v387_v3  ;;  %v316_v5 = vadd.f32 %v315_v4, %v231_v57 }
  0xf3   : > { %v317_v6 = vpop.f32.mrf.mxu0 }
  0xf4   : > { %398 = vst [vmem:[%s174_s13 + $0x18] sm:$0xff] %v316_v5  ;;  %v318_v7 = vadd.f32 %v317_v6, %v235_v59 }
  0xf6   : > { %399 = vst [vmem:[%s174_s13 + $0x20] sm:$0xff] %v318_v7 }
  0xf7 PF: > { %s13_s12 = sadd.s32 1, %s539_s12  }
  0xf8   : > { %p10_p4 = scmp.ge.s32.totalorder %s13_s12, 4  }
  0xfa   :  { %12 = sbr.rel (!%p10_p4) target bundleno = 1 (0x1), region = 62 }

// kernel: decoder_forward.16
= control target key start
LH: loop header
LB: loop body
LE: loop exit
PB: predicated region body
PF: predicated region fallthrough
CT: control target
= control target key end

     0   :  { %s616_s21 = smov 0   ;;  %s702_s0 = inlined_call_operand.vmem [shape: f32[32,128], index: 0, kind: input, shape index: {}]   ;;  %s703_s1 = inlined_call_operand.vmem [shape: f32[128,128], index: 1, kind: input, shape index: {}]   ;;  %s704_s2 = inlined_call_operand.vmem [shape: f32[1,128], index: 2, kind: input, shape index: {}]   ;;  %s705_s3 = inlined_call_operand.vmem [shape: f32[32,128], index: 3, kind: input, shape index: {}]   ;;  %s706_s4 = inlined_call_operand.vmem [shape: f32[1,128], index: 4, kind: input, shape index: {}]   ;;  %s707_s5 = inlined_call_operand.vmem [shape: f32[1,128], index: 5, kind: input, shape index: {}]   ;;  %s708_s6 = inlined_call_operand.vmem [shape: f32[32,128], index: 6, kind: output, shape index: {}]  }
   0x1 LB: > { %s492_s22 = sadd.s32 4294967295, %s579_s21   ;;  %p496_p0 = scmp.ge.s32.totalorder %s579_s21, 1  ;;  %s579_s21 = sphi %s616_s21, %s16_s21  }
   0x2   : > { %p224_p1 = scmp.lt.s32.totalorder %s579_s21, 3 }
   0x4   : > { %p225_p2 = pnand %p496_p0, %p224_p1 }
   0x5   : > { %s497_s27 = sshll.u32 (!%p225_p2), %s492_s22, 1 }
   0x6   : > { %228 = sbr.rel (%p225_p2) target bundleno = 554 (0x22a), region = 44  ;;  %p260_p3 = scmp.lt.s32.totalorder (!%p225_p2), %s497_s27, 3 }
   0xb   : > { %v294_v0 = vld [vmem:[%s703_s1 + $0x78] sm:$0xff]  ;;  %v293_v1 = vld [vmem:[%s703_s1 + $0x70] sm:$0xff]  ;;  %v292_v2 = vld [vmem:[%s703_s1 + $0x68] sm:$0xff]  ;;  %s710_s27 = smov (!%p260_p3, %s497_s27), 3 }
   0xc   : > { %526 = vmatprep.subr.mxu0 %v294_v0  ;;  %v291_v3 = vld [vmem:[%s703_s1 + $0x60] sm:$0xff]  ;;  %s636_s8 = sshll.u32 %s710_s27, 3  ;;  %v290_v4 = vld [vmem:[%s703_s1 + $0x58] sm:$0xff]  ;;  %v289_v6 = vld [vmem:[%s703_s1 + $0x50] sm:$0xff] }
   0xd   : > { %527 = vmatpush3.msra.mxu0 %v294_v0  ;;  %s645_s13 = scalar_lea.vmem %s702_s0, %s636_s8  ;;  %v288_v7 = vld [vmem:[%s703_s1 + $0x48] sm:$0xff]  ;;  %v287_v8 = vld [vmem:[%s703_s1 + $0x40] sm:$0xff]  ;;  %v286_v9 = vld [vmem:[%s703_s1 + $0x38] sm:$0xff]  ;;  %s269_s17 = scalar_lea.vmem %s705_s3, %s636_s8 }
   0xe   : > { %528 = vmatprep.subr.mxu0 %v293_v1  ;;  %v277_v5 = vld [vmem:[%s645_s13] sm:$0xff]  ;;  %v285_v10 = vld [vmem:[%s703_s1 + $0x30] sm:$0xff]  ;;  %v284_v11 = vld [vmem:[%s703_s1 + $0x28] sm:$0xff]  ;;  %s275_s26 = scalar_lea.vmem %s708_s6, %s636_s8 }
   0xf   : > { %529 = vmatpush3.msra.mxu0 %v293_v1  ;;  %558 = vmatprep.mubr.f32.mxu0 %v277_v5  ;;  %v283_v12 = vld [vmem:[%s703_s1 + $0x20] sm:$0xff]  ;;  %v282_v13 = vld [vmem:[%s703_s1 + $0x18] sm:$0xff]  ;;  %v281_v14 = vld [vmem:[%s703_s1 + $0x10] sm:$0xff] }
  0x10   : > { %530 = vmatprep.subr.mxu0 %v292_v2  ;;  %v280_v15 = vld [vmem:[%s703_s1 + $0x8] sm:$0xff]  ;;  %v279_v16 = vld [vmem:[%s703_s1] sm:$0xff] }
  0x11   : > { %531 = vmatpush3.msra.mxu0 %v292_v2  ;;  %v278_v17 = vld [vmem:[%s645_s13 + $0x8] sm:$0xff]  ;;  %v503_v19 = vld [vmem:[%s704_s2] ss:$0 sm:$0xff] }
  0x12   : > { %532 = vmatprep.subr.mxu0 %v291_v3  ;;  %v377_v21 = vld [vmem:[%s269_s17] sm:$0xff]  ;;  %v378_v25 = vld [vmem:[%s269_s17 + $0x8] sm:$0xff] }
  0x13   : > { %533 = vmatpush3.msra.mxu0 %v291_v3  ;;  %v504_v42 = vld [vmem:[%s706_s4] ss:$0 sm:$0xff] }
  0x14   : > { %534 = vmatprep.subr.mxu0 %v290_v4  ;;  %v505_v44 = vld [vmem:[%s707_s5] ss:$0 sm:$0xff] }
  0x15   : > { %535 = vmatpush3.msra.mxu0 %v290_v4 }
  0x16   : > { %536 = vmatprep.subr.mxu0 %v289_v6 }
  0x17   : > { %537 = vmatpush3.msra.mxu0 %v289_v6 }
  0x18   : > { %538 = vmatprep.subr.mxu0 %v288_v7 }
  0x19   : > { %539 = vmatpush3.msra.mxu0 %v288_v7 }
  0x1a   : > { %540 = vmatprep.subr.mxu0 %v287_v8 }
  0x1b   : > { %541 = vmatpush3.msra.mxu0 %v287_v8 }
  0x1c   : > { %542 = vmatprep.subr.mxu0 %v286_v9 }
  0x1d   : > { %543 = vmatpush3.msra.mxu0 %v286_v9 }
  0x1e   : > { %544 = vmatprep.subr.mxu0 %v285_v10 }
  0x1f   : > { %545 = vmatpush3.msra.mxu0 %v285_v10 }
  0x20   : > { %546 = vmatprep.subr.mxu0 %v284_v11 }
  0x21   : > { %547 = vmatpush3.msra.mxu0 %v284_v11 }
  0x22   : > { %548 = vmatprep.subr.mxu0 %v283_v12 }
  0x23   : > { %549 = vmatpush3.msra.mxu0 %v283_v12 }
  0x24   : > { %550 = vmatprep.subr.mxu0 %v282_v13 }
  0x25   : > { %551 = vmatpush3.msra.mxu0 %v282_v13 }
  0x26   : > { %552 = vmatprep.subr.mxu0 %v281_v14 }
  0x27   : > { %553 = vmatpush3.msra.mxu0 %v281_v14 }
  0x28   : > { %554 = vmatprep.subr.mxu0 %v280_v15 }
  0x29   : > { %555 = vmatpush3.msra.mxu0 %v280_v15 }
  0x2a   : > { %556 = vmatprep.subr.mxu0 %v279_v16 }
  0x2b   : > { %557 = vmatpush3.msra.mxu0 %v279_v16 }
  0x2c   : > { %559 = vmatmul.mubr.f32.vlgmr.msra.gmra.mxu0 %v278_v17 }
  0xec   : > { %v560_v18 = vpop.f32.mrf.mxu0 }
  0xed   : > { %v374_v23 = vadd.f32 %v560_v18, %v503_v19 }
  0xee   : > { %v368_v20 = vpop.f32.mrf.mxu0 }
  0xef   : > { %v369_v22 = vadd.f32 %v503_v19, %v368_v20  ;;  %v380_v26 = vadd.f32 %v378_v25, %v374_v23 }
  0xf1   : > { %v379_v24 = vadd.f32 %v377_v21, %v369_v22 }
  0xf3   : > { %383 = vadd.xlane.f32.xlu0 %v379_v24 }
  0xf7   : > { %385 = vadd.xlane.f32.xlu0 %v380_v26 }
 0x17c   : > { %v384_v27 = vpop.xlane.xlu0 %383 }
 0x17d   : > { %v388_v28 = vmul.f32 0.0078125, %v384_v27 }
 0x17f   : > { %v390_v29 = vsub.f32 %v379_v24, %v388_v28 }
 0x180   : > { %v386_v30 = vpop.xlane.xlu0 %385 }
 0x181   : > { %v389_v31 = vmul.f32 0.0078125, %v386_v30  ;;  %v392_v32 = vmul.f32 %v390_v29, %v390_v29 }
 0x183   : > { %v391_v33 = vsub.f32 %v380_v26, %v389_v31  ;;  %394 = vadd.xlane.f32.xlu1 %v392_v32 }
 0x185   : > { %v393_v34 = vmul.f32 %v391_v33, %v391_v33 }
 0x187   : > { %396 = vadd.xlane.f32.xlu1 %v393_v34 }
 0x20c   : > { %v395_v35 = vpop.xlane.xlu1 %394 }
 0x20d   : > { %v398_v36 = vmul.f32 0.0078125, %v395_v35 }
 0x20f   : > { %v400_v37 = vadd.f32 1e-05, %v398_v36 }
 0x210   : > { %v397_v38 = vpop.xlane.xlu1 %396 }
 0x211   : > { %569 = vrsqrt.f32 %v400_v37  ;;  %v399_v39 = vmul.f32 0.0078125, %v397_v38 }
 0x213   : > { %v401_v40 = vadd.f32 1e-05, %v399_v39 }
 0x215   : > { %571 = vrsqrt.f32 %v401_v40 }
 0x21e   : > { %v570_v41 = vpop.eup %569 }
 0x21f   : > { %v404_v43 = vmul.f32 %v570_v41, %v390_v29 }
 0x221   : > { %v412_v45 = vmul.f32 %v504_v42, %v404_v43 }
 0x222   : > { %v572_v46 = vpop.eup %571 }
 0x223   : > { %v420_v47 = vadd.f32 %v505_v44, %v412_v45  ;;  %v405_v48 = vmul.f32 %v572_v46, %v391_v33 }
 0x225   : > { %422 = vst [vmem:[%s275_s26] sm:$0xff] %v420_v47  ;;  %v413_v49 = vmul.f32 %v504_v42, %v405_v48 }
 0x227   : > { %v421_v50 = vadd.f32 %v505_v44, %v413_v49 }
 0x229   : > { %423 = vst [vmem:[%s275_s26 + $0x8] sm:$0xff] %v421_v50 }
 0x22a PF: > { %s16_s21 = sadd.s32 1, %s579_s21  }
 0x22b   : > { %p13_p4 = scmp.ge.s32.totalorder %s16_s21, 4  }
 0x22d   :  { %15 = sbr.rel (!%p13_p4) target bundleno = 1 (0x1), region = 77 }

// kernel: decoder_forward.15
= control target key start
LH: loop header
LB: loop body
LE: loop exit
PB: predicated region body
PF: predicated region fallthrough
CT: control target
= control target key end

     0   :  { %s1244_s9 = smov 0   ;;  %s1396_s0 = inlined_call_operand.vmem [shape: f32[2,16,384], index: 0, kind: input, shape index: {}]   ;;  %s1397_s1 = inlined_call_operand.vmem [shape: f32[16,16], index: 1, kind: input, shape index: {}]   ;;  %s1398_s2 = inlined_call_operand.vmem [shape: f32[2,16,128], index: 2, kind: output, shape index: {}]  }
   0x1 LB: > { %s1051_s10 = sadd.s32 4294967295, %s1224_s9   ;;  %p1055_p0 = scmp.ge.s32.totalorder %s1224_s9, 1  ;;  %s1224_s9 = sphi %s1244_s9, %s12_s9  }
   0x2   : > { %p112_p1 = scmp.lt.s32.totalorder %s1224_s9, 3 }
   0x4   : > { %p113_p2 = pnand %p1055_p0, %p112_p1 }
   0x5   : > { %p134_p3 = scmp.lt.s32.totalorder (!%p113_p2), %s1051_s10, 1  ;;  %s1226_s15 = smov (!%p113_p2), 96  }
   0x6   : > { %116 = sbr.rel (%p113_p2) target bundleno = 1907 (0x773), region = 28  ;;  %s1227_s16 = smov (!%p113_p2), 64  }
   0x7   : > { %s1228_s17 = smov (!%p113_p2), 32  }
   0xb   : > { %s1400_s10 = smov (!%p134_p3, %s1051_s10), 1  ;;  %vm154_vm0 = vcmask 261120   ;;  %v1276_v5 = vld [vmem:[%s1397_s1 + $0x8] sm:$0xff]  ;;  %vm242_vm1 = vcmask 130048   ;;  %v1281_v8 = vld [vmem:[%s1397_s1] sm:$0xff]  ;;  %vm991_vm2 = vcmask 785408  }
   0xc   : > { %s1174_s11 = smul.u32 48, %s1400_s10  ;;  %s1085_s22 = sshll.u32 %s1400_s10, 4  ;;  %vm988_vm3 = vcmask 523264  }
   0xd   : > { %s143_s25 = scalar_lea.vmem %s1398_s2, %s1085_s22 }
   0xe   : > { %s1258_s14 = scalar_lea.vmem %s1396_s0, %s1174_s11 }
   0xf   : > { %v147_v0 = vld [vmem:[%s1258_s14 + $0x18] sm:$0xff]  ;;  %v146_v1 = vld [vmem:[%s1258_s14] sm:$0xff]  ;;  %v352_v16 = vld [vmem:[%s1258_s14 + $0x8] sm:$0xff] }
  0x10   : > { %152 = vrot.lane.b32.xlu0 %v147_v0, %s1226_s15  ;;  %1122 = vmatprep.mubr.msk.f32.mxu0 %vm154_vm0, %v146_v1  ;;  %v353_v15 = vld [vmem:[%s1258_s14 + $0x20] sm:$0xff]  ;;  %v557_v52 = vld [vmem:[%s1258_s14 + $0x28] sm:$0xff]  ;;  %v556_v53 = vld [vmem:[%s1258_s14 + $0x10] sm:$0xff] }
  0x14   : > { %150 = vrot.lane.b32.xlu0 %v146_v1, %s1226_s15 }
  0x18   : > { %257 = vrot.lane.b32.xlu0 %v147_v0, %s1227_s16 }
  0x1c   : > { %354 = vrot.lane.b32.xlu0 %v146_v1, %s1228_s17 }
  0x20   : > { %356 = vrot.lane.b32.xlu0 %v147_v0, %s1228_s17 }
  0x24   : > { %461 = vrot.lane.b32.xlu0 %v353_v15, %s1226_s15 }
  0x82   : > { %v153_v2 = vpop.permute.xlu0 %152 }
  0x83   : > { %1118 = vmatprep.subr.msk.mxu0 %vm154_vm0, %v153_v2 }
  0x84   : > { %1119 = vmatpush3.xpose.msk.msra.mxu0 %vm154_vm0, %v153_v2 }
  0x86   : > { %v151_v3 = vpop.permute.xlu0 %150 }
  0x87   : > { %1120 = vmatprep.subr.msk.mxu0 %vm154_vm0, %v151_v3 }
  0x88   : > { %1121 = vmatpush3.xpose.msk.msra.mxu0 %vm154_vm0, %v151_v3 }
  0x8a   : > { %v258_v14 = vpop.permute.xlu0 %257 }
  0x8b   : > { %1123 = vmatmul.mubr.msk.f32.vlgmr.msra.gmra.mxu0 %vm154_vm0, %v147_v0  ;;  %1125 = vmatprep.subr.mxu1 %v258_v14 }
  0x8c   : > { %1126 = vmatpush3.msra.mxu1 %v258_v14 }
  0x8e   : > { %v355_v25 = vpop.permute.xlu0 %354 }
  0x92   : > { %v357_v27 = vpop.permute.xlu0 %356 }
  0x96   : > { %v462_v28 = vpop.permute.xlu0 %461 }
  0x97   : > { %1139 = vmatprep.subr.mxu0 %v462_v28 }
  0x98   : > { %1140 = vmatpush3.msra.mxu0 %v462_v28 }
 0x14b   : > { %v1124_v4 = vpop.f32.mrf.mxu0 }
 0x14c   : > { %v239_v6 = vmul.f32 0.17677669, %v1124_v4 }
 0x14d   : > { %v229_v7 = vpop.f32.mrf.mxu0 }
 0x14e   : > { %v238_v9 = vmul.f32 0.17677669, %v229_v7  ;;  %v241_v10 = vadd.f32 %v239_v6, %v1276_v5 }
 0x150   : > { %v246_v11 = vsel %vm242_vm1, %v241_v10, -inf  ;;  %v240_v12 = vadd.f32 %v238_v9, %v1281_v8 }
 0x151   : > { %247 = vmax.xlane.f32.xlu1 %v246_v11 }
 0x152   : > { %v243_v13 = vsel %vm242_vm1, %v240_v12, -inf }
 0x155   : > { %244 = vmax.xlane.f32.xlu1 %v243_v13 }
 0x166   : > { %255 = vrot.lane.b32.xlu1 %v146_v1, %s1227_s16 }
 0x16a   : > { %459 = vrot.lane.b32.xlu1 %v352_v16, %s1226_s15 }
 0x1da   : > { %v248_v17 = vpop.xlane.xlu1 %247 }
 0x1db   : > { %v250_v18 = vsub.f32 %v241_v10, %v248_v17 }
 0x1dd   : > { %v253_v21 = vmul.f32 1.442695, %v250_v18 }
 0x1de   : > { %v245_v19 = vpop.xlane.xlu1 %244 }
 0x1df   : > { %v249_v20 = vsub.f32 %v240_v12, %v245_v19 }
 0x1e1   : > { %v251_v22 = vmul.f32 1.442695, %v249_v20 }
 0x1e2   : > { %v256_v23 = vpop.permute.xlu1 %255 }
 0x1e3   : > { %1186 = vpow2.f32 %v251_v22  ;;  %1127 = vmatprep.subr.mxu1 %v256_v23 }
 0x1e4   : > { %1188 = vpow2.f32 %v253_v21  ;;  %1128 = vmatpush3.msra.mxu1 %v256_v23 }
 0x1e5   : > { %1132 = vmatprep.subr.msk.mxu1 %vm154_vm0, %v353_v15 }
 0x1e6   : > { %v460_v29 = vpop.permute.xlu1 %459 }
 0x1e7   : > { %1141 = vmatprep.subr.mxu0 %v460_v29 }
 0x1e8   : > { %1142 = vmatpush3.msra.mxu0 %v460_v29 }
 0x1f0   : > { %v1293_v24 = vpop.eup %1186 }
 0x1f1   : > { %v1295_v26 = vpop.eup %1188  ;;  %1129 = vmatprep.mubr.msk.f32.mxu1 %vm242_vm1, %v1293_v24 }
 0x1f2   : > { %1130 = vmatmul.mubr.msk.f32.vlgmr.msra.gmra.mxu1 %vm242_vm1, %v1295_v26 }
 0x1f3   : > { %1133 = vmatpush3.xpose.msk.msra.mxu1 %vm154_vm0, %v353_v15  ;;  %1136 = vmatprep.mubr.msk.f32.mxu1 %vm154_vm0, %v355_v25 }
 0x1f4   : > { %1134 = vmatprep.subr.msk.mxu1 %vm154_vm0, %v352_v16 }
 0x1f7   : > { %1135 = vmatpush3.xpose.msk.msra.mxu1 %vm154_vm0, %v352_v16 }
 0x1f8   : > { %1153 = vmatprep.subr.mxu1 %v557_v52 }
 0x1fa   : > { %1137 = vmatmul.mubr.msk.f32.vlgmr.msra.gmra.mxu1 %vm154_vm0, %v357_v27 }
 0x1fb   : > { %1154 = vmatpush3.msra.mxu1 %v557_v52 }
 0x1fc   : > { %1155 = vmatprep.subr.mxu1 %v556_v53 }
 0x1fd   : > { %1156 = vmatpush3.msra.mxu1 %v556_v53 }
 0x2b2   : > { %v1306_v30 = vpop.f32.mrf.mxu1 }
 0x2b4   : > { %v1308_v31 = vpop.f32.mrf.mxu1 }
 0x2ba   : > { %v1138_v32 = vpop.f32.mrf.mxu1 }
 0x2bb   : > { %v444_v33 = vmul.f32 0.17677669, %v1138_v32 }
 0x2bc   : > { %v434_v34 = vpop.f32.mrf.mxu1 }
 0x2bd   : > { %v443_v35 = vmul.f32 0.17677669, %v434_v34  ;;  %v446_v36 = vadd.f32 %v444_v33, %v1276_v5 }
 0x2bf   : > { %v450_v37 = vsel %vm242_vm1, %v446_v36, -inf  ;;  %v445_v38 = vadd.f32 %v443_v35, %v1281_v8 }
 0x2c0   : > { %451 = vmax.xlane.f32.xlu1 %v450_v37 }
 0x2c1   : > { %v447_v39 = vsel %vm242_vm1, %v445_v38, -inf }
 0x2c2   : > { %448 = vmax.xlane.f32.xlu0 %v447_v39 }
 0x2d1   : > { %558 = vrot.lane.b32.xlu1 %v352_v16, %s1227_s16 }
 0x2d8   : > { %564 = vrot.lane.b32.xlu0 %v353_v15, %s1228_s17 }
 0x2dc   : > { %562 = vrot.lane.b32.xlu0 %v352_v16, %s1228_s17 }
 0x2e0   : > { %560 = vrot.lane.b32.xlu0 %v353_v15, %s1227_s16 }
 0x349   : > { %v452_v40 = vpop.xlane.xlu1 %451 }
 0x34a   : > { %v454_v41 = vsub.f32 %v446_v36, %v452_v40 }
 0x34b   : > { %v449_v42 = vpop.xlane.xlu0 %448 }
 0x34c   : > { %v453_v43 = vsub.f32 %v445_v38, %v449_v42  ;;  %v457_v44 = vmul.f32 1.442695, %v454_v41  ;;  %v345_v42 = vsel %vm242_vm1, %v1295_v26, 0.0 }
 0x34d   : > { %v559_v48 = vpop.permute.xlu1 %558 }
 0x34e   : > { %v455_v45 = vmul.f32 1.442695, %v453_v43  ;;  %v342_v43 = vsel %vm242_vm1, %v1293_v24, 0.0 }
 0x34f   : > { %v565_v46 = vpop.permute.xlu0 %564 }
 0x350   : > { %1190 = vpow2.f32 %v455_v45  ;;  %1146 = vmatprep.subr.msk.mxu0 %vm154_vm0, %v565_v46 }
 0x351   : > { %1192 = vpow2.f32 %v457_v44 }
 0x353   : > { %v563_v50 = vpop.permute.xlu0 %562 }
 0x357   : > { %v561_v51 = vpop.permute.xlu0 %560 }
 0x35d   : > { %v1319_v47 = vpop.eup %1190 }
 0x35e   : > { %v1321_v49 = vpop.eup %1192  ;;  %1143 = vmatprep.mubr.msk.f32.mxu0 %vm242_vm1, %v1319_v47  ;;  %v546_v27 = vsel %vm242_vm1, %v1319_v47, 0.0 }
 0x35f   : > { %1144 = vmatmul.mubr.msk.f32.vlgmr.msra.gmra.mxu0 %vm242_vm1, %v1321_v49  ;;  %v549_v25 = vsel %vm242_vm1, %v1321_v49, 0.0 }
 0x360   : > { %1147 = vmatpush3.xpose.msk.msra.mxu0 %vm154_vm0, %v565_v46  ;;  %1150 = vmatprep.mubr.msk.f32.mxu0 %vm154_vm0, %v559_v48 }
 0x361   : > { %1148 = vmatprep.subr.msk.mxu0 %vm154_vm0, %v563_v50 }
 0x364   : > { %1149 = vmatpush3.xpose.msk.msra.mxu0 %vm154_vm0, %v563_v50 }
 0x367   : > { %1151 = vmatmul.mubr.msk.f32.vlgmr.msra.gmra.mxu0 %vm154_vm0, %v561_v51 }
 0x41f   : > { %v1334_v54 = vpop.f32.mrf.mxu0 }
 0x421   : > { %v1336_v55 = vpop.f32.mrf.mxu0 }
 0x427   : > { %v1152_v56 = vpop.f32.mrf.mxu0 }
 0x428   : > { %v650_v57 = vmul.f32 0.17677669, %v1152_v56 }
 0x429   : > { %v640_v58 = vpop.f32.mrf.mxu0 }
 0x42a   : > { %v649_v59 = vmul.f32 0.17677669, %v640_v58  ;;  %v652_v60 = vadd.f32 %v650_v57, %v1276_v5 }
 0x42c   : > { %v656_v61 = vsel %vm242_vm1, %v652_v60, -inf  ;;  %v651_v62 = vadd.f32 %v649_v59, %v1281_v8 }
 0x42d   : > { %657 = vmax.xlane.f32.xlu0 %v656_v61 }
 0x42e   : > { %v653_v63 = vsel %vm242_vm1, %v651_v62, -inf }
 0x42f   : > { %654 = vmax.xlane.f32.xlu1 %v653_v63 }
 0x440   : > { %762 = vrot.lane.b32.xlu1 %v556_v53, %s1227_s16 }
 0x443   : > { %764 = vrot.lane.b32.xlu0 %v557_v52, %s1227_s16 }
 0x444   : > { %758 = vrot.lane.b32.xlu1 %v556_v53, %s1226_s15 }
 0x447   : > { %760 = vrot.lane.b32.xlu0 %v557_v52, %s1226_s15 }
 0x4b6   : > { %v658_v0 = vpop.xlane.xlu0 %657 }
 0x4b7   : > { %v660_v1 = vsub.f32 %v652_v60, %v658_v0 }
 0x4b8   : > { %v655_v2 = vpop.xlane.xlu1 %654 }
 0x4b9   : > { %v659_v3 = vsub.f32 %v651_v62, %v655_v2  ;;  %v663_v4 = vmul.f32 1.442695, %v660_v1 }
 0x4ba   : > { %v765_v6 = vpop.permute.xlu0 %764 }
 0x4bb   : > { %v661_v7 = vmul.f32 1.442695, %v659_v3  ;;  %1160 = vmatprep.subr.msk.mxu1 %vm154_vm0, %v765_v6 }
 0x4bc   : > { %v763_v9 = vpop.permute.xlu1 %762 }
 0x4bd   : > { %1194 = vpow2.f32 %v661_v7 }
 0x4be   : > { %1196 = vpow2.f32 %v663_v4  ;;  %v761_v13 = vpop.permute.xlu0 %760 }
 0x4c0   : > { %v759_v11 = vpop.permute.xlu1 %758 }
 0x4ca   : > { %v1195_v10 = vpop.eup %1194 }
 0x4cb   : > { %v1197_v12 = vpop.eup %1196  ;;  %1157 = vmatprep.mubr.msk.f32.mxu1 %vm242_vm1, %v1195_v10 }
 0x4cc   : > { %1158 = vmatmul.mubr.msk.f32.vlgmr.msra.gmra.mxu1 %vm242_vm1, %v1197_v12 }
 0x4cd   : > { %1161 = vmatpush3.xpose.msk.msra.mxu1 %vm154_vm0, %v765_v6  ;;  %1164 = vmatprep.mubr.msk.f32.mxu1 %vm154_vm0, %v759_v11 }
 0x4ce   : > { %1162 = vmatprep.subr.msk.mxu1 %vm154_vm0, %v763_v9 }
 0x4d1   : > { %1163 = vmatpush3.xpose.msk.msra.mxu1 %vm154_vm0, %v763_v9 }
 0x4d4   : > { %1165 = vmatmul.mubr.msk.f32.vlgmr.msra.gmra.mxu1 %vm154_vm0, %v761_v13 }
 0x58c   : > { %v1354_v14 = vpop.f32.mrf.mxu1 }
 0x58e   : > { %v737_v15 = vpop.f32.mrf.mxu1 }
 0x594   : > { %v1166_v16 = vpop.f32.mrf.mxu1 }
 0x595   : > { %v850_v17 = vmul.f32 0.17677669, %v1166_v16 }
 0x596   : > { %v840_v18 = vpop.f32.mrf.mxu1 }
 0x597   : > { %v849_v19 = vmul.f32 0.17677669, %v840_v18  ;;  %v852_v20 = vadd.f32 %v850_v17, %v1276_v5  ;;  %v746_v5 = vsel %vm242_vm1, %v1195_v10, 0.0 }
 0x599   : > { %v851_v21 = vadd.f32 %v849_v19, %v1281_v8  ;;  %v856_v22 = vsel %vm242_vm1, %v852_v20, -inf  ;;  %v749_v8 = vsel %vm242_vm1, %v1197_v12, 0.0 }
 0x59a   : > { %857 = vmax.xlane.f32.xlu0 %v856_v22 }
 0x59b   : > { %v853_v23 = vsel %vm242_vm1, %v851_v21, -inf }
 0x59c   : > { %854 = vmax.xlane.f32.xlu1 %v853_v23 }
 0x5ad   : > { %865 = vrot.lane.b32.xlu1 %v556_v53, %s1228_s17 }
 0x5b0   : > { %867 = vrot.lane.b32.xlu0 %v557_v52, %s1228_s17 }
 0x5cf   : > { %550 = vadd.xlane.f32.xlu0 %v549_v25 }
 0x5d1   : > { %547 = vadd.xlane.f32.xlu1 %v546_v27 }
 0x5d3   : > { %747 = vadd.xlane.f32.xlu0 %v746_v5 }
 0x5d5   : > { %750 = vadd.xlane.f32.xlu1 %v749_v8 }
 0x623   : > { %v858_v28 = vpop.xlane.xlu0 %857 }
 0x624   : > { %v860_v29 = vsub.f32 %v852_v20, %v858_v28 }
 0x625   : > { %v855_v32 = vpop.xlane.xlu1 %854 }
 0x626   : > { %v863_v33 = vmul.f32 1.442695, %v860_v29  ;;  %v859_v34 = vsub.f32 %v851_v21, %v855_v32 }
 0x627   : > { %v868_v35 = vpop.permute.xlu0 %867 }
 0x628   : > { %1198 = vpow2.f32 %v863_v33  ;;  %v861_v36 = vmul.f32 1.442695, %v859_v34  ;;  %1167 = vmatprep.subr.mxu0 %v868_v35 }
 0x629   : > { %1168 = vmatpush3.msra.mxu0 %v868_v35  ;;  %v866_v37 = vpop.permute.xlu1 %865 }
 0x62a   : > { %1200 = vpow2.f32 %v861_v36  ;;  %1169 = vmatprep.subr.mxu0 %v866_v37 }
 0x62b   : > { %1170 = vmatpush3.msra.mxu0 %v866_v37 }
 0x635   : > { %v1199_v38 = vpop.eup %1198 }
 0x636   : > { %v955_v39 = vsel %vm242_vm1, %v1199_v38, 0.0 }
 0x637   : > { %v1201_v40 = vpop.eup %1200  ;;  %956 = vadd.xlane.f32.xlu1 %v955_v39 }
 0x638   : > { %1171 = vmatprep.mubr.msk.f32.mxu0 %vm242_vm1, %v1201_v40  ;;  %v952_v41 = vsel %vm242_vm1, %v1201_v40, 0.0 }
 0x639   : > { %953 = vadd.xlane.f32.xlu0 %v952_v41  ;;  %1172 = vmatmul.mubr.msk.f32.vlgmr.msra.gmra.mxu0 %vm242_vm1, %v1199_v38 }
 0x63b   : > { %346 = vadd.xlane.f32.xlu1 %v345_v42 }
 0x63d   : > { %343 = vadd.xlane.f32.xlu0 %v342_v43 }
 0x658   : > { %v551_v44 = vpop.xlane.xlu0 %550 }
 0x659   : > { %1202 = vrcp.f32 %v551_v44 }
 0x65a   : > { %v548_v45 = vpop.xlane.xlu1 %547 }
 0x65b   : > { %1204 = vrcp.f32 %v548_v45 }
 0x65c   : > { %v748_v46 = vpop.xlane.xlu0 %747 }
 0x65d   : > { %1206 = vrcp.f32 %v748_v46 }
 0x65e   : > { %v751_v47 = vpop.xlane.xlu1 %750 }
 0x65f   : > { %1208 = vrcp.f32 %v751_v47 }
 0x666   : > { %v1203_v48 = vpop.eup %1202 }
 0x667   : > { %v555_v49 = vmul.f32 %v1203_v48, %v1334_v54 }
 0x668   : > { %v1205_v50 = vpop.eup %1204 }
 0x669   : > { %966 = vrot.lane.b32.xlu1 %v555_v49, %s1228_s17  ;;  %v554_v26 = vmul.f32 %v1205_v50, %v1336_v55 }
 0x66a   : > { %v1207_v51 = vpop.eup %1206 }
 0x66b   : > { %964 = vrot.lane.b32.xlu0 %v554_v26, %s1228_s17  ;;  %v754_v24 = vmul.f32 %v1207_v51, %v737_v15 }
 0x66c   : > { %v1209_v52 = vpop.eup %1208 }
 0x66d   : > { %972 = vrot.lane.b32.xlu1 %v754_v24, %s1227_s16  ;;  %v755_v53 = vmul.f32 %v1209_v52, %v1354_v14 }
 0x66f   : > { %974 = vrot.lane.b32.xlu0 %v755_v53, %s1227_s16 }
 0x6c0   : > { %v957_v56 = vpop.xlane.xlu1 %956 }
 0x6c1   : > { %1210 = vrcp.f32 %v957_v56 }
 0x6c2   : > { %v954_v57 = vpop.xlane.xlu0 %953 }
 0x6c3   : > { %1212 = vrcp.f32 %v954_v57 }
 0x6c4   : > { %v347_v62 = vpop.xlane.xlu1 %346 }
 0x6c5   : > { %1214 = vrcp.f32 %v347_v62 }
 0x6c6   : > { %v344_v63 = vpop.xlane.xlu0 %343 }
 0x6c7   : > { %1216 = vrcp.f32 %v344_v63 }
 0x6ce   : > { %v1211_v54 = vpop.eup %1210 }
 0x6d0   : > { %v1213_v55 = vpop.eup %1212 }
 0x6d2   : > { %v1215_v2 = vpop.eup %1214 }
 0x6d3   : > { %v351_v6 = vmul.f32 %v1215_v2, %v1306_v30 }
 0x6d4   : > { %v1217_v3 = vpop.eup %1216 }
 0x6d5   : > { %v350_v7 = vmul.f32 %v1217_v3, %v1308_v31 }
 0x6db   : > { %v967_v1 = vpop.permute.xlu1 %966 }
 0x6dc   : > { %v987_v10 = vsel %vm154_vm0, %v351_v6, %v967_v1 }
 0x6dd   : > { %v965_v0 = vpop.permute.xlu0 %964 }
 0x6de   : > { %v986_v11 = vsel %vm154_vm0, %v350_v7, %v965_v0 }
 0x6df   : > { %v973_v9 = vpop.permute.xlu1 %972 }
 0x6e0   : > { %v989_v15 = vsel %vm988_vm3, %v986_v11, %v973_v9 }
 0x6e1   : > { %v975_v4 = vpop.permute.xlu0 %974 }
 0x6e2   : > { %v990_v12 = vsel %vm988_vm3, %v987_v10, %v975_v4 }
 0x6f9   : > { %v1173_v58 = vpop.f32.mrf.mxu0 }
 0x6fa   : > { %v961_v59 = vmul.f32 %v1211_v54, %v1173_v58 }
 0x6fb   : > { %v943_v60 = vpop.f32.mrf.mxu0 }
 0x6fc   : > { %v960_v61 = vmul.f32 %v1213_v55, %v943_v60  ;;  %982 = vrot.lane.b32.xlu0 %v961_v59, %s1226_s15 }
 0x6fe   : > { %980 = vrot.lane.b32.xlu1 %v960_v61, %s1226_s15 }
 0x76e   : > { %v983_v13 = vpop.permute.xlu0 %982 }
 0x76f   : > { %v993_v14 = vsel %vm991_vm2, %v990_v12, %v983_v13 }
 0x770   : > { %995 = vst [vmem:[%s143_s25 + $0x8] sm:$0xff] %v993_v14  ;;  %v981_v16 = vpop.permute.xlu1 %980 }
 0x771   : > { %v992_v30 = vsel %vm991_vm2, %v989_v15, %v981_v16 }
 0x772   : > { %994 = vst [vmem:[%s143_s25] sm:$0xff] %v992_v30 }
 0x773 PF: > { %s12_s9 = sadd.s32 1, %s1224_s9  }
 0x774   : > { %p9_p4 = scmp.ge.s32.totalorder %s12_s9, 4  }
 0x776   :  { %11 = sbr.rel (!%p9_p4) target bundleno = 1 (0x1), region = 58 }

// kernel: decoder_forward.20
= control target key start
LH: loop header
LB: loop body
LE: loop exit
PB: predicated region body
PF: predicated region fallthrough
CT: control target
= control target key end

     0   :  { %s988_s27 = smov 0   ;;  %s990_s28 = smov 0   ;;  %s1248_s0 = inlined_call_operand.vmem [shape: f32[32,128], index: 0, kind: input, shape index: {}, may-alias: {0,5}]   ;;  %s1249_s1 = inlined_call_operand.vmem [shape: f32[128,256], index: 1, kind: input, shape index: {}]   ;;  %s1250_s2 = inlined_call_operand.vmem [shape: f32[1,256], index: 2, kind: input, shape index: {}]   ;;  %s1251_s3 = inlined_call_operand.vmem [shape: f32[256,128], index: 3, kind: input, shape index: {}]   ;;  %s1252_s4 = inlined_call_operand.vmem [shape: f32[1,128], index: 4, kind: input, shape index: {}]   ;;  %s1253_s5 = inlined_call_operand.vmem [shape: f32[32,128], index: 5, kind: input, shape index: {}, may-alias: {0,5}]   ;;  %s1254_s6 = inlined_call_operand.vmem [shape: f32[1,128], index: 6, kind: input, shape index: {}]   ;;  %s1255_s7 = inlined_call_operand.vmem [shape: f32[1,128], index: 7, kind: input, shape index: {}]   ;;  %s1256_s8 = inlined_call_operand.vmem [shape: f32[32,128], index: 8, kind: output, shape index: {}]  }
   0x1   :  { %s992_s29 = smov 0  }
   0x2 LB: > { %s30_s30 = sadd.s32 1, %s936_s28  ;;  %p839_p0 = scmp.ge.s32.totalorder %s940_s29, 1  ;;  %s940_s29 = sphi %s992_s29, %s18_s29   ;;  %s936_s28 = sphi %s990_s28, %s1259_s28   ;;  %s932_s27 = sphi %s988_s27, %s1258_s27  }
   0x3   : > { %p32_p1 = scmp.ge.s32.totalorder %s30_s30, 2  ;;  %p318_p2 = scmp.lt.s32.totalorder %s940_s29, 3 }
   0x5   : > { %s1261_s30 = smov (%p32_p1, %s30_s30), 0  ;;  %p319_p3 = pnand %p839_p0, %p318_p2 }
   0x6   : > { %s840_s13 = sshll.u32 (!%p319_p3), %s932_s27, 1 }
   0x7   : > { %322 = sbr.rel (%p319_p3) target bundleno = 757 (0x2f5), region = 52  ;;  %p1090_p4 = scmp.lt.s32.totalorder (!%p319_p3), %s840_s13, 3 }
   0xc   : > { %v445_v0 = vld [vmem:[%s1249_s1 + $0xf8] sm:$0xff]  ;;  %v444_v1 = vld [vmem:[%s1249_s1 + $0xf0] sm:$0xff]  ;;  %v443_v2 = vld [vmem:[%s1249_s1 + $0xe8] sm:$0xff]  ;;  %v942_v4 = vmov 0.0   ;;  %s1263_s13 = smov (!%p1090_p4, %s840_s13), 3 }
   0xd   : > { %458 = vmatprep.subr.mxu0 %v445_v0  ;;  %v442_v3 = vld [vmem:[%s1249_s1 + $0xe0] sm:$0xff]  ;;  %522 = vmatprep.mubr.f32.mxu0 %v942_v4  ;;  %v441_v5 = vld [vmem:[%s1249_s1 + $0xd8] sm:$0xff]  ;;  %v440_v6 = vld [vmem:[%s1249_s1 + $0xd0] sm:$0xff]  ;;  %s1146_s24 = sshll.u32 %s1263_s13, 3 }
   0xe   : > { %459 = vmatpush1.msra.mxu0 %v444_v1  ;;  %v439_v7 = vld [vmem:[%s1249_s1 + $0xc8] sm:$0xff]  ;;  %v438_v8 = vld [vmem:[%s1249_s1 + $0xc0] sm:$0xff]  ;;  %v437_v9 = vld [vmem:[%s1249_s1 + $0xb8] sm:$0xff]  ;;  %s375_s20 = scalar_lea.vmem %s1248_s0, %s1146_s24  ;;  %s398_s22 = scalar_lea.vmem %s1253_s5, %s1146_s24 }
   0xf   : > { %460 = vmatprep.subr.mxu0 %v443_v2  ;;  %v436_v10 = vld [vmem:[%s1249_s1 + $0xb0] sm:$0xff]  ;;  %v435_v11 = vld [vmem:[%s1249_s1 + $0xa8] sm:$0xff]  ;;  %v434_v12 = vld [vmem:[%s1249_s1 + $0xa0] sm:$0xff]  ;;  %s404_s15 = scalar_lea.vmem %s1256_s8, %s1146_s24 }
  0x10   : > { %461 = vmatpush1.msra.mxu0 %v442_v3  ;;  %v433_v13 = vld [vmem:[%s1249_s1 + $0x98] sm:$0xff]  ;;  %v432_v14 = vld [vmem:[%s1249_s1 + $0x90] sm:$0xff]  ;;  %v431_v17 = vld [vmem:[%s1249_s1 + $0x88] sm:$0xff]  ;;  %v448_v3 = vlaneseq }
  0x11   : > { %462 = vmatprep.subr.mxu0 %v441_v5  ;;  %v572_v15 = vld [vmem:[%s1251_s3 + $0xf8] sm:$0xff]  ;;  %v571_v18 = vld [vmem:[%s1251_s3 + $0xf0] sm:$0xff]  ;;  %v430_v20 = vld [vmem:[%s1249_s1 + $0x80] sm:$0xff] }
  0x12   : > { %463 = vmatpush1.msra.mxu0 %v440_v6  ;;  %v556_v16 = vld [vmem:[%s1251_s3 + $0x78] sm:$0xff]  ;;  %851 = vmatprep.subr.mxu1 %v572_v15  ;;  %v555_v19 = vld [vmem:[%s1251_s3 + $0x70] sm:$0xff]  ;;  %v570_v21 = vld [vmem:[%s1251_s3 + $0xe8] sm:$0xff] }
  0x13   : > { %464 = vmatprep.subr.mxu0 %v439_v7  ;;  %852 = vmatpush3.msra.mxu1 %v556_v16  ;;  %v429_v22 = vld [vmem:[%s1249_s1 + $0x78] sm:$0xff]  ;;  %v554_v23 = vld [vmem:[%s1251_s3 + $0x68] sm:$0xff]  ;;  %v428_v24 = vld [vmem:[%s1249_s1 + $0x70] sm:$0xff] }
  0x14   : > { %465 = vmatpush1.msra.mxu0 %v438_v8  ;;  %853 = vmatprep.subr.mxu1 %v571_v18  ;;  %v569_v25 = vld [vmem:[%s1251_s3 + $0xe0] sm:$0xff]  ;;  %v427_v26 = vld [vmem:[%s1249_s1 + $0x68] sm:$0xff]  ;;  %v568_v29 = vld [vmem:[%s1251_s3 + $0xd8] sm:$0xff] }
  0x15   : > { %466 = vmatprep.subr.mxu0 %v437_v9  ;;  %854 = vmatpush3.msra.mxu1 %v555_v19  ;;  %v553_v27 = vld [vmem:[%s1251_s3 + $0x60] sm:$0xff]  ;;  %v425_v30 = vld [vmem:[%s1249_s1 + $0x58] sm:$0xff]  ;;  %v424_v32 = vld [vmem:[%s1249_s1 + $0x50] sm:$0xff] }
  0x16   : > { %467 = vmatpush1.msra.mxu0 %v436_v10  ;;  %855 = vmatprep.subr.mxu1 %v570_v21  ;;  %v426_v28 = vld [vmem:[%s1249_s1 + $0x60] sm:$0xff]  ;;  %v552_v31 = vld [vmem:[%s1251_s3 + $0x58] sm:$0xff]  ;;  %v567_v33 = vld [vmem:[%s1251_s3 + $0xd0] sm:$0xff] }
  0x17   : > { %468 = vmatprep.subr.mxu0 %v435_v11  ;;  %856 = vmatpush3.msra.mxu1 %v554_v23  ;;  %v423_v34 = vld [vmem:[%s1249_s1 + $0x48] sm:$0xff]  ;;  %v551_v35 = vld [vmem:[%s1251_s3 + $0x50] sm:$0xff]  ;;  %v422_v36 = vld [vmem:[%s1249_s1 + $0x40] sm:$0xff] }
  0x18   : > { %469 = vmatpush1.msra.mxu0 %v434_v12  ;;  %857 = vmatprep.subr.mxu1 %v569_v25  ;;  %v566_v37 = vld [vmem:[%s1251_s3 + $0xc8] sm:$0xff]  ;;  %v421_v38 = vld [vmem:[%s1249_s1 + $0x38] sm:$0xff]  ;;  %v420_v40 = vld [vmem:[%s1249_s1 + $0x30] sm:$0xff] }
  0x19   : > { %470 = vmatprep.subr.mxu0 %v433_v13  ;;  %858 = vmatpush3.msra.mxu1 %v553_v27  ;;  %v550_v39 = vld [vmem:[%s1251_s3 + $0x48] sm:$0xff]  ;;  %v565_v41 = vld [vmem:[%s1251_s3 + $0xc0] sm:$0xff]  ;;  %v564_v45 = vld [vmem:[%s1251_s3 + $0xb8] sm:$0xff] }
  0x1a   : > { %471 = vmatpush1.msra.mxu0 %v432_v14  ;;  %859 = vmatprep.subr.mxu1 %v568_v29  ;;  %v419_v42 = vld [vmem:[%s1249_s1 + $0x28] sm:$0xff]  ;;  %v549_v43 = vld [vmem:[%s1251_s3 + $0x40] sm:$0xff]  ;;  %v417_v46 = vld [vmem:[%s1249_s1 + $0x18] sm:$0xff] }
  0x1b   : > { %472 = vmatprep.subr.mxu0 %v431_v17  ;;  %860 = vmatpush3.msra.mxu1 %v552_v31  ;;  %v418_v44 = vld [vmem:[%s1249_s1 + $0x20] sm:$0xff]  ;;  %v548_v47 = vld [vmem:[%s1251_s3 + $0x38] sm:$0xff]  ;;  %v416_v48 = vld [vmem:[%s1249_s1 + $0x10] sm:$0xff] }
  0x1c   : > { %473 = vmatpush1.msra.mxu0 %v430_v20  ;;  %861 = vmatprep.subr.mxu1 %v567_v33  ;;  %v563_v49 = vld [vmem:[%s1251_s3 + $0xb0] sm:$0xff]  ;;  %v415_v50 = vld [vmem:[%s1249_s1 + $0x8] sm:$0xff]  ;;  %v414_v52 = vld [vmem:[%s1249_s1] sm:$0xff] }
  0x1d   : > { %474 = vmatprep.subr.mxu0 %v429_v22  ;;  %862 = vmatpush3.msra.mxu1 %v551_v35  ;;  %v547_v51 = vld [vmem:[%s1251_s3 + $0x30] sm:$0xff]  ;;  %v562_v53 = vld [vmem:[%s1251_s3 + $0xa8] sm:$0xff]  ;;  %v412_v54 = vld [vmem:[%s375_s20] sm:$0xff] }
  0x1e   : > { %475 = vmatpush1.msra.mxu0 %v428_v24  ;;  %863 = vmatprep.subr.mxu1 %v566_v37  ;;  %v546_v55 = vld [vmem:[%s1251_s3 + $0x28] sm:$0xff]  ;;  %v561_v56 = vld [vmem:[%s1251_s3 + $0xa0] sm:$0xff]  ;;  %v560_v59 = vld [vmem:[%s1251_s3 + $0x98] sm:$0xff] }
  0x1f   : > { %476 = vmatprep.subr.mxu0 %v427_v26  ;;  %864 = vmatpush3.msra.mxu1 %v550_v39  ;;  %v545_v57 = vld [vmem:[%s1251_s3 + $0x20] sm:$0xff]  ;;  %v413_v58 = vld [vmem:[%s375_s20 + $0x8] sm:$0xff]  ;;  %v544_v60 = vld [vmem:[%s1251_s3 + $0x18] sm:$0xff] }
  0x20   : > { %477 = vmatpush1.msra.mxu0 %v426_v28  ;;  %865 = vmatprep.subr.mxu1 %v565_v41  ;;  %v559_v61 = vld [vmem:[%s1251_s3 + $0x90] sm:$0xff]  ;;  %v558_v63 = vld [vmem:[%s1251_s3 + $0x88] sm:$0xff]  ;;  %v557_v1 = vld [vmem:[%s1251_s3 + $0x80] sm:$0xff] }
  0x21   : > { %478 = vmatprep.subr.mxu0 %v425_v30  ;;  %866 = vmatpush3.msra.mxu1 %v549_v43  ;;  %v543_v62 = vld [vmem:[%s1251_s3 + $0x10] sm:$0xff]  ;;  %v542_v0 = vld [vmem:[%s1251_s3 + $0x8] sm:$0xff]  ;;  %v541_v2 = vld [vmem:[%s1251_s3] sm:$0xff] }
  0x22   : > { %479 = vmatpush1.msra.mxu0 %v424_v32  ;;  %867 = vmatprep.subr.mxu1 %v564_v45  ;;  %v446_v6 = vld [vmem:[%s1250_s2] sm:$0x3]  ;;  %v667_v32 = vld [vmem:[%s398_s22 + $0x8] sm:$0xff] }
  0x23   : > { %480 = vmatprep.subr.mxu0 %v423_v34  ;;  %868 = vmatpush3.msra.mxu1 %v548_v47  ;;  %v846_v24 = vld [vmem:[%s1252_s4] ss:$0 sm:$0xff] }
  0x24   : > { %481 = vmatpush1.msra.mxu0 %v422_v36  ;;  %869 = vmatprep.subr.mxu1 %v563_v49  ;;  %v666_v27 = vld [vmem:[%s398_s22] sm:$0xff] }
  0x25   : > { %482 = vmatprep.subr.mxu0 %v421_v38  ;;  %870 = vmatpush3.msra.mxu1 %v547_v51 }
  0x26   : > { %483 = vmatpush1.msra.mxu0 %v420_v40  ;;  %871 = vmatprep.subr.mxu1 %v562_v53 }
  0x27   : > { %484 = vmatprep.subr.mxu0 %v419_v42  ;;  %872 = vmatpush3.msra.mxu1 %v546_v55 }
  0x28   : > { %485 = vmatpush1.msra.mxu0 %v418_v44  ;;  %873 = vmatprep.subr.mxu1 %v561_v56 }
  0x29   : > { %486 = vmatprep.subr.mxu0 %v417_v46  ;;  %874 = vmatpush3.msra.mxu1 %v545_v57 }
  0x2a   : > { %487 = vmatpush1.msra.mxu0 %v416_v48  ;;  %875 = vmatprep.subr.mxu1 %v560_v59 }
  0x2b   : > { %488 = vmatprep.subr.mxu0 %v415_v50  ;;  %876 = vmatpush3.msra.mxu1 %v544_v60  ;;  %v847_v50 = vld [vmem:[%s1254_s6] ss:$0 sm:$0xff] }
  0x2c   : > { %489 = vmatpush1.msra.mxu0 %v414_v52  ;;  %877 = vmatprep.subr.mxu1 %v559_v61  ;;  %v848_v52 = vld [vmem:[%s1255_s7] ss:$0 sm:$0xff] }
  0x2d   : > { %523 = vmatmul.mubr.f32.vlgmr.msra.gmra.mxu0 %v412_v54  ;;  %878 = vmatpush3.msra.mxu1 %v543_v62 }
  0x2e   : > { %528 = vmatprep.mubr.f32.mxu0 %v942_v4  ;;  %879 = vmatprep.subr.mxu1 %v558_v63  ;;  %v449_v4 = vshrl.u32 %v448_v3, 7 }
  0x2f   : > { %880 = vmatpush3.msra.mxu1 %v542_v0 }
  0x30   : > { %881 = vmatprep.subr.mxu1 %v557_v1  ;;  %v450_v5 = vsub.s32 0, %v449_v4  ;;  %v454_v7 = vsub.s32 1, %v449_v4 }
  0x31   : > { %529 = vmatmul.mubr.f32.gmra.mxu0 %v413_v58  ;;  %882 = vmatpush3.msra.mxu1 %v541_v2 }
  0x32   : > { %v451_v8 = vrot.slane %v446_v6, %v450_v5  ;;  %v455_v9 = vrot.slane %v446_v6, %v454_v7 }
  0xed   : > { %v524_v10 = vpop.f32.mrf.mxu0 }
  0xee   : > { %v525_v11 = vadd.f32 %v524_v10, %v451_v8 }
  0xef   : > { %v526_v12 = vpop.f32.mrf.mxu0 }
  0xf0   : > { %v527_v13 = vadd.f32 %v526_v12, %v455_v9  ;;  %v535_v16 = vmax.f32 %v525_v11, 0.0 }
  0xf1   : > { %v530_v14 = vpop.f32.mrf.mxu0 }
  0xf2   : > { %v536_v15 = vmax.f32 %v527_v13, 0.0  ;;  %v531_v17 = vadd.f32 %v530_v14, %v451_v8 }
  0xf3   : > { %v532_v18 = vpop.f32.mrf.mxu0 }
  0xf4   : > { %v533_v19 = vadd.f32 %v532_v18, %v455_v9  ;;  %637 = vmatprep.mubr.f32.mxu1 %v536_v15  ;;  %v537_v21 = vmax.f32 %v531_v17, 0.0 }
  0xf5   : > { %638 = vmatmul.mubr.f32.vlgmr.msra.gmra.mxu1 %v535_v16 }
  0xf6   : > { %v538_v20 = vmax.f32 %v533_v19, 0.0 }
  0xf8   : > { %642 = vmatprep.mubr.f32.mxu1 %v538_v20 }
  0xf9   : > { %643 = vmatmul.mubr.f32.gmra.mxu1 %v537_v21 }
 0x1b5   : > { %v883_v22 = vpop.f32.mrf.mxu1 }
 0x1b7   : > { %v884_v23 = vpop.f32.mrf.mxu1 }
 0x1b8   : > { %v885_v25 = vadd.f32 %v884_v23, %v883_v22 }
 0x1b9   : > { %v886_v26 = vpop.f32.mrf.mxu1 }
 0x1ba   : > { %v664_v28 = vadd.f32 %v885_v25, %v846_v24 }
 0x1bb   : > { %v887_v29 = vpop.f32.mrf.mxu1 }
 0x1bc   : > { %v888_v30 = vadd.f32 %v887_v29, %v886_v26  ;;  %v668_v31 = vadd.f32 %v666_v27, %v664_v28 }
 0x1be   : > { %v665_v33 = vadd.f32 %v888_v30, %v846_v24  ;;  %672 = vadd.xlane.f32.xlu0 %v668_v31 }
 0x1c0   : > { %v669_v34 = vadd.f32 %v667_v32, %v665_v33 }
 0x1c2   : > { %674 = vadd.xlane.f32.xlu0 %v669_v34 }
 0x247   : > { %v673_v35 = vpop.xlane.xlu0 %672 }
 0x248   : > { %v677_v36 = vmul.f32 0.0078125, %v673_v35 }
 0x24a   : > { %v679_v37 = vsub.f32 %v668_v31, %v677_v36 }
 0x24b   : > { %v675_v38 = vpop.xlane.xlu0 %674 }
 0x24c   : > { %v678_v39 = vmul.f32 0.0078125, %v675_v38  ;;  %v681_v40 = vmul.f32 %v679_v37, %v679_v37 }
 0x24e   : > { %v680_v41 = vsub.f32 %v669_v34, %v678_v39  ;;  %683 = vadd.xlane.f32.xlu1 %v681_v40 }
 0x250   : > { %v682_v42 = vmul.f32 %v680_v41, %v680_v41 }
 0x252   : > { %685 = vadd.xlane.f32.xlu1 %v682_v42 }
 0x2d7   : > { %v684_v43 = vpop.xlane.xlu1 %683 }
 0x2d8   : > { %v687_v44 = vmul.f32 0.0078125, %v684_v43 }
 0x2da   : > { %v689_v45 = vadd.f32 1e-05, %v687_v44 }
 0x2db   : > { %v686_v46 = vpop.xlane.xlu1 %685 }
 0x2dc   : > { %914 = vrsqrt.f32 %v689_v45  ;;  %v688_v47 = vmul.f32 0.0078125, %v686_v46 }
 0x2de   : > { %v690_v48 = vadd.f32 1e-05, %v688_v47 }
 0x2e0   : > { %916 = vrsqrt.f32 %v690_v48 }
 0x2e9   : > { %v915_v49 = vpop.eup %914 }
 0x2ea   : > { %v693_v51 = vmul.f32 %v915_v49, %v679_v37 }
 0x2ec   : > { %v701_v53 = vmul.f32 %v847_v50, %v693_v51 }
 0x2ed   : > { %v917_v54 = vpop.eup %916 }
 0x2ee   : > { %v709_v55 = vadd.f32 %v848_v52, %v701_v53  ;;  %v694_v56 = vmul.f32 %v917_v54, %v680_v41 }
 0x2f0   : > { %711 = vst [vmem:[%s404_s15] sm:$0xff] %v709_v55  ;;  %v702_v57 = vmul.f32 %v847_v50, %v694_v56 }
 0x2f2   : > { %v710_v58 = vadd.f32 %v848_v52, %v702_v57 }
 0x2f4   : > { %712 = vst [vmem:[%s404_s15 + $0x8] sm:$0xff] %v710_v58 }
 0x2f5 PF: > { %s18_s29 = sadd.s32 1, %s940_s29   ;;  %s1258_s27 = smov %s936_s28 }
 0x2f6   : > { %p15_p5 = scmp.ge.s32.totalorder %s18_s29, 4   ;;  %s1259_s28 = smov %s1261_s30 }
 0x2f8   :  { %17 = sbr.rel (!%p15_p5) target bundleno = 2 (0x2), region = 102 }

// kernel: decoder_forward.27
= control target key start
LH: loop header
LB: loop body
LE: loop exit
PB: predicated region body
PF: predicated region fallthrough
CT: control target
= control target key end

     0   :  { %13 = vsyncpa [#allocation4], 0  ;;  %s1437_s0 = inlined_call_operand.vmem [shape: f32[32,128], index: 0, kind: input, shape index: {}, may-alias: {0,5}]   ;;  %s1438_s1 = inlined_call_operand.vmem [shape: f32[128,256], index: 1, kind: input, shape index: {}]   ;;  %s1439_s2 = inlined_call_operand.vmem [shape: f32[1,256], index: 2, kind: input, shape index: {}]   ;;  %s1440_s3 = inlined_call_operand.vmem [shape: f32[256,128], index: 3, kind: input, shape index: {}]   ;;  %s1441_s4 = inlined_call_operand.vmem [shape: f32[1,128], index: 4, kind: input, shape index: {}]   ;;  %s1442_s5 = inlined_call_operand.vmem [shape: f32[32,128], index: 5, kind: input, shape index: {}, may-alias: {0,5}]   ;;  %s1443_s6 = inlined_call_operand.vmem [shape: f32[1,128], index: 6, kind: input, shape index: {}]   ;;  %s1444_s7 = inlined_call_operand.vmem [shape: f32[1,128], index: 7, kind: input, shape index: {}]   ;;  %s1445_s8 = inlined_call_operand.hbm [shape: f32[32,128], index: 8, kind: output, shape index: {}]  }
   0x1   :  { %15 = vsyncpa [#allocation4 + $0x1], 0  ;;  %s1098_s27 = smov 0   ;;  %s1100_s28 = smov 0  }
   0x2   :  { %s1102_s29 = smov 0   ;;  %s1104_s30 = smov 0  }
   0x3   :  { %s1106_s9 = smov 0   ;;  %s1108_s10 = smov 0  }
   0x4 LB: > { %s849_s11 = sadd.s32 4294967295, %s1047_s10   ;;  %s850_s12 = sadd.s32 4294967294, %s1047_s10   ;;  %s1047_s10 = sphi %s1108_s10, %s21_s10   ;;  %s1043_s9 = sphi %s1106_s9, %s1456_s9   ;;  %s1039_s30 = sphi %s1104_s30, %s1455_s30   ;;  %s1035_s29 = sphi %s1102_s29, %s1454_s29   ;;  %s1031_s28 = sphi %s1100_s28, %s1453_s28   ;;  %s1027_s27 = sphi %s1098_s27, %s1452_s27  }
   0x5   : > { %s33_s13 = sadd.s32 1, %s1043_s9  ;;  %s233_s14 = sadd.s32 1, %s1035_s29 }
   0x6   : > { %p35_p0 = scmp.ge.s32.totalorder %s33_s13, 2  ;;  %p243_p1 = scmp.ne.s32.totalorder %s1035_s29, %s1031_s28 }
   0x7   : > { %p244_p2 = scmp.eq.s32.totalorder %s849_s11, 1  ;;  %p249_p3 = scmp.ne.s32.totalorder %s1031_s28, %s1027_s27 }
   0x8   : > { %s1458_s13 = smov (%p35_p0, %s33_s13), 0  ;;  %p250_p5 = scmp.eq.s32.totalorder %s850_s12, 1 }
   0x9   : > { %1447 = sst [smem:[#allocation6_spill]] %s1458_s13  ;;  %p1138_p4 = por %p244_p2, %p243_p1 }
   0xa   : > { %s230_s16 = ssub.s32 %s1043_s9, %s1458_s13  ;;  %p856_p6 = scmp.ge.s32.totalorder %s1047_s10, 1 }
   0xb   : > { %p231_p7 = scmp.eq.s32.totalorder %s230_s16, 0  ;;  %p1145_p8 = por %p250_p5, %p249_p3 }
   0xc   : > { %p321_p9 = scmp.lt.s32.totalorder %s1047_s10, 3 }
   0xd   : > { %s1151_s18 = scalar_select %p231_p7, %s1035_s29, %s233_s14  }
   0xe   : > { %p322_p10 = pnand %p856_p6, %p321_p9 }
   0xf   : > { %s858_s23 = sshll.u32 (!%p322_p10), %s1039_s30, 1  ;;  %s870_s20 = sshll.u32 (!%p322_p10), %s1039_s30, 8 }
  0x10   : > { %325 = sbr.rel (%p322_p10) target bundleno = 779 (0x30b), region = 52  ;;  %p1235_p11 = scmp.lt.s32.totalorder (!%p322_p10), %s858_s23, 3 }
  0x11   : > { %s1388_s26 = scalar_lea.hbm (!%p322_p10), %s1445_s8, %s870_s20  ;;  %s1050_s30 = smov (!%p322_p10), [#allocation3]  }
  0x12   : > { %s975_s12 = sshll.u32 (!%p322_p10), %s1050_s30, 4  ;;  %s976_s12 = int_to_ptr.vmem [resolvable:$false] %s975_s12 }
  0x15   : > { %v443_v0 = vld [vmem:[%s1438_s1 + $0xf8] sm:$0xff]  ;;  %v442_v1 = vld [vmem:[%s1438_s1 + $0xf0] sm:$0xff]  ;;  %v441_v2 = vld [vmem:[%s1438_s1 + $0xe8] sm:$0xff]  ;;  %v1049_v4 = vmov 0.0   ;;  %s1460_s23 = smov (!%p1235_p11, %s858_s23), 3 }
  0x16   : > { %456 = vmatprep.subr.mxu0 %v443_v0  ;;  %v440_v3 = vld [vmem:[%s1438_s1 + $0xe0] sm:$0xff]  ;;  %520 = vmatprep.mubr.f32.mxu0 %v1049_v4  ;;  %v439_v5 = vld [vmem:[%s1438_s1 + $0xd8] sm:$0xff]  ;;  %v438_v6 = vld [vmem:[%s1438_s1 + $0xd0] sm:$0xff]  ;;  %s859_s11 = sshll.u32 %s1460_s23, 3  ;;  %s371_s23 = sand.u32 1, %s1031_s28  }
  0x17   : > { %457 = vmatpush1.msra.mxu0 %v442_v1  ;;  %v437_v7 = vld [vmem:[%s1438_s1 + $0xc8] sm:$0xff]  ;;  %v436_v8 = vld [vmem:[%s1438_s1 + $0xc0] sm:$0xff]  ;;  %v435_v9 = vld [vmem:[%s1438_s1 + $0xb8] sm:$0xff]  ;;  %s378_s19 = scalar_lea.vmem %s1437_s0, %s859_s11  ;;  %s401_s24 = scalar_lea.vmem %s1442_s5, %s859_s11 }
  0x18   : > { %458 = vmatprep.subr.mxu0 %v441_v2  ;;  %v434_v10 = vld [vmem:[%s1438_s1 + $0xb0] sm:$0xff]  ;;  %v433_v11 = vld [vmem:[%s1438_s1 + $0xa8] sm:$0xff]  ;;  %v432_v12 = vld [vmem:[%s1438_s1 + $0xa0] sm:$0xff]  ;;  %s857_s14 = sshll.u32 %s371_s23, 4  ;;  %s1392_s25 = scalar_lea.sflag [#allocation4], %s371_s23 }
  0x19   : > { %459 = vmatpush1.msra.mxu0 %v440_v3  ;;  %v431_v13 = vld [vmem:[%s1438_s1 + $0x98] sm:$0xff]  ;;  %v430_v14 = vld [vmem:[%s1438_s1 + $0x90] sm:$0xff]  ;;  %v429_v17 = vld [vmem:[%s1438_s1 + $0x88] sm:$0xff]  ;;  %v446_v3 = vlaneseq  ;;  %s373_s21 = scalar_lea.vmem [#allocation3], %s857_s14  ;;  %s977_s14 = scalar_lea.vmem %s976_s12, 512 }
  0x1a   : > { %460 = vmatprep.subr.mxu0 %v439_v5  ;;  %v570_v15 = vld [vmem:[%s1440_s3 + $0xf8] sm:$0xff]  ;;  %v569_v18 = vld [vmem:[%s1440_s3 + $0xf0] sm:$0xff]  ;;  %v428_v20 = vld [vmem:[%s1438_s1 + $0x80] sm:$0xff] }
  0x1b   : > { %461 = vmatpush1.msra.mxu0 %v438_v6  ;;  %v554_v16 = vld [vmem:[%s1440_s3 + $0x78] sm:$0xff]  ;;  %871 = vmatprep.subr.mxu1 %v570_v15  ;;  %v553_v19 = vld [vmem:[%s1440_s3 + $0x70] sm:$0xff]  ;;  %v568_v21 = vld [vmem:[%s1440_s3 + $0xe8] sm:$0xff] }
  0x1c   : > { %462 = vmatprep.subr.mxu0 %v437_v7  ;;  %872 = vmatpush3.msra.mxu1 %v554_v16  ;;  %v427_v22 = vld [vmem:[%s1438_s1 + $0x78] sm:$0xff]  ;;  %v552_v23 = vld [vmem:[%s1440_s3 + $0x68] sm:$0xff]  ;;  %v426_v24 = vld [vmem:[%s1438_s1 + $0x70] sm:$0xff] }
  0x1d   : > { %463 = vmatpush1.msra.mxu0 %v436_v8  ;;  %873 = vmatprep.subr.mxu1 %v569_v18  ;;  %v567_v25 = vld [vmem:[%s1440_s3 + $0xe0] sm:$0xff]  ;;  %v425_v26 = vld [vmem:[%s1438_s1 + $0x68] sm:$0xff]  ;;  %v566_v29 = vld [vmem:[%s1440_s3 + $0xd8] sm:$0xff] }
  0x1e   : > { %464 = vmatprep.subr.mxu0 %v435_v9  ;;  %874 = vmatpush3.msra.mxu1 %v553_v19  ;;  %v551_v27 = vld [vmem:[%s1440_s3 + $0x60] sm:$0xff]  ;;  %v423_v30 = vld [vmem:[%s1438_s1 + $0x58] sm:$0xff]  ;;  %v422_v32 = vld [vmem:[%s1438_s1 + $0x50] sm:$0xff] }
  0x1f   : > { %465 = vmatpush1.msra.mxu0 %v434_v10  ;;  %875 = vmatprep.subr.mxu1 %v568_v21  ;;  %v424_v28 = vld [vmem:[%s1438_s1 + $0x60] sm:$0xff]  ;;  %v550_v31 = vld [vmem:[%s1440_s3 + $0x58] sm:$0xff]  ;;  %v565_v33 = vld [vmem:[%s1440_s3 + $0xd0] sm:$0xff] }
  0x20   : > { %466 = vmatprep.subr.mxu0 %v433_v11  ;;  %876 = vmatpush3.msra.mxu1 %v552_v23  ;;  %v421_v34 = vld [vmem:[%s1438_s1 + $0x48] sm:$0xff]  ;;  %v549_v35 = vld [vmem:[%s1440_s3 + $0x50] sm:$0xff]  ;;  %v420_v36 = vld [vmem:[%s1438_s1 + $0x40] sm:$0xff] }
  0x21   : > { %467 = vmatpush1.msra.mxu0 %v432_v12  ;;  %877 = vmatprep.subr.mxu1 %v567_v25  ;;  %v564_v37 = vld [vmem:[%s1440_s3 + $0xc8] sm:$0xff]  ;;  %v419_v38 = vld [vmem:[%s1438_s1 + $0x38] sm:$0xff]  ;;  %v418_v40 = vld [vmem:[%s1438_s1 + $0x30] sm:$0xff] }
  0x22   : > { %468 = vmatprep.subr.mxu0 %v431_v13  ;;  %878 = vmatpush3.msra.mxu1 %v551_v27  ;;  %v548_v39 = vld [vmem:[%s1440_s3 + $0x48] sm:$0xff]  ;;  %v563_v41 = vld [vmem:[%s1440_s3 + $0xc0] sm:$0xff]  ;;  %v562_v45 = vld [vmem:[%s1440_s3 + $0xb8] sm:$0xff] }
  0x23   : > { %469 = vmatpush1.msra.mxu0 %v430_v14  ;;  %879 = vmatprep.subr.mxu1 %v566_v29  ;;  %v417_v42 = vld [vmem:[%s1438_s1 + $0x28] sm:$0xff]  ;;  %v547_v43 = vld [vmem:[%s1440_s3 + $0x40] sm:$0xff]  ;;  %v415_v46 = vld [vmem:[%s1438_s1 + $0x18] sm:$0xff] }
  0x24   : > { %470 = vmatprep.subr.mxu0 %v429_v17  ;;  %880 = vmatpush3.msra.mxu1 %v550_v31  ;;  %v416_v44 = vld [vmem:[%s1438_s1 + $0x20] sm:$0xff]  ;;  %v546_v47 = vld [vmem:[%s1440_s3 + $0x38] sm:$0xff]  ;;  %v414_v48 = vld [vmem:[%s1438_s1 + $0x10] sm:$0xff] }
  0x25   : > { %471 = vmatpush1.msra.mxu0 %v428_v20  ;;  %881 = vmatprep.subr.mxu1 %v565_v33  ;;  %v561_v49 = vld [vmem:[%s1440_s3 + $0xb0] sm:$0xff]  ;;  %v413_v50 = vld [vmem:[%s1438_s1 + $0x8] sm:$0xff]  ;;  %v412_v52 = vld [vmem:[%s1438_s1] sm:$0xff] }
  0x26   : > { %472 = vmatprep.subr.mxu0 %v427_v22  ;;  %882 = vmatpush3.msra.mxu1 %v549_v35  ;;  %v545_v51 = vld [vmem:[%s1440_s3 + $0x30] sm:$0xff]  ;;  %v560_v53 = vld [vmem:[%s1440_s3 + $0xa8] sm:$0xff]  ;;  %v410_v54 = vld [vmem:[%s378_s19] sm:$0xff] }
  0x27   : > { %473 = vmatpush1.msra.mxu0 %v426_v24  ;;  %883 = vmatprep.subr.mxu1 %v564_v37  ;;  %v544_v55 = vld [vmem:[%s1440_s3 + $0x28] sm:$0xff]  ;;  %v559_v56 = vld [vmem:[%s1440_s3 + $0xa0] sm:$0xff]  ;;  %v558_v59 = vld [vmem:[%s1440_s3 + $0x98] sm:$0xff] }
  0x28   : > { %474 = vmatprep.subr.mxu0 %v425_v26  ;;  %884 = vmatpush3.msra.mxu1 %v548_v39  ;;  %v543_v57 = vld [vmem:[%s1440_s3 + $0x20] sm:$0xff]  ;;  %v411_v58 = vld [vmem:[%s378_s19 + $0x8] sm:$0xff]  ;;  %v542_v60 = vld [vmem:[%s1440_s3 + $0x18] sm:$0xff]  ;;  %s725_s19 = sshll.u32 %s373_s21, 4  ;;  %s1390_s19 = int_to_ptr.vmem [resolvable:$true] %s725_s19 }
  0x29   : > { %475 = vmatpush1.msra.mxu0 %v424_v28  ;;  %885 = vmatprep.subr.mxu1 %v563_v41  ;;  %v557_v61 = vld [vmem:[%s1440_s3 + $0x90] sm:$0xff]  ;;  %v556_v63 = vld [vmem:[%s1440_s3 + $0x88] sm:$0xff]  ;;  %v555_v1 = vld [vmem:[%s1440_s3 + $0x80] sm:$0xff]  ;;  %s971_s11 = scalar_lea.vmem %s1390_s19, 256  ;;  %p978_p1 = scmp.lt.s32.totalorder %s1390_s19, %s976_s12 }
  0x2a   : > { %476 = vmatprep.subr.mxu0 %v423_v30  ;;  %886 = vmatpush3.msra.mxu1 %v547_v43  ;;  %v541_v62 = vld [vmem:[%s1440_s3 + $0x10] sm:$0xff]  ;;  %v540_v0 = vld [vmem:[%s1440_s3 + $0x8] sm:$0xff]  ;;  %v539_v2 = vld [vmem:[%s1440_s3] sm:$0xff]  ;;  %p972_p12 = scmp.ne.s32.totalorder %s1390_s19, %s971_s11  ;;  %p979_p2 = scmp.lt.s32.totalorder %s977_s14, %s971_s11 }
  0x2b   : > { %477 = vmatpush1.msra.mxu0 %v422_v32  ;;  %887 = vmatprep.subr.mxu1 %v562_v45  ;;  %v444_v6 = vld [vmem:[%s1439_s2] sm:$0x3]  ;;  %v665_v32 = vld [vmem:[%s401_s24 + $0x8] sm:$0xff] }
  0x2c   : > { %478 = vmatprep.subr.mxu0 %v421_v34  ;;  %888 = vmatpush3.msra.mxu1 %v546_v47  ;;  %v862_v24 = vld [vmem:[%s1441_s4] ss:$0 sm:$0xff]  ;;  %p973_p13 = pnand %p972_p12, %p1138_p4  ;;  %p980_p3 = por %p979_p2, %p978_p1 }
  0x2d   : > { %479 = vmatpush1.msra.mxu0 %v420_v36  ;;  %889 = vmatprep.subr.mxu1 %v561_v49  ;;  %v664_v27 = vld [vmem:[%s401_s24] sm:$0xff] }
  0x2e   : > { %480 = vmatprep.subr.mxu0 %v419_v38  ;;  %890 = vmatpush3.msra.mxu1 %v545_v51  ;;  %p974_p0 = pneg %p973_p13 }
  0x2f   : > { %481 = vmatpush1.msra.mxu0 %v418_v40  ;;  %891 = vmatprep.subr.mxu1 %v560_v53 }
  0x30   : > { %482 = vmatprep.subr.mxu0 %v417_v42  ;;  %892 = vmatpush3.msra.mxu1 %v544_v55  ;;  %p981_p5 = pnand %p980_p3, %p974_p0 }
  0x31   : > { %483 = vmatpush1.msra.mxu0 %v416_v44  ;;  %893 = vmatprep.subr.mxu1 %v559_v56 }
  0x32   : > { %484 = vmatprep.subr.mxu0 %v415_v46  ;;  %894 = vmatpush3.msra.mxu1 %v543_v57 }
  0x33   : > { %485 = vmatpush1.msra.mxu0 %v414_v48  ;;  %895 = vmatprep.subr.mxu1 %v558_v59 }
  0x34   : > { %486 = vmatprep.subr.mxu0 %v413_v50  ;;  %896 = vmatpush3.msra.mxu1 %v542_v60  ;;  %v863_v50 = vld [vmem:[%s1443_s6] ss:$0 sm:$0xff] }
  0x35   : > { %487 = vmatpush1.msra.mxu0 %v412_v52  ;;  %897 = vmatprep.subr.mxu1 %v557_v61  ;;  %v864_v52 = vld [vmem:[%s1444_s7] ss:$0 sm:$0xff] }
  0x36   : > { %521 = vmatmul.mubr.f32.vlgmr.msra.gmra.mxu0 %v410_v54  ;;  %898 = vmatpush3.msra.mxu1 %v541_v62 }
  0x37   : > { %526 = vmatprep.mubr.f32.mxu0 %v1049_v4  ;;  %899 = vmatprep.subr.mxu1 %v556_v63  ;;  %v447_v4 = vshrl.u32 %v446_v3, 7 }
  0x38   : > { %900 = vmatpush3.msra.mxu1 %v540_v0 }
  0x39   : > { %901 = vmatprep.subr.mxu1 %v555_v1  ;;  %v448_v5 = vsub.s32 0, %v447_v4  ;;  %v452_v7 = vsub.s32 1, %v447_v4 }
  0x3a   : > { %527 = vmatmul.mubr.f32.gmra.mxu0 %v411_v58  ;;  %902 = vmatpush3.msra.mxu1 %v539_v2 }
  0x3b   : > { %v449_v8 = vrot.slane %v444_v6, %v448_v5  ;;  %v453_v9 = vrot.slane %v444_v6, %v452_v7 }
  0xf6   : > { %v522_v10 = vpop.f32.mrf.mxu0 }
  0xf7   : > { %v523_v11 = vadd.f32 %v522_v10, %v449_v8 }
  0xf8   : > { %v524_v12 = vpop.f32.mrf.mxu0 }
  0xf9   : > { %v525_v13 = vadd.f32 %v524_v12, %v453_v9  ;;  %v533_v16 = vmax.f32 %v523_v11, 0.0 }
  0xfa   : > { %v528_v14 = vpop.f32.mrf.mxu0 }
  0xfb   : > { %v534_v15 = vmax.f32 %v525_v13, 0.0  ;;  %v529_v17 = vadd.f32 %v528_v14, %v449_v8 }
  0xfc   : > { %v530_v18 = vpop.f32.mrf.mxu0 }
  0xfd   : > { %v531_v19 = vadd.f32 %v530_v18, %v453_v9  ;;  %635 = vmatprep.mubr.f32.mxu1 %v534_v15  ;;  %v535_v21 = vmax.f32 %v529_v17, 0.0 }
  0xfe   : > { %636 = vmatmul.mubr.f32.vlgmr.msra.gmra.mxu1 %v533_v16 }
  0xff   : > { %v536_v20 = vmax.f32 %v531_v19, 0.0 }
 0x101   : > { %640 = vmatprep.mubr.f32.mxu1 %v536_v20 }
 0x102   : > { %641 = vmatmul.mubr.f32.gmra.mxu1 %v535_v21 }
 0x1be   : > { %v903_v22 = vpop.f32.mrf.mxu1 }
 0x1c0   : > { %v904_v23 = vpop.f32.mrf.mxu1 }
 0x1c1   : > { %v905_v25 = vadd.f32 %v904_v23, %v903_v22 }
 0x1c2   : > { %v906_v26 = vpop.f32.mrf.mxu1 }
 0x1c3   : > { %v662_v28 = vadd.f32 %v905_v25, %v862_v24 }
 0x1c4   : > { %v907_v29 = vpop.f32.mrf.mxu1 }
 0x1c5   : > { %v908_v30 = vadd.f32 %v907_v29, %v906_v26  ;;  %v666_v31 = vadd.f32 %v664_v27, %v662_v28 }
 0x1c7   : > { %v663_v33 = vadd.f32 %v908_v30, %v862_v24  ;;  %670 = vadd.xlane.f32.xlu0 %v666_v31 }
 0x1c9   : > { %v667_v34 = vadd.f32 %v665_v32, %v663_v33 }
 0x1cb   : > { %672 = vadd.xlane.f32.xlu0 %v667_v34 }
 0x250   : > { %v671_v35 = vpop.xlane.xlu0 %670 }
 0x251   : > { %v675_v36 = vmul.f32 0.0078125, %v671_v35 }
 0x253   : > { %v677_v37 = vsub.f32 %v666_v31, %v675_v36 }
 0x254   : > { %v673_v38 = vpop.xlane.xlu0 %672 }
 0x255   : > { %v676_v39 = vmul.f32 0.0078125, %v673_v38  ;;  %v679_v40 = vmul.f32 %v677_v37, %v677_v37 }
 0x257   : > { %v678_v41 = vsub.f32 %v667_v34, %v676_v39  ;;  %681 = vadd.xlane.f32.xlu1 %v679_v40 }
 0x259   : > { %v680_v42 = vmul.f32 %v678_v41, %v678_v41 }
 0x25b   : > { %683 = vadd.xlane.f32.xlu1 %v680_v42 }
 0x2e0   : > { %v682_v43 = vpop.xlane.xlu1 %681 }
 0x2e1   : > { %v685_v44 = vmul.f32 0.0078125, %v682_v43 }
 0x2e3   : > { %v687_v45 = vadd.f32 1e-05, %v685_v44 }
 0x2e4   : > { %v684_v46 = vpop.xlane.xlu1 %683 }
 0x2e5   : > { %967 = vrsqrt.f32 %v687_v45  ;;  %v686_v47 = vmul.f32 0.0078125, %v684_v46 }
 0x2e7   : > { %v688_v48 = vadd.f32 1e-05, %v686_v47 }
 0x2e9   : > { %969 = vrsqrt.f32 %v688_v48 }
 0x2f2   : > { %v968_v49 = vpop.eup %967 }
 0x2f3   : > { %v691_v51 = vmul.f32 %v968_v49, %v677_v37 }
 0x2f5   : > { %v699_v53 = vmul.f32 %v863_v50, %v691_v51 }
 0x2f6   : > { %v970_v54 = vpop.eup %969 }
 0x2f7   : > { %v692_v55 = vmul.f32 %v970_v54, %v678_v41  ;;  %v707_v56 = vadd.f32 %v864_v52, %v699_v53 }
 0x2f9   : > { %v700_v57 = vmul.f32 %v863_v50, %v692_v55  ;;  %709 = vst [vmem:[%s373_s21] sm:$0xff] %v707_v56 }
 0x2fb   : > { %v708_v58 = vadd.f32 %v864_v52, %v700_v57 }
 0x2fd   : > { %710 = vst [vmem:[%s373_s21 + $0x8] sm:$0xff] %v708_v58 }
 0x2fe   : > { %984 = shalt.err (!%p981_p5)
}
 0x2ff   : > { %s985_s23 = scalar_lea.hbm %s1388_s26, 256  ;;  %s989_s20 = scalar_lea.hbm %s1445_s8, 512 }
 0x300   : > { %p986_p6 = scmp.ne.s32.totalorder %s1388_s26, %s985_s23  ;;  %p990_p10 = scmp.lt.s32.totalorder %s1388_s26, %s1445_s8 }
 0x301   : > { %p991_p11 = scmp.lt.s32.totalorder %s989_s20, %s985_s23 }
 0x302   : > { %p987_p7 = pnand %p986_p6, %p1138_p4 }
 0x303   : > { %p992_p12 = por %p991_p11, %p990_p10 }
 0x304   : > { %p988_p9 = pneg %p987_p7 }
 0x306   : > { %p993_p13 = pnand %p992_p12, %p988_p9 }
 0x308   : > { %996 = shalt.err (!%p993_p13)
}
 0x309   : > { %s1051_s24 = smov 128   ;;  %s1052_s11 = smov 8  }
 0x30a   : > { %909 = dma.vmem_to_hbm [thread:$0]  (%p1138_p4), %s1390_s19, 256, %s1388_s26, %s1392_s25, %s1051_s24, %s1051_s24, %s1052_s11  }
 0x30b PF: > { %p915_p0 = scmp.ge.s32.totalorder %s1047_s10, 2  ;;  %s740_s30 = sand.u32 1, %s1027_s27  }
 0x30c   : > { %s741_s12 = scalar_lea.sflag [#allocation4], %s740_s30 }
 0x30d   : > { %p912_p1 = pnand %p915_p0, %p1145_p8 }
 0x30f   : > { %p913_p2 = pneg %p912_p1 }
 0x311   : > { %1022 = dma.done.wait (%p913_p2), %s741_s12, 256  }
 0x312   : > { %1024 = vsyncadd (%p913_p2), %s741_s12, 4294967040  ;;  %s21_s10 = sadd.s32 1, %s1047_s10   ;;  %s1451_s15 = sld [smem:[#allocation6_spill]] }
 0x313   : > { %p18_p3 = scmp.ge.s32.totalorder %s21_s10, 4   ;;  %s1452_s27 = smov %s1031_s28 }
 0x314   : > { %s1453_s28 = smov %s1035_s29  ;;  %s1454_s29 = smov %s1151_s18 }
 0x315   : > { %s1455_s30 = smov %s1043_s9  ;;  %20 = sbr.rel (!%p18_p3) target bundleno = 4 (0x4), region = 107 }
 0x318   : > { %s1456_s9 = smov %s1451_s15 }
 0x31a   :  { %746 = vsyncpa [#allocation4], 1 }
 0x31b   :  { %748 = vsyncpa [#allocation4 + $0x1], 1 }

// kernel: decoder_forward.18
= control target key start
LH: loop header
LB: loop body
LE: loop exit
PB: predicated region body
PF: predicated region fallthrough
CT: control target
= control target key end

     0   :  { %s1314_s12 = smov 0   ;;  %s1504_s0 = inlined_call_operand.vmem [shape: f32[2,16,128], index: 0, kind: input, shape index: {}]   ;;  %s1505_s1 = inlined_call_operand.vmem [shape: f32[2,16,256], index: 1, kind: input, shape index: {}]   ;;  %s1506_s2 = inlined_call_operand.vmem [shape: f32[16,16], index: 2, kind: input, shape index: {}]   ;;  %s1507_s3 = inlined_call_operand.vmem [shape: f32[2,16,128], index: 3, kind: output, shape index: {}]  }
   0x1 LB: > { %s1112_s13 = sadd.s32 4294967295, %s1289_s12   ;;  %p1116_p0 = scmp.ge.s32.totalorder %s1289_s12, 1  ;;  %s1289_s12 = sphi %s1314_s12, %s13_s12  }
   0x2   : > { %p147_p1 = scmp.lt.s32.totalorder %s1289_s12, 3 }
   0x4   : > { %p148_p2 = pnand %p1116_p0, %p147_p1 }
   0x5   : > { %p176_p3 = scmp.lt.s32.totalorder (!%p148_p2), %s1112_s13, 1  ;;  %s1291_s22 = smov (!%p148_p2), 96  }
   0x6   : > { %151 = sbr.rel (%p148_p2) target bundleno = 1791 (0x6ff), region = 32  ;;  %s1292_s23 = smov (!%p148_p2), 64  }
   0x7   : > { %s1293_s28 = smov (!%p148_p2), 32  }
   0xb   : > { %s1509_s13 = smov (!%p176_p3, %s1112_s13), 1  ;;  %vm197_vm0 = vcmask 261120   ;;  %v1366_v5 = vld [vmem:[%s1506_s2 + $0x8] sm:$0xff]  ;;  %vm289_vm1 = vcmask 130048   ;;  %v1371_v8 = vld [vmem:[%s1506_s2] sm:$0xff]  ;;  %vm1040_vm2 = vcmask 785408  }
   0xc   : > { %s1150_s14 = sshll.u32 %s1509_s13, 5  ;;  %s1149_s15 = sshll.u32 %s1509_s13, 4  ;;  %vm1037_vm3 = vcmask 523264  }
   0xd   : > { %s1329_s18 = scalar_lea.vmem %s1505_s1, %s1150_s14  ;;  %s180_s21 = scalar_lea.vmem %s1504_s0, %s1149_s15 }
   0xe   : > { %v196_v0 = vld [vmem:[%s1329_s18 + $0x10] sm:$0xff]  ;;  %v1338_v1 = vld [vmem:[%s1329_s18] sm:$0xff]  ;;  %v1350_v3 = vld [vmem:[%s180_s21 + $0x8] sm:$0xff]  ;;  %s190_s4 = scalar_lea.vmem %s1507_s3, %s1149_s15 }
   0xf   : > { %v1340_v2 = vld [vmem:[%s180_s21] sm:$0xff]  ;;  %1184 = vmatprep.subr.msk.mxu0 %vm197_vm0, %v196_v0  ;;  %304 = vrot.lane.b32.xlu1 %v196_v0, %s1291_s22  ;;  %v1408_v39 = vld [vmem:[%s1329_s18 + $0x8] sm:$0xff]  ;;  %v1413_v46 = vld [vmem:[%s1329_s18 + $0x18] sm:$0xff] }
  0x10   : > { %1188 = vmatprep.mubr.msk.f32.mxu0 %vm197_vm0, %v1340_v2  ;;  %1185 = vmatpush3.xpose.msk.msra.mxu0 %vm197_vm0, %v196_v0 }
  0x11   : > { %1186 = vmatprep.subr.msk.mxu0 %vm197_vm0, %v1338_v1 }
  0x13   : > { %302 = vrot.lane.b32.xlu1 %v1338_v1, %s1291_s22 }
  0x14   : > { %1187 = vmatpush3.xpose.msk.msra.mxu0 %vm197_vm0, %v1338_v1 }
  0x17   : > { %1189 = vmatmul.mubr.msk.f32.vlgmr.msra.gmra.mxu0 %vm197_vm0, %v1350_v3  ;;  %403 = vrot.lane.b32.xlu1 %v1338_v1, %s1292_s23 }
  0x1b   : > { %399 = vrot.lane.b32.xlu1 %v1340_v2, %s1291_s22 }
  0x1f   : > { %401 = vrot.lane.b32.xlu1 %v1350_v3, %s1291_s22 }
  0x23   : > { %508 = vrot.lane.b32.xlu1 %v196_v0, %s1293_s28 }
  0x81   : > { %v305_v14 = vpop.permute.xlu1 %304 }
  0x82   : > { %1191 = vmatprep.subr.mxu1 %v305_v14 }
  0x83   : > { %1192 = vmatpush3.msra.mxu1 %v305_v14 }
  0x85   : > { %v303_v15 = vpop.permute.xlu1 %302 }
  0x86   : > { %1193 = vmatprep.subr.mxu1 %v303_v15 }
  0x87   : > { %1194 = vmatpush3.msra.mxu1 %v303_v15 }
  0x89   : > { %v404_v23 = vpop.permute.xlu1 %403 }
  0x8d   : > { %v400_v25 = vpop.permute.xlu1 %399 }
  0x91   : > { %v402_v27 = vpop.permute.xlu1 %401 }
  0x95   : > { %v509_v28 = vpop.permute.xlu1 %508 }
  0x96   : > { %1205 = vmatprep.subr.mxu0 %v509_v28 }
  0x97   : > { %1206 = vmatpush3.msra.mxu0 %v509_v28 }
  0xd7   : > { %v1190_v4 = vpop.f32.mrf.mxu0 }
  0xd8   : > { %v286_v6 = vmul.f32 0.17677669, %v1190_v4 }
  0xd9   : > { %v276_v7 = vpop.f32.mrf.mxu0 }
  0xda   : > { %v285_v9 = vmul.f32 0.17677669, %v276_v7  ;;  %v288_v10 = vadd.f32 %v286_v6, %v1366_v5 }
  0xdc   : > { %v293_v11 = vsel %vm289_vm1, %v288_v10, -inf  ;;  %v287_v12 = vadd.f32 %v285_v9, %v1371_v8 }
  0xdd   : > { %294 = vmax.xlane.f32.xlu0 %v293_v11 }
  0xde   : > { %v290_v13 = vsel %vm289_vm1, %v287_v12, -inf }
  0xe1   : > { %291 = vmax.xlane.f32.xlu0 %v290_v13 }
  0xf7   : > { %405 = vrot.lane.b32.xlu0 %v196_v0, %s1292_s23 }
 0x166   : > { %v295_v16 = vpop.xlane.xlu0 %294 }
 0x167   : > { %v297_v17 = vsub.f32 %v288_v10, %v295_v16 }
 0x169   : > { %v300_v20 = vmul.f32 1.442695, %v297_v17 }
 0x16a   : > { %v292_v18 = vpop.xlane.xlu0 %291 }
 0x16b   : > { %v296_v19 = vsub.f32 %v287_v12, %v292_v18 }
 0x16d   : > { %v298_v21 = vmul.f32 1.442695, %v296_v19 }
 0x16e   : > { %v406_v22 = vpop.permute.xlu0 %405 }
 0x16f   : > { %1251 = vpow2.f32 %v298_v21  ;;  %1198 = vmatprep.subr.msk.mxu1 %vm197_vm0, %v406_v22 }
 0x170   : > { %1253 = vpow2.f32 %v300_v20 }
 0x17c   : > { %v1380_v24 = vpop.eup %1251 }
 0x17d   : > { %v1382_v26 = vpop.eup %1253  ;;  %1195 = vmatprep.mubr.msk.f32.mxu1 %vm289_vm1, %v1380_v24 }
 0x17e   : > { %1196 = vmatmul.mubr.msk.f32.vlgmr.msra.gmra.mxu1 %vm289_vm1, %v1382_v26 }
 0x17f   : > { %1199 = vmatpush3.xpose.msk.msra.mxu1 %vm197_vm0, %v406_v22  ;;  %1202 = vmatprep.mubr.msk.f32.mxu1 %vm197_vm0, %v400_v25 }
 0x180   : > { %1200 = vmatprep.subr.msk.mxu1 %vm197_vm0, %v404_v23 }
 0x183   : > { %1201 = vmatpush3.xpose.msk.msra.mxu1 %vm197_vm0, %v404_v23 }
 0x186   : > { %1203 = vmatmul.mubr.msk.f32.vlgmr.msra.gmra.mxu1 %vm197_vm0, %v402_v27 }
 0x23e   : > { %v1393_v29 = vpop.f32.mrf.mxu1 }
 0x240   : > { %v1395_v30 = vpop.f32.mrf.mxu1 }
 0x246   : > { %v1204_v31 = vpop.f32.mrf.mxu1 }
 0x247   : > { %v491_v32 = vmul.f32 0.17677669, %v1204_v31 }
 0x248   : > { %v481_v33 = vpop.f32.mrf.mxu1 }
 0x249   : > { %v490_v34 = vmul.f32 0.17677669, %v481_v33  ;;  %v493_v35 = vadd.f32 %v491_v32, %v1366_v5 }
 0x24b   : > { %v497_v36 = vsel %vm289_vm1, %v493_v35, -inf  ;;  %v492_v37 = vadd.f32 %v490_v34, %v1371_v8 }
 0x24c   : > { %498 = vmax.xlane.f32.xlu0 %v497_v36 }
 0x24d   : > { %v494_v38 = vsel %vm289_vm1, %v492_v37, -inf }
 0x24e   : > { %495 = vmax.xlane.f32.xlu1 %v494_v38 }
 0x25f   : > { %605 = vrot.lane.b32.xlu1 %v1340_v2, %s1292_s23 }
 0x262   : > { %506 = vrot.lane.b32.xlu0 %v1338_v1, %s1293_s28 }
 0x263   : > { %607 = vrot.lane.b32.xlu1 %v1350_v3, %s1292_s23 }
 0x267   : > { %710 = vrot.lane.b32.xlu1 %v1408_v39, %s1291_s22 }
 0x2d5   : > { %v499_v40 = vpop.xlane.xlu0 %498 }
 0x2d6   : > { %v501_v41 = vsub.f32 %v493_v35, %v499_v40 }
 0x2d7   : > { %v496_v42 = vpop.xlane.xlu1 %495 }
 0x2d8   : > { %v500_v43 = vsub.f32 %v492_v37, %v496_v42  ;;  %v504_v44 = vmul.f32 1.442695, %v501_v41  ;;  %v392_v42 = vsel %vm289_vm1, %v1382_v26, 0.0 }
 0x2d9   : > { %v507_v45 = vpop.permute.xlu0 %506 }
 0x2da   : > { %v502_v47 = vmul.f32 1.442695, %v500_v43  ;;  %1207 = vmatprep.subr.mxu0 %v507_v45  ;;  %v389_v43 = vsel %vm289_vm1, %v1380_v24, 0.0 }
 0x2db   : > { %1208 = vmatpush3.msra.mxu0 %v507_v45  ;;  %v606_v49 = vpop.permute.xlu1 %605 }
 0x2dc   : > { %1255 = vpow2.f32 %v502_v47  ;;  %1212 = vmatprep.subr.msk.mxu0 %vm197_vm0, %v1413_v46 }
 0x2dd   : > { %1257 = vpow2.f32 %v504_v44 }
 0x2df   : > { %v608_v51 = vpop.permute.xlu1 %607 }
 0x2e3   : > { %v711_v62 = vpop.permute.xlu1 %710 }
 0x2e9   : > { %v1417_v48 = vpop.eup %1255 }
 0x2ea   : > { %v1419_v50 = vpop.eup %1257  ;;  %1209 = vmatprep.mubr.msk.f32.mxu0 %vm289_vm1, %v1417_v48 }
 0x2eb   : > { %1210 = vmatmul.mubr.msk.f32.vlgmr.msra.gmra.mxu0 %vm289_vm1, %v1419_v50  ;;  %v596_v25 = vsel %vm289_vm1, %v1419_v50, 0.0 }
 0x2ec   : > { %1213 = vmatpush3.xpose.msk.msra.mxu0 %vm197_vm0, %v1413_v46  ;;  %1216 = vmatprep.mubr.msk.f32.mxu0 %vm197_vm0, %v606_v49 }
 0x2ed   : > { %1214 = vmatprep.subr.msk.mxu0 %vm197_vm0, %v1408_v39 }
 0x2f0   : > { %1215 = vmatpush3.xpose.msk.msra.mxu0 %vm197_vm0, %v1408_v39 }
 0x2f3   : > { %1217 = vmatmul.mubr.msk.f32.vlgmr.msra.gmra.mxu0 %vm197_vm0, %v608_v51 }
 0x3ab   : > { %v1433_v52 = vpop.f32.mrf.mxu0 }
 0x3ad   : > { %v1435_v53 = vpop.f32.mrf.mxu0 }
 0x3b3   : > { %v1218_v54 = vpop.f32.mrf.mxu0 }
 0x3b4   : > { %v695_v55 = vmul.f32 0.17677669, %v1218_v54 }
 0x3b5   : > { %v685_v56 = vpop.f32.mrf.mxu0 }
 0x3b6   : > { %v694_v57 = vmul.f32 0.17677669, %v685_v56  ;;  %v697_v58 = vadd.f32 %v695_v55, %v1366_v5 }
 0x3b8   : > { %v701_v59 = vsel %vm289_vm1, %v697_v58, -inf  ;;  %v696_v60 = vadd.f32 %v694_v57, %v1371_v8 }
 0x3b9   : > { %702 = vmax.xlane.f32.xlu0 %v701_v59 }
 0x3ba   : > { %v698_v61 = vsel %vm289_vm1, %v696_v60, -inf }
 0x3bb   : > { %699 = vmax.xlane.f32.xlu1 %v698_v61 }
 0x3cc   : > { %813 = vrot.lane.b32.xlu1 %v1413_v46, %s1292_s23 }
 0x3cf   : > { %712 = vrot.lane.b32.xlu0 %v1413_v46, %s1291_s22 }
 0x3d0   : > { %807 = vrot.lane.b32.xlu1 %v1340_v2, %s1293_s28 }
 0x3d3   : > { %811 = vrot.lane.b32.xlu0 %v1408_v39, %s1292_s23 }
 0x3d7   : > { %809 = vrot.lane.b32.xlu0 %v1350_v3, %s1293_s28 }
 0x442   : > { %v703_v63 = vpop.xlane.xlu0 %702 }
 0x443   : > { %v705_v0 = vsub.f32 %v697_v58, %v703_v63 }
 0x444   : > { %v700_v1 = vpop.xlane.xlu1 %699 }
 0x445   : > { %v704_v4 = vsub.f32 %v696_v60, %v700_v1  ;;  %v708_v6 = vmul.f32 1.442695, %v705_v0 }
 0x446   : > { %v713_v7 = vpop.permute.xlu0 %712 }
 0x447   : > { %v706_v9 = vmul.f32 1.442695, %v704_v4  ;;  %1219 = vmatprep.subr.mxu1 %v713_v7 }
 0x448   : > { %1220 = vmatpush3.msra.mxu1 %v713_v7  ;;  %v814_v10 = vpop.permute.xlu1 %813 }
 0x449   : > { %1259 = vpow2.f32 %v706_v9  ;;  %1221 = vmatprep.subr.mxu1 %v711_v62 }
 0x44a   : > { %1261 = vpow2.f32 %v708_v6  ;;  %1222 = vmatpush3.msra.mxu1 %v711_v62  ;;  %v812_v12 = vpop.permute.xlu0 %811 }
 0x44b   : > { %1226 = vmatprep.subr.msk.mxu1 %vm197_vm0, %v814_v10 }
 0x44c   : > { %v808_v11 = vpop.permute.xlu1 %807 }
 0x44e   : > { %v810_v13 = vpop.permute.xlu0 %809 }
 0x456   : > { %v1260_v2 = vpop.eup %1259 }
 0x457   : > { %v1262_v3 = vpop.eup %1261  ;;  %1223 = vmatprep.mubr.msk.f32.mxu1 %vm289_vm1, %v1260_v2 }
 0x458   : > { %1224 = vmatmul.mubr.msk.f32.vlgmr.msra.gmra.mxu1 %vm289_vm1, %v1262_v3  ;;  %v800_v27 = vsel %vm289_vm1, %v1262_v3, 0.0 }
 0x459   : > { %1227 = vmatpush3.xpose.msk.msra.mxu1 %vm197_vm0, %v814_v10  ;;  %1230 = vmatprep.mubr.msk.f32.mxu1 %vm197_vm0, %v808_v11 }
 0x45a   : > { %1228 = vmatprep.subr.msk.mxu1 %vm197_vm0, %v812_v12 }
 0x45d   : > { %1229 = vmatpush3.xpose.msk.msra.mxu1 %vm197_vm0, %v812_v12 }
 0x460   : > { %1231 = vmatmul.mubr.msk.f32.vlgmr.msra.gmra.mxu1 %vm197_vm0, %v810_v13 }
 0x518   : > { %v1459_v14 = vpop.f32.mrf.mxu1 }
 0x51a   : > { %v788_v15 = vpop.f32.mrf.mxu1 }
 0x520   : > { %v1232_v16 = vpop.f32.mrf.mxu1 }
 0x521   : > { %v899_v17 = vmul.f32 0.17677669, %v1232_v16 }
 0x522   : > { %v889_v18 = vpop.f32.mrf.mxu1 }
 0x523   : > { %v898_v19 = vmul.f32 0.17677669, %v889_v18  ;;  %v901_v20 = vadd.f32 %v899_v17, %v1366_v5  ;;  %v593_v5 = vsel %vm289_vm1, %v1417_v48, 0.0 }
 0x525   : > { %v900_v21 = vadd.f32 %v898_v19, %v1371_v8  ;;  %v905_v22 = vsel %vm289_vm1, %v901_v20, -inf  ;;  %v797_v8 = vsel %vm289_vm1, %v1260_v2, 0.0 }
 0x526   : > { %906 = vmax.xlane.f32.xlu0 %v905_v22 }
 0x527   : > { %v902_v23 = vsel %vm289_vm1, %v900_v21, -inf }
 0x528   : > { %903 = vmax.xlane.f32.xlu1 %v902_v23 }
 0x539   : > { %914 = vrot.lane.b32.xlu1 %v1408_v39, %s1293_s28 }
 0x53c   : > { %916 = vrot.lane.b32.xlu0 %v1413_v46, %s1293_s28 }
 0x55b   : > { %597 = vadd.xlane.f32.xlu0 %v596_v25 }
 0x55d   : > { %594 = vadd.xlane.f32.xlu1 %v593_v5 }
 0x55f   : > { %798 = vadd.xlane.f32.xlu0 %v797_v8 }
 0x561   : > { %801 = vadd.xlane.f32.xlu1 %v800_v27 }
 0x5af   : > { %v907_v28 = vpop.xlane.xlu0 %906 }
 0x5b0   : > { %v909_v31 = vsub.f32 %v901_v20, %v907_v28 }
 0x5b1   : > { %v904_v32 = vpop.xlane.xlu1 %903 }
 0x5b2   : > { %v912_v33 = vmul.f32 1.442695, %v909_v31  ;;  %v908_v34 = vsub.f32 %v900_v21, %v904_v32 }
 0x5b3   : > { %v917_v35 = vpop.permute.xlu0 %916 }
 0x5b4   : > { %1263 = vpow2.f32 %v912_v33  ;;  %v910_v36 = vmul.f32 1.442695, %v908_v34  ;;  %1233 = vmatprep.subr.mxu0 %v917_v35 }
 0x5b5   : > { %1234 = vmatpush3.msra.mxu0 %v917_v35  ;;  %v915_v37 = vpop.permute.xlu1 %914 }
 0x5b6   : > { %1265 = vpow2.f32 %v910_v36  ;;  %1235 = vmatprep.subr.mxu0 %v915_v37 }
 0x5b7   : > { %1236 = vmatpush3.msra.mxu0 %v915_v37 }
 0x5c1   : > { %v1264_v38 = vpop.eup %1263 }
 0x5c2   : > { %v1004_v39 = vsel %vm289_vm1, %v1264_v38, 0.0 }
 0x5c3   : > { %v1266_v40 = vpop.eup %1265  ;;  %1005 = vadd.xlane.f32.xlu1 %v1004_v39 }
 0x5c4   : > { %1237 = vmatprep.mubr.msk.f32.mxu0 %vm289_vm1, %v1266_v40  ;;  %v1001_v41 = vsel %vm289_vm1, %v1266_v40, 0.0 }
 0x5c5   : > { %1002 = vadd.xlane.f32.xlu0 %v1001_v41  ;;  %1238 = vmatmul.mubr.msk.f32.vlgmr.msra.gmra.mxu0 %vm289_vm1, %v1264_v38 }
 0x5c7   : > { %393 = vadd.xlane.f32.xlu1 %v392_v42 }
 0x5c9   : > { %390 = vadd.xlane.f32.xlu0 %v389_v43 }
 0x5e4   : > { %v598_v44 = vpop.xlane.xlu0 %597 }
 0x5e5   : > { %1267 = vrcp.f32 %v598_v44 }
 0x5e6   : > { %v595_v45 = vpop.xlane.xlu1 %594 }
 0x5e7   : > { %1269 = vrcp.f32 %v595_v45 }
 0x5e8   : > { %v799_v46 = vpop.xlane.xlu0 %798 }
 0x5e9   : > { %1271 = vrcp.f32 %v799_v46 }
 0x5ea   : > { %v802_v47 = vpop.xlane.xlu1 %801 }
 0x5eb   : > { %1273 = vrcp.f32 %v802_v47 }
 0x5f2   : > { %v1268_v48 = vpop.eup %1267 }
 0x5f3   : > { %v602_v49 = vmul.f32 %v1268_v48, %v1433_v52 }
 0x5f4   : > { %v1270_v50 = vpop.eup %1269 }
 0x5f5   : > { %1015 = vrot.lane.b32.xlu1 %v602_v49, %s1293_s28  ;;  %v601_v26 = vmul.f32 %v1270_v50, %v1435_v53 }
 0x5f6   : > { %v1272_v51 = vpop.eup %1271 }
 0x5f7   : > { %1013 = vrot.lane.b32.xlu0 %v601_v26, %s1293_s28  ;;  %v805_v24 = vmul.f32 %v1272_v51, %v788_v15 }
 0x5f8   : > { %v1274_v54 = vpop.eup %1273 }
 0x5f9   : > { %1021 = vrot.lane.b32.xlu1 %v805_v24, %s1292_s23  ;;  %v806_v55 = vmul.f32 %v1274_v54, %v1459_v14 }
 0x5fb   : > { %1023 = vrot.lane.b32.xlu0 %v806_v55, %s1292_s23 }
 0x64c   : > { %v1006_v56 = vpop.xlane.xlu1 %1005 }
 0x64d   : > { %1275 = vrcp.f32 %v1006_v56 }
 0x64e   : > { %v1003_v57 = vpop.xlane.xlu0 %1002 }
 0x64f   : > { %1277 = vrcp.f32 %v1003_v57 }
 0x650   : > { %v394_v62 = vpop.xlane.xlu1 %393 }
 0x651   : > { %1279 = vrcp.f32 %v394_v62 }
 0x652   : > { %v391_v63 = vpop.xlane.xlu0 %390 }
 0x653   : > { %1281 = vrcp.f32 %v391_v63 }
 0x65a   : > { %v1276_v52 = vpop.eup %1275 }
 0x65c   : > { %v1278_v60 = vpop.eup %1277 }
 0x65e   : > { %v1280_v4 = vpop.eup %1279 }
 0x65f   : > { %v398_v9 = vmul.f32 %v1280_v4, %v1393_v29 }
 0x660   : > { %v1282_v6 = vpop.eup %1281 }
 0x661   : > { %v397_v10 = vmul.f32 %v1282_v6, %v1395_v30 }
 0x667   : > { %v1016_v1 = vpop.permute.xlu1 %1015 }
 0x668   : > { %v1036_v11 = vsel %vm197_vm0, %v398_v9, %v1016_v1 }
 0x669   : > { %v1014_v0 = vpop.permute.xlu0 %1013 }
 0x66a   : > { %v1035_v3 = vsel %vm197_vm0, %v397_v10, %v1014_v0 }
 0x66b   : > { %v1022_v2 = vpop.permute.xlu1 %1021 }
 0x66c   : > { %v1038_v15 = vsel %vm1037_vm3, %v1035_v3, %v1022_v2 }
 0x66d   : > { %v1024_v7 = vpop.permute.xlu0 %1023 }
 0x66e   : > { %v1039_v12 = vsel %vm1037_vm3, %v1036_v11, %v1024_v7 }
 0x685   : > { %v1239_v58 = vpop.f32.mrf.mxu0 }
 0x686   : > { %v1010_v59 = vmul.f32 %v1276_v52, %v1239_v58 }
 0x687   : > { %v992_v53 = vpop.f32.mrf.mxu0 }
 0x688   : > { %v1009_v61 = vmul.f32 %v1278_v60, %v992_v53  ;;  %1031 = vrot.lane.b32.xlu0 %v1010_v59, %s1291_s22 }
 0x68a   : > { %1029 = vrot.lane.b32.xlu1 %v1009_v61, %s1291_s22 }
 0x6fa   : > { %v1032_v13 = vpop.permute.xlu0 %1031 }
 0x6fb   : > { %v1042_v14 = vsel %vm1040_vm2, %v1039_v12, %v1032_v13 }
 0x6fc   : > { %1044 = vst [vmem:[%s190_s4 + $0x8] sm:$0xff] %v1042_v14  ;;  %v1030_v29 = vpop.permute.xlu1 %1029 }
 0x6fd   : > { %v1041_v16 = vsel %vm1040_vm2, %v1038_v15, %v1030_v29 }
 0x6fe   : > { %1043 = vst [vmem:[%s190_s4] sm:$0xff] %v1041_v16 }
 0x6ff PF: > { %s13_s12 = sadd.s32 1, %s1289_s12  }
 0x700   : > { %p10_p4 = scmp.ge.s32.totalorder %s13_s12, 4  }
 0x702   :  { %12 = sbr.rel (!%p10_p4) target bundleno = 1 (0x1), region = 65 }

</bundles_post_ra>
